<compile_context>
chip_gen: v7x
topology: tpu7x:2x2x1
jax: 0.10.0
libtpu: 0.0.40
codegen_flags: <defaults>
</compile_context>

<pallas_src>
import jax
import jax.numpy as jnp
from jax import lax
from jax.experimental import pallas as pl
from jax.experimental.pallas import tpu as pltpu

# ----------------------------- hyper-parameters ------------------------------
F_IN = 16          # input feature dim   (real model: 112)
C = 32             # channels            (real model: 512)
E = 16             # embedding dim       (real model: 512)
SCALE = 4          # Res2Net scale       (real model: 8)
WIDTH = C // SCALE
SE_B = C // 2      # SE bottleneck
ASP_B = 16         # ASP bottleneck      (real model: 128)
CAT = 3 * C        # concat channels
T_LEN = 32         # valid time frames
T_PAD = 128        # lane-dense padded time frames
BATCH = 2
K_STEM = 5
K_RES = 3
DILATIONS = (2, 3, 4)

_BF16 = jnp.bfloat16

# roll-as-shift "same" conv is only valid with enough zero slack (review note)
_MAX_HALO = max((K_STEM - 1) // 2, (K_RES - 1) // 2 * max(DILATIONS))
assert T_PAD - T_LEN >= _MAX_HALO, (
    "roll-as-shift 'same' conv needs T_PAD - T_LEN >= max conv halo")


# ------------------------------ in-kernel helpers -----------------------------
def _time_mask():
    """(1, T_PAD) f32 mask of the valid frames."""
    return (lax.broadcasted_iota(jnp.int32, (1, T_PAD), 1) < T_LEN).astype(
        jnp.float32)


def _time_mask_bool():
    return lax.broadcasted_iota(jnp.int32, (1, T_PAD), 1) < T_LEN


def _shift_lanes(x, d):
    """y[:, t] = x[:, t + d] (circular).

    Wrapped-in columns land either in zero-padded frames or in frames that are
    masked right after the conv, so the wrap is harmless.  Built from standard
    slices/concat so it lowers both on Mosaic and in interpret mode.
    """
    if d == 0:
        return x
    return jnp.roll(x, -d, axis=1)


def _tap_conv(x_bf16, w_packed, k, dilation):
    """'same' K-tap conv as ONE MXU matmul over a stacked (K*Cin) contraction.

    x_bf16  : (Cin, T_PAD) bf16, zero beyond T_LEN
    w_packed: (Cout, K*Cin) bf16, taps packed along the contraction axis
    Returns (Cout, T_PAD) f32.
    """
    pad = (k - 1) // 2 * dilation
    taps = [_shift_lanes(x_bf16, i * dilation - pad) for i in range(k)]
    xk = jnp.concatenate(taps, axis=0)                   # (K*Cin, T_PAD) bf16
    return jnp.dot(w_packed, xk, preferred_element_type=jnp.float32)


def _res2_se_block(x_in, w1, w2, rw, cvec, rvec, sw1, sb1, sw2, *,
                   dilation, mask):
    """Fused SE-Res2 block body; returns block(x_in) + x_in in f32.

    x_in: (C, T_PAD) f32, already masked to the valid frames.
    cvec: (C, 8)  columns [b1, s1, t1, b2, s2, t2, se_b2, 0]
    rvec: (WIDTH, 3*(SCALE-1)) columns [b_i..., s_i..., t_i...]
    """
    b1, s1, t1 = cvec[:, 0:1], cvec[:, 1:2], cvec[:, 2:3]
    b2, s2, t2 = cvec[:, 3:4], cvec[:, 4:5], cvec[:, 5:6]
    se_b2 = cvec[:, 6:7]

    # conv1 (1x1) + ReLU + BN
    h = jnp.dot(w1, x_in.astype(_BF16), preferred_element_type=jnp.float32)
    h = jnp.maximum(h + b1, 0.0)
    h = (h * s1 + t1) * mask                              # (C, T_PAD)

    # Res2Net: SCALE-1 dilated K=3 convs on WIDTH-channel chunks
    s1n = SCALE - 1
    outs = []
    sp = None
    for i in range(s1n):
        chunk = h[i * WIDTH:(i + 1) * WIDTH, :]
        inp = chunk if i == 0 else sp + chunk
        acc = _tap_conv(inp.astype(_BF16), rw[i], K_RES, dilation)
        sp = jnp.maximum(acc + rvec[:, i:i + 1], 0.0)
        sp = (sp * rvec[:, s1n + i:s1n + i + 1]
              + rvec[:, 2 * s1n + i:2 * s1n + i + 1]) * mask
        outs.append(sp)
    outs.append(h[s1n * WIDTH:, :])
    # TODO(synk): at real sizes write the branches into a (C,T) VMEM scratch
    # at static WIDTH offsets instead of concatenating values.
    h2 = jnp.concatenate(outs, axis=0)                    # (C, T_PAD)

    # conv2 (1x1) + ReLU + BN
    g = jnp.dot(w2, h2.astype(_BF16), preferred_element_type=jnp.float32)
    g = jnp.maximum(g + b2, 0.0)
    g = (g * s2 + t2) * mask                              # (C, T_PAD)

    # Squeeze-Excitation gate (tiny matvecs, f32)
    m = jnp.sum(g, axis=-1, keepdims=True) * (1.0 / T_LEN)
    z = jnp.maximum(jnp.dot(sw1, m, preferred_element_type=jnp.float32) + sb1,
                    0.0)
    gate = jax.nn.sigmoid(
        jnp.dot(sw2, z, preferred_element_type=jnp.float32) + se_b2)

    # fused skip connection
    return g * gate + x_in


# ------------------------------ Pallas kernels -------------------------------
def _stem_block2_kernel(x_ref, sw_ref, svec_ref,
                        w1_ref, rw_ref, w2_ref, cvec_ref, rvec_ref,
                        sw1_ref, sb1_ref, sw2_ref,
                        out2_ref, s2_ref):
    """Stem conv (K=5) fused with block 2; out1 never leaves VMEM."""
    mask = _time_mask()
    svec = svec_ref[...]                                  # (C, 3): [b, s, t]
    y = _tap_conv(x_ref[0], sw_ref[...], K_STEM, 1)
    y = jnp.maximum(y + svec[:, 0:1], 0.0)
    out1 = (y * svec[:, 1:2] + svec[:, 2:3]) * mask       # (C, T_PAD) f32

    out2 = _res2_se_block(out1, w1_ref[...], w2_ref[...], rw_ref[...],
                          cvec_ref[...], rvec_ref[...],
                          sw1_ref[...], sb1_ref[...], sw2_ref[...],
                          dilation=DILATIONS[0], mask=mask)
    out2_ref[0] = out2.astype(out2_ref.dtype)             # bf16
    s2_ref[0] = (out1 + out2).astype(s2_ref.dtype)        # running residual sum


def _make_block_kernel(dilation, emit_sum):
    def kernel(sprev_ref, w1_ref, rw_ref, w2_ref, cvec_ref, rvec_ref,
               sw1_ref, sb1_ref, sw2_ref, out_ref, *sum_ref):
        mask = _time_mask()
        x_in = sprev_ref[0].astype(jnp.float32)           # (C, T_PAD)
        out = _res2_se_block(x_in, w1_ref[...], w2_ref[...], rw_ref[...],
                             cvec_ref[...], rvec_ref[...],
                             sw1_ref[...], sb1_ref[...], sw2_ref[...],
                             dilation=dilation, mask=mask)
        out_ref[0] = out.astype(out_ref.dtype)
        if emit_sum:
            sum_ref[0][0] = (x_in + out).astype(sum_ref[0].dtype)
    return kernel


def _tail_kernel(x2_ref, x3_ref, x4_ref, wc_ref, cv_ref,
                 aw1_ref, ab1_ref, aw2_ref, hw_ref, hb_ref, o_ref):
    """Fused concat-conv + ReLU + ASP pooling + folded BN/Linear/BN head."""
    maskb = _time_mask_bool()

    # 1x1 conv over the (out2|out3|out4) concat: one 3C-deep MXU matmul
    xcat = jnp.concatenate([x2_ref[0], x3_ref[0], x4_ref[0]], axis=0)
    h = jnp.dot(wc_ref[...], xcat, preferred_element_type=jnp.float32)
    cv = cv_ref[...]                                      # (CAT, 2): [bc, ab2]
    h = jnp.maximum(h + cv[:, 0:1], 0.0)                  # (CAT, T_PAD)

    # attentive statistics pooling (masked softmax over valid frames)
    a = jnp.tanh(jnp.dot(aw1_ref[...], h.astype(_BF16),
                         preferred_element_type=jnp.float32) + ab1_ref[...])
    e = jnp.dot(aw2_ref[...], a.astype(_BF16),
                preferred_element_type=jnp.float32) + cv[:, 1:2]
    e = jnp.where(maskb, e, -1e30)
    e = e - jnp.max(e, axis=-1, keepdims=True)
    p = jnp.exp(e)
    alpha = p / jnp.sum(p, axis=-1, keepdims=True)        # exact normalization
    mean = jnp.sum(alpha * h, axis=-1, keepdims=True)     # (CAT, 1)
    var = jnp.sum(alpha * h * h, axis=-1, keepdims=True) - mean * mean
    std = jnp.sqrt(jnp.maximum(var, 1e-9))
    pooled = jnp.concatenate([mean, std], axis=0)         # (2*CAT, 1)

    # folded head: bn1 -> linear -> bn2 collapsed into one affine
    y = jnp.dot(hw_ref[...], pooled,
                preferred_element_type=jnp.float32) + hb_ref[...]
    # TODO(synk): at real E=512 store this lane-dense as a (1, E) row.
    o_ref[0] = y.astype(o_ref.dtype)                      # (E, 1)


# ------------------------------ Pallas wrappers -------------------------------
def _const_spec(shape):
    n = len(shape)
    return pl.BlockSpec(shape, lambda i, n=n: (0,) * n)


def _act_spec(ch):
    return pl.BlockSpec((1, ch, T_PAD), lambda i: (i, 0, 0))


_PARALLEL = pltpu.CompilerParams(dimension_semantics=("parallel",))


def pallas_stem_block2(x_bf16, pp):
    B = x_bf16.shape[0]
    bp = pp["b2"]
    in_specs = [
        _act_spec(F_IN),
        _const_spec((C, K_STEM * F_IN)), _const_spec((C, 3)),
        _const_spec((C, C)),
        _const_spec((SCALE - 1, WIDTH, K_RES * WIDTH)),
        _const_spec((C, C)),
        _const_spec((C, 8)), _const_spec((WIDTH, 3 * (SCALE - 1))),
        _const_spec((SE_B, C)), _const_spec((SE_B, 1)), _const_spec((C, SE_B)),
    ]
    out_specs = (_act_spec(C), _act_spec(C))
    out_shape = (jax.ShapeDtypeStruct((B, C, T_PAD), _BF16),
                 jax.ShapeDtypeStruct((B, C, T_PAD), _BF16))
    return pl.pallas_call(
        _stem_block2_kernel, grid=(B,), in_specs=in_specs,
        out_specs=out_specs, out_shape=out_shape, compiler_params=_PARALLEL,
    )(x_bf16, pp["stem_w"], pp["stem_vec"], bp["w1"], bp["rw"], bp["w2"],
      bp["cvec"], bp["rvec"], bp["sw1"], bp["sb1"], bp["sw2"])


def pallas_block(s_prev, bp, *, dilation, emit_sum):
    B = s_prev.shape[0]
    in_specs = [
        _act_spec(C),
        _const_spec((C, C)),
        _const_spec((SCALE - 1, WIDTH, K_RES * WIDTH)),
        _const_spec((C, C)),
        _const_spec((C, 8)), _const_spec((WIDTH, 3 * (SCALE - 1))),
        _const_spec((SE_B, C)), _const_spec((SE_B, 1)), _const_spec((C, SE_B)),
    ]
    if emit_sum:
        out_specs = (_act_spec(C), _act_spec(C))
        out_shape = (jax.ShapeDtypeStruct((B, C, T_PAD), _BF16),
                     jax.ShapeDtypeStruct((B, C, T_PAD), _BF16))
    else:
        out_specs = _act_spec(C)
        out_shape = jax.ShapeDtypeStruct((B, C, T_PAD), _BF16)
    return pl.pallas_call(
        _make_block_kernel(dilation, emit_sum), grid=(B,), in_specs=in_specs,
        out_specs=out_specs, out_shape=out_shape, compiler_params=_PARALLEL,
    )(s_prev, bp["w1"], bp["rw"], bp["w2"], bp["cvec"], bp["rvec"],
      bp["sw1"], bp["sb1"], bp["sw2"])


def pallas_tail(out2, out3, out4, pp):
    B = out2.shape[0]
    in_specs = [
        _act_spec(C), _act_spec(C), _act_spec(C),
        _const_spec((CAT, CAT)), _const_spec((CAT, 2)),
        _const_spec((ASP_B, CAT)), _const_spec((ASP_B, 1)),
        _const_spec((CAT, ASP_B)),
        _const_spec((E, 2 * CAT)), _const_spec((E, 1)),
    ]
    out = pl.pallas_call(
        _tail_kernel, grid=(B,), in_specs=in_specs,
        out_specs=pl.BlockSpec((1, E, 1), lambda i: (i, 0, 0)),
        out_shape=jax.ShapeDtypeStruct((B, E, 1), jnp.float32),
        compiler_params=_PARALLEL,
    )(out2, out3, out4, pp["wc"], pp["catvec"],
      pp["aw1"], pp["ab1"], pp["aw2"], pp["hw"], pp["hb"])
    return out[:, :, 0]


# ----------------------------- Pallas model forward ---------------------------
def ecapa_forward_pallas(x, pp):
    # x: (B, 1, T, F) -> squeeze(1) -> (B, T, F), mirrors the PyTorch wrapper.
    if x.ndim == 4:
        x = jnp.squeeze(x, axis=1)
    x = jnp.transpose(x, (0, 2, 1))                       # (B, F, T)
    x = jnp.pad(x, ((0, 0), (0, 0), (0, T_PAD - x.shape[-1]))).astype(_BF16)
    out2, s2 = pallas_stem_block2(x, pp)                  # stem fused in
    out3, s3 = pallas_block(s2, pp["b3"], dilation=DILATIONS[1], emit_sum=True)
    out4 = pallas_block(s3, pp["b4"], dilation=DILATIONS[2], emit_sum=False)
    return pallas_tail(out2, out3, out4, pp)


# ------------------------------- weight packing --------------------------------
def pack_params(p):
    """One-time weight packing (transpose / bf16 cast / vector tables / BN fold).

    Runs once outside the jitted forward so no repacking happens per call.
    """
    def pack_tap_w(w):                                    # (Cout, Cin, K) -> (Cout, K*Cin)
        cout, cin, k = w.shape
        return jnp.transpose(w, (0, 2, 1)).reshape(cout, k * cin).astype(_BF16)

    def block_pack(lp):
        rw = jnp.stack([pack_tap_w(c["w"]) for c in lp["res2"]], axis=0)
        rvec = jnp.concatenate(
            [jnp.stack([c["b"] for c in lp["res2"]], axis=1),
             jnp.stack([c["scale"] for c in lp["res2"]], axis=1),
             jnp.stack([c["shift"] for c in lp["res2"]], axis=1)],
            axis=1).astype(jnp.float32)                   # (W, 3*(S-1))
        cvec = jnp.stack(
            [lp["conv1"]["b"], lp["conv1"]["scale"], lp["conv1"]["shift"],
             lp["conv2"]["b"], lp["conv2"]["scale"], lp["conv2"]["shift"],
             lp["se"]["b2"], jnp.zeros((C,), jnp.float32)],
            axis=1).astype(jnp.float32)                   # (C, 8)
        return {"w1": lp["conv1"]["w"][:, :, 0].astype(_BF16),
                "w2": lp["conv2"]["w"][:, :, 0].astype(_BF16),
                "rw": rw, "rvec": rvec, "cvec": cvec,
                "sw1": lp["se"]["w1"].astype(jnp.float32),
                "sb1": lp["se"]["b1"].reshape(SE_B, 1).astype(jnp.float32),
                "sw2": lp["se"]["w2"].astype(jnp.float32)}

    hp = p["head"]
    # fold bn1 -> linear -> bn2 (no ReLU in between) into one affine
    hwf = hp["s2"][:, None] * hp["w"] * hp["s1"][None, :]
    hbf = hp["s2"] * (hp["w"] @ hp["t1"] + hp["b"]) + hp["t2"]

    return {
        "stem_w": pack_tap_w(p["layer1"]["w"]),
        "stem_vec": jnp.stack(
            [p["layer1"]["b"], p["layer1"]["scale"], p["layer1"]["shift"]],
            axis=1).astype(jnp.float32),
        "b2": block_pack(p["layer2"]),
        "b3": block_pack(p["layer3"]),
        "b4": block_pack(p["layer4"]),
        "wc": p["conv"]["w"][:, :, 0].astype(_BF16),
        "catvec": jnp.stack([p["conv"]["b"], p["pool"]["b2"]],
                            axis=1).astype(jnp.float32),
        "aw1": p["pool"]["w1"].astype(_BF16),
        "ab1": p["pool"]["b1"].reshape(ASP_B, 1).astype(jnp.float32),
        "aw2": p["pool"]["w2"].astype(_BF16),
        "hw": hwf.astype(jnp.float32),
        "hb": hbf.reshape(E, 1).astype(jnp.float32),
    }


# ---------------------------- pure-JAX reference ------------------------------
def _im2col(x, w, dilation, padding):
    B, Cin, T = x.shape
    Cout, _, K = w.shape
    xp = jnp.pad(x, ((0, 0), (0, 0), (padding, padding))) if padding else x
    cols = jnp.stack(
        [xp[:, :, k * dilation: k * dilation + T] for k in range(K)], axis=2)
    return cols.reshape(B, Cin * K, T), w.reshape(Cout, Cin * K)


def ref_conv(x, cp, *, dilation=1, padding=0, bn=True):
    xcol, w2 = _im2col(x, cp["w"], dilation, padding)
    y = jnp.einsum("ok,bkt->bot", w2.astype(_BF16), xcol.astype(_BF16),
                   preferred_element_type=jnp.float32)
    y = jnp.maximum(y + cp["b"][None, :, None], 0.0)
    if bn:
        y = y * cp["scale"][None, :, None] + cp["shift"][None, :, None]
    return y


def ref_se(x, sp):
    m = jnp.mean(x, axis=-1)
    h = jnp.maximum(m @ sp["w1"].T + sp["b1"], 0.0)
    g = jax.nn.sigmoid(h @ sp["w2"].T + sp["b2"])
    return x * g[:, :, None]


def ref_block(x, lp, dilation):
    h = ref_conv(x, lp["conv1"])
    spx = [h[:, i * WIDTH:(i + 1) * WIDTH, :] for i in range(SCALE)]
    outs = []
    sp = None
    for i in range(SCALE - 1):
        inp = spx[i] if i == 0 else sp + spx[i]
        sp = ref_conv(inp, lp["res2"][i], padding=dilation, dilation=dilation)
        outs.append(sp)
    outs.append(spx[-1])
    h = jnp.concatenate(outs, axis=1)
    h = ref_conv(h, lp["conv2"])
    return ref_se(h, lp["se"])


def ref_asp(x, pp):
    a = jnp.tanh(jnp.einsum("oc,bct->bot", pp["w1"].astype(_BF16),
                            x.astype(_BF16),
                            preferred_element_type=jnp.float32)
                 + pp["b1"][None, :, None])
    e = jnp.einsum("co,bot->bct", pp["w2"].astype(_BF16), a.astype(_BF16),
                   preferred_element_type=jnp.float32) + pp["b2"][None, :, None]
    alpha = jax.nn.softmax(e, axis=-1)
    mean = jnp.sum(alpha * x, axis=-1)
    var = jnp.sum(alpha * x * x, axis=-1) - mean * mean
    std = jnp.sqrt(jnp.maximum(var, 1e-9))
    return jnp.concatenate([mean, std], axis=1)


def ref_head(x, hp):
    x = x * hp["s1"] + hp["t1"]
    y = x @ hp["w"].T + hp["b"]
    return y * hp["s2"] + hp["t2"]


def ecapa_forward_ref(x, p):
    if x.ndim == 4:
        x = jnp.squeeze(x, axis=1)
    x = jnp.transpose(x, (0, 2, 1))
    out1 = ref_conv(x, p["layer1"], padding=2)
    out2 = ref_block(out1, p["layer2"], 2) + out1
    out3 = ref_block(out1 + out2, p["layer3"], 3) + out1 + out2
    out4 = ref_block(out1 + out2 + out3, p["layer4"], 4) + out1 + out2 + out3
    cat = jnp.concatenate([out2, out3, out4], axis=1)
    h = jnp.einsum("oc,bct->bot", p["conv"]["w"][:, :, 0].astype(_BF16),
                   cat.astype(_BF16), preferred_element_type=jnp.float32)
    h = jnp.maximum(h + p["conv"]["b"][None, :, None], 0.0)
    pooled = ref_asp(h, p["pool"])
    return ref_head(pooled, p["head"])


# ------------------------------- parameter init --------------------------------
def init_params(key):
    keys = iter(jax.random.split(key, 96))

    def w_init(shape, scale=0.1):
        return (scale * jax.random.normal(next(keys), shape)).astype(jnp.float32)

    def bn_init(c, eps=1e-5):
        gamma = 1.0 + 0.1 * jax.random.normal(next(keys), (c,)).astype(jnp.float32)
        beta = 0.1 * jax.random.normal(next(keys), (c,)).astype(jnp.float32)
        scale = gamma / jnp.sqrt(1.0 + eps)   # running_mean=0, running_var=1
        return scale, beta

    def conv_bn(cin, cout, k):
        s, t = bn_init(cout)
        return {"w": w_init((cout, cin, k)), "b": w_init((cout,), 0.05),
                "scale": s, "shift": t}

    def conv_plain(cin, cout, k):
        return {"w": w_init((cout, cin, k)), "b": w_init((cout,), 0.05)}

    def se_block():
        return {"conv1": conv_bn(C, C, 1),
                "res2": [conv_bn(WIDTH, WIDTH, 3) for _ in range(SCALE - 1)],
                "conv2": conv_bn(C, C, 1),
                "se": {"w1": w_init((SE_B, C)), "b1": w_init((SE_B,), 0.05),
                       "w2": w_init((C, SE_B)), "b2": w_init((C,), 0.05)}}

    s1, t1 = bn_init(2 * CAT)
    s2, t2 = bn_init(E)
    return {
        "layer1": conv_bn(F_IN, C, 5),
        "layer2": se_block(),
        "layer3": se_block(),
        "layer4": se_block(),
        "conv": conv_plain(CAT, CAT, 1),
        "pool": {"w1": w_init((ASP_B, CAT)), "b1": w_init((ASP_B,), 0.05),
                 "w2": w_init((CAT, ASP_B)), "b2": w_init((CAT,), 0.05)},
        "head": {"s1": s1, "t1": t1,
                 "w": w_init((E, 2 * CAT)), "b": w_init((E,), 0.05),
                 "s2": s2, "t2": t2},
    }


# ------------------------------------ main -------------------------------------
if __name__ == "__main__":
    key = jax.random.PRNGKey(0)
    pkey, xkey = jax.random.split(key)
    params = init_params(pkey)
    packed = pack_params(params)          # one-time packing, outside the jit
    x = jax.random.normal(xkey, (BATCH, 1, T_LEN, F_IN), jnp.float32)

    pallas_fwd = jax.jit(ecapa_forward_pallas)
    out = jax.block_until_ready(pallas_fwd(x, packed))

    ref = jax.block_until_ready(ecapa_forward_ref(x, params))

    assert out.shape == (BATCH, E), out.shape
    assert bool(jnp.all(jnp.isfinite(out)))
    # tolerance accounts for bf16 inter-block activation storage in the
    # Pallas path (reference keeps f32 activations between layers).
    max_err = float(jnp.max(jnp.abs(out - ref)))
    assert jnp.allclose(out, ref, rtol=2e-2, atol=2e-2), max_err
    print("KERNEL_OK")
</pallas_src>

<mosaic_0001>
module attributes {stable_mosaic.version = 11 : i64} {
  func.func @kernel(%arg0: i32, %arg1: memref<1x32x128xbf16, #tpu.memory_space<vmem>>, %arg2: memref<32x32xbf16, #tpu.memory_space<vmem>>, %arg3: memref<3x8x24xbf16, #tpu.memory_space<vmem>>, %arg4: memref<32x32xbf16, #tpu.memory_space<vmem>>, %arg5: memref<32x8xf32, #tpu.memory_space<vmem>>, %arg6: memref<8x9xf32, #tpu.memory_space<vmem>>, %arg7: memref<16x32xf32, #tpu.memory_space<vmem>>, %arg8: memref<16x1xf32, #tpu.memory_space<vmem>>, %arg9: memref<32x16xf32, #tpu.memory_space<vmem>>, %arg10: memref<1x32x128xbf16, #tpu.memory_space<vmem>>) attributes {dimension_semantics = [#tpu.dimension_semantics<parallel>], iteration_bounds = array<i64: 2>, scalar_prefetch = 0 : i64, scratch_operands = 0 : i64, tpu.core_type = #tpu.core_type<tc>, window_params = [{transform_indices = @transform_0, window_bounds = array<i64: 1, 32, 128>}, {pipeline_mode = #tpu.pipeline_mode<synchronous>, transform_indices = @transform_1, window_bounds = array<i64: 32, 32>}, {pipeline_mode = #tpu.pipeline_mode<synchronous>, transform_indices = @transform_2, window_bounds = array<i64: 3, 8, 24>}, {pipeline_mode = #tpu.pipeline_mode<synchronous>, transform_indices = @transform_3, window_bounds = array<i64: 32, 32>}, {pipeline_mode = #tpu.pipeline_mode<synchronous>, transform_indices = @transform_4, window_bounds = array<i64: 32, 8>}, {pipeline_mode = #tpu.pipeline_mode<synchronous>, transform_indices = @transform_5, window_bounds = array<i64: 8, 9>}, {pipeline_mode = #tpu.pipeline_mode<synchronous>, transform_indices = @transform_6, window_bounds = array<i64: 16, 32>}, {pipeline_mode = #tpu.pipeline_mode<synchronous>, transform_indices = @transform_7, window_bounds = array<i64: 16, 1>}, {pipeline_mode = #tpu.pipeline_mode<synchronous>, transform_indices = @transform_8, window_bounds = array<i64: 32, 16>}, {transform_indices = @transform_9, window_bounds = array<i64: 1, 32, 128>}]} {
    %0 = tpu.iota {dimensions = array<i32: 1>} : vector<1x128xi32>
    %c32_i32 = arith.constant 32 : i32
    %1 = vector.broadcast %c32_i32 : i32 to vector<1x128xi32>
    %2 = arith.cmpi slt, %0, %1 : vector<1x128xi32>
    %3 = arith.extui %2 : vector<1x128xi1> to vector<1x128xi32>
    %4 = arith.sitofp %3 : vector<1x128xi32> to vector<1x128xf32>
    %c0 = arith.constant 0 : index
    %c0_0 = arith.constant 0 : index
    %c0_1 = arith.constant 0 : index
    %5 = vector.load %arg1[%c0, %c0_0, %c0_1] : memref<1x32x128xbf16, #tpu.memory_space<vmem>>, vector<1x32x128xbf16>
    %6 = vector.shape_cast %5 : vector<1x32x128xbf16> to vector<32x128xbf16>
    %7 = arith.extf %6 : vector<32x128xbf16> to vector<32x128xf32>
    %c0_2 = arith.constant 0 : index
    %c0_3 = arith.constant 0 : index
    %8 = vector.load %arg2[%c0_2, %c0_3] : memref<32x32xbf16, #tpu.memory_space<vmem>>, vector<32x32xbf16>
    %c0_4 = arith.constant 0 : index
    %c0_5 = arith.constant 0 : index
    %9 = vector.load %arg4[%c0_4, %c0_5] : memref<32x32xbf16, #tpu.memory_space<vmem>>, vector<32x32xbf16>
    %c0_6 = arith.constant 0 : index
    %c0_7 = arith.constant 0 : index
    %c0_8 = arith.constant 0 : index
    %10 = vector.load %arg3[%c0_6, %c0_7, %c0_8] : memref<3x8x24xbf16, #tpu.memory_space<vmem>>, vector<3x8x24xbf16>
    %c0_9 = arith.constant 0 : index
    %c0_10 = arith.constant 0 : index
    %11 = vector.load %arg5[%c0_9, %c0_10] : memref<32x8xf32, #tpu.memory_space<vmem>>, vector<32x8xf32>
    %c0_11 = arith.constant 0 : index
    %c0_12 = arith.constant 0 : index
    %12 = vector.load %arg6[%c0_11, %c0_12] : memref<8x9xf32, #tpu.memory_space<vmem>>, vector<8x9xf32>
    %c0_13 = arith.constant 0 : index
    %c0_14 = arith.constant 0 : index
    %13 = vector.load %arg7[%c0_13, %c0_14] : memref<16x32xf32, #tpu.memory_space<vmem>>, vector<16x32xf32>
    %c0_15 = arith.constant 0 : index
    %c0_16 = arith.constant 0 : index
    %14 = vector.load %arg8[%c0_15, %c0_16] : memref<16x1xf32, #tpu.memory_space<vmem>>, vector<16x1xf32>
    %c0_17 = arith.constant 0 : index
    %c0_18 = arith.constant 0 : index
    %15 = vector.load %arg9[%c0_17, %c0_18] : memref<32x16xf32, #tpu.memory_space<vmem>>, vector<32x16xf32>
    %16 = vector.extract_strided_slice %11 {offsets = [0, 0], sizes = [32, 1], strides = [1, 1]} : vector<32x8xf32> to vector<32x1xf32>
    %17 = vector.extract_strided_slice %11 {offsets = [0, 1], sizes = [32, 1], strides = [1, 1]} : vector<32x8xf32> to vector<32x1xf32>
    %18 = vector.extract_strided_slice %11 {offsets = [0, 2], sizes = [32, 1], strides = [1, 1]} : vector<32x8xf32> to vector<32x1xf32>
    %19 = vector.extract_strided_slice %11 {offsets = [0, 3], sizes = [32, 1], strides = [1, 1]} : vector<32x8xf32> to vector<32x1xf32>
    %20 = vector.extract_strided_slice %11 {offsets = [0, 4], sizes = [32, 1], strides = [1, 1]} : vector<32x8xf32> to vector<32x1xf32>
    %21 = vector.extract_strided_slice %11 {offsets = [0, 5], sizes = [32, 1], strides = [1, 1]} : vector<32x8xf32> to vector<32x1xf32>
    %22 = vector.extract_strided_slice %11 {offsets = [0, 6], sizes = [32, 1], strides = [1, 1]} : vector<32x8xf32> to vector<32x1xf32>
    %23 = arith.truncf %7 : vector<32x128xf32> to vector<32x128xbf16>
    %cst = arith.constant dense<0.000000e+00> : vector<32x128xf32>
    %24 = tpu.matmul %8, %23, %cst {dimension_numbers = #tpu.dot_dimension_numbers<[1], [0], [0], [1], [0, 0, 1, 1], [], []>} : vector<32x32xbf16>, vector<32x128xbf16>, vector<32x128xf32> -> vector<32x128xf32>
    %25 = vector.broadcast %16 : vector<32x1xf32> to vector<32x128xf32>
    %26 = arith.addf %24, %25 : vector<32x128xf32>
    %cst_19 = arith.constant 0.000000e+00 : f32
    %27 = vector.broadcast %cst_19 : f32 to vector<32x128xf32>
    %28 = arith.maximumf %26, %27 : vector<32x128xf32>
    %29 = vector.broadcast %17 : vector<32x1xf32> to vector<32x128xf32>
    %30 = arith.mulf %28, %29 : vector<32x128xf32>
    %31 = vector.broadcast %18 : vector<32x1xf32> to vector<32x128xf32>
    %32 = arith.addf %30, %31 : vector<32x128xf32>
    %33 = vector.broadcast %4 : vector<1x128xf32> to vector<32x128xf32>
    %34 = arith.mulf %32, %33 : vector<32x128xf32>
    %35 = vector.extract_strided_slice %34 {offsets = [0, 0], sizes = [8, 128], strides = [1, 1]} : vector<32x128xf32> to vector<8x128xf32>
    %36 = arith.truncf %35 : vector<8x128xf32> to vector<8x128xbf16>
    %37 = vector.extract_strided_slice %10 {offsets = [0, 0, 0], sizes = [1, 8, 24], strides = [1, 1, 1]} : vector<3x8x24xbf16> to vector<1x8x24xbf16>
    %38 = vector.shape_cast %37 : vector<1x8x24xbf16> to vector<8x24xbf16>
    %39 = vector.extract_strided_slice %36 {offsets = [0, 124], sizes = [8, 4], strides = [1, 1]} : vector<8x128xbf16> to vector<8x4xbf16>
    %40 = vector.extract_strided_slice %36 {offsets = [0, 0], sizes = [8, 124], strides = [1, 1]} : vector<8x128xbf16> to vector<8x124xbf16>
    %41 = tpu.concatenate %39, %40 in 1 : vector<8x4xbf16>, vector<8x124xbf16> -> vector<8x128xbf16>
    %42 = vector.extract_strided_slice %36 {offsets = [0, 4], sizes = [8, 124], strides = [1, 1]} : vector<8x128xbf16> to vector<8x124xbf16>
    %43 = vector.extract_strided_slice %36 {offsets = [0, 0], sizes = [8, 4], strides = [1, 1]} : vector<8x128xbf16> to vector<8x4xbf16>
    %44 = tpu.concatenate %42, %43 in 1 : vector<8x124xbf16>, vector<8x4xbf16> -> vector<8x128xbf16>
    %45 = tpu.concatenate %41, %36, %44 in 0 : vector<8x128xbf16>, vector<8x128xbf16>, vector<8x128xbf16> -> vector<24x128xbf16>
    %cst_20 = arith.constant dense<0.000000e+00> : vector<8x128xf32>
    %46 = tpu.matmul %38, %45, %cst_20 {dimension_numbers = #tpu.dot_dimension_numbers<[1], [0], [0], [1], [0, 0, 1, 1], [], []>} : vector<8x24xbf16>, vector<24x128xbf16>, vector<8x128xf32> -> vector<8x128xf32>
    %47 = vector.extract_strided_slice %12 {offsets = [0, 0], sizes = [8, 1], strides = [1, 1]} : vector<8x9xf32> to vector<8x1xf32>
    %48 = vector.broadcast %47 : vector<8x1xf32> to vector<8x128xf32>
    %49 = arith.addf %46, %48 : vector<8x128xf32>
    %cst_21 = arith.constant 0.000000e+00 : f32
    %50 = vector.broadcast %cst_21 : f32 to vector<8x128xf32>
    %51 = arith.maximumf %49, %50 : vector<8x128xf32>
    %52 = vector.extract_strided_slice %12 {offsets = [0, 3], sizes = [8, 1], strides = [1, 1]} : vector<8x9xf32> to vector<8x1xf32>
    %53 = vector.broadcast %52 : vector<8x1xf32> to vector<8x128xf32>
    %54 = arith.mulf %51, %53 : vector<8x128xf32>
    %55 = vector.extract_strided_slice %12 {offsets = [0, 6], sizes = [8, 1], strides = [1, 1]} : vector<8x9xf32> to vector<8x1xf32>
    %56 = vector.broadcast %55 : vector<8x1xf32> to vector<8x128xf32>
    %57 = arith.addf %54, %56 : vector<8x128xf32>
    %58 = vector.broadcast %4 : vector<1x128xf32> to vector<8x128xf32>
    %59 = arith.mulf %57, %58 : vector<8x128xf32>
    %60 = vector.extract_strided_slice %34 {offsets = [8, 0], sizes = [8, 128], strides = [1, 1]} : vector<32x128xf32> to vector<8x128xf32>
    %61 = arith.addf %59, %60 : vector<8x128xf32>
    %62 = arith.truncf %61 : vector<8x128xf32> to vector<8x128xbf16>
    %63 = vector.extract_strided_slice %10 {offsets = [1, 0, 0], sizes = [1, 8, 24], strides = [1, 1, 1]} : vector<3x8x24xbf16> to vector<1x8x24xbf16>
    %64 = vector.shape_cast %63 : vector<1x8x24xbf16> to vector<8x24xbf16>
    %65 = vector.extract_strided_slice %62 {offsets = [0, 124], sizes = [8, 4], strides = [1, 1]} : vector<8x128xbf16> to vector<8x4xbf16>
    %66 = vector.extract_strided_slice %62 {offsets = [0, 0], sizes = [8, 124], strides = [1, 1]} : vector<8x128xbf16> to vector<8x124xbf16>
    %67 = tpu.concatenate %65, %66 in 1 : vector<8x4xbf16>, vector<8x124xbf16> -> vector<8x128xbf16>
    %68 = vector.extract_strided_slice %62 {offsets = [0, 4], sizes = [8, 124], strides = [1, 1]} : vector<8x128xbf16> to vector<8x124xbf16>
    %69 = vector.extract_strided_slice %62 {offsets = [0, 0], sizes = [8, 4], strides = [1, 1]} : vector<8x128xbf16> to vector<8x4xbf16>
    %70 = tpu.concatenate %68, %69 in 1 : vector<8x124xbf16>, vector<8x4xbf16> -> vector<8x128xbf16>
    %71 = tpu.concatenate %67, %62, %70 in 0 : vector<8x128xbf16>, vector<8x128xbf16>, vector<8x128xbf16> -> vector<24x128xbf16>
    %cst_22 = arith.constant dense<0.000000e+00> : vector<8x128xf32>
    %72 = tpu.matmul %64, %71, %cst_22 {dimension_numbers = #tpu.dot_dimension_numbers<[1], [0], [0], [1], [0, 0, 1, 1], [], []>} : vector<8x24xbf16>, vector<24x128xbf16>, vector<8x128xf32> -> vector<8x128xf32>
    %73 = vector.extract_strided_slice %12 {offsets = [0, 1], sizes = [8, 1], strides = [1, 1]} : vector<8x9xf32> to vector<8x1xf32>
    %74 = vector.broadcast %73 : vector<8x1xf32> to vector<8x128xf32>
    %75 = arith.addf %72, %74 : vector<8x128xf32>
    %cst_23 = arith.constant 0.000000e+00 : f32
    %76 = vector.broadcast %cst_23 : f32 to vector<8x128xf32>
    %77 = arith.maximumf %75, %76 : vector<8x128xf32>
    %78 = vector.extract_strided_slice %12 {offsets = [0, 4], sizes = [8, 1], strides = [1, 1]} : vector<8x9xf32> to vector<8x1xf32>
    %79 = vector.broadcast %78 : vector<8x1xf32> to vector<8x128xf32>
    %80 = arith.mulf %77, %79 : vector<8x128xf32>
    %81 = vector.extract_strided_slice %12 {offsets = [0, 7], sizes = [8, 1], strides = [1, 1]} : vector<8x9xf32> to vector<8x1xf32>
    %82 = vector.broadcast %81 : vector<8x1xf32> to vector<8x128xf32>
    %83 = arith.addf %80, %82 : vector<8x128xf32>
    %84 = vector.broadcast %4 : vector<1x128xf32> to vector<8x128xf32>
    %85 = arith.mulf %83, %84 : vector<8x128xf32>
    %86 = vector.extract_strided_slice %34 {offsets = [16, 0], sizes = [8, 128], strides = [1, 1]} : vector<32x128xf32> to vector<8x128xf32>
    %87 = arith.addf %85, %86 : vector<8x128xf32>
    %88 = arith.truncf %87 : vector<8x128xf32> to vector<8x128xbf16>
    %89 = vector.extract_strided_slice %10 {offsets = [2, 0, 0], sizes = [1, 8, 24], strides = [1, 1, 1]} : vector<3x8x24xbf16> to vector<1x8x24xbf16>
    %90 = vector.shape_cast %89 : vector<1x8x24xbf16> to vector<8x24xbf16>
    %91 = vector.extract_strided_slice %88 {offsets = [0, 124], sizes = [8, 4], strides = [1, 1]} : vector<8x128xbf16> to vector<8x4xbf16>
    %92 = vector.extract_strided_slice %88 {offsets = [0, 0], sizes = [8, 124], strides = [1, 1]} : vector<8x128xbf16> to vector<8x124xbf16>
    %93 = tpu.concatenate %91, %92 in 1 : vector<8x4xbf16>, vector<8x124xbf16> -> vector<8x128xbf16>
    %94 = vector.extract_strided_slice %88 {offsets = [0, 4], sizes = [8, 124], strides = [1, 1]} : vector<8x128xbf16> to vector<8x124xbf16>
    %95 = vector.extract_strided_slice %88 {offsets = [0, 0], sizes = [8, 4], strides = [1, 1]} : vector<8x128xbf16> to vector<8x4xbf16>
    %96 = tpu.concatenate %94, %95 in 1 : vector<8x124xbf16>, vector<8x4xbf16> -> vector<8x128xbf16>
    %97 = tpu.concatenate %93, %88, %96 in 0 : vector<8x128xbf16>, vector<8x128xbf16>, vector<8x128xbf16> -> vector<24x128xbf16>
    %cst_24 = arith.constant dense<0.000000e+00> : vector<8x128xf32>
    %98 = tpu.matmul %90, %97, %cst_24 {dimension_numbers = #tpu.dot_dimension_numbers<[1], [0], [0], [1], [0, 0, 1, 1], [], []>} : vector<8x24xbf16>, vector<24x128xbf16>, vector<8x128xf32> -> vector<8x128xf32>
    %99 = vector.extract_strided_slice %12 {offsets = [0, 2], sizes = [8, 1], strides = [1, 1]} : vector<8x9xf32> to vector<8x1xf32>
    %100 = vector.broadcast %99 : vector<8x1xf32> to vector<8x128xf32>
    %101 = arith.addf %98, %100 : vector<8x128xf32>
    %cst_25 = arith.constant 0.000000e+00 : f32
    %102 = vector.broadcast %cst_25 : f32 to vector<8x128xf32>
    %103 = arith.maximumf %101, %102 : vector<8x128xf32>
    %104 = vector.extract_strided_slice %12 {offsets = [0, 5], sizes = [8, 1], strides = [1, 1]} : vector<8x9xf32> to vector<8x1xf32>
    %105 = vector.broadcast %104 : vector<8x1xf32> to vector<8x128xf32>
    %106 = arith.mulf %103, %105 : vector<8x128xf32>
    %107 = vector.extract_strided_slice %12 {offsets = [0, 8], sizes = [8, 1], strides = [1, 1]} : vector<8x9xf32> to vector<8x1xf32>
    %108 = vector.broadcast %107 : vector<8x1xf32> to vector<8x128xf32>
    %109 = arith.addf %106, %108 : vector<8x128xf32>
    %110 = vector.broadcast %4 : vector<1x128xf32> to vector<8x128xf32>
    %111 = arith.mulf %109, %110 : vector<8x128xf32>
    %112 = vector.extract_strided_slice %34 {offsets = [24, 0], sizes = [8, 128], strides = [1, 1]} : vector<32x128xf32> to vector<8x128xf32>
    %113 = tpu.concatenate %59, %85, %111, %112 in 0 : vector<8x128xf32>, vector<8x128xf32>, vector<8x128xf32>, vector<8x128xf32> -> vector<32x128xf32>
    %114 = arith.truncf %113 : vector<32x128xf32> to vector<32x128xbf16>
    %cst_26 = arith.constant dense<0.000000e+00> : vector<32x128xf32>
    %115 = tpu.matmul %9, %114, %cst_26 {dimension_numbers = #tpu.dot_dimension_numbers<[1], [0], [0], [1], [0, 0, 1, 1], [], []>} : vector<32x32xbf16>, vector<32x128xbf16>, vector<32x128xf32> -> vector<32x128xf32>
    %116 = vector.broadcast %19 : vector<32x1xf32> to vector<32x128xf32>
    %117 = arith.addf %115, %116 : vector<32x128xf32>
    %cst_27 = arith.constant 0.000000e+00 : f32
    %118 = vector.broadcast %cst_27 : f32 to vector<32x128xf32>
    %119 = arith.maximumf %117, %118 : vector<32x128xf32>
    %120 = vector.broadcast %20 : vector<32x1xf32> to vector<32x128xf32>
    %121 = arith.mulf %119, %120 : vector<32x128xf32>
    %122 = vector.broadcast %21 : vector<32x1xf32> to vector<32x128xf32>
    %123 = arith.addf %121, %122 : vector<32x128xf32>
    %124 = vector.broadcast %4 : vector<1x128xf32> to vector<32x128xf32>
    %125 = arith.mulf %123, %124 : vector<32x128xf32>
    %cst_28 = arith.constant dense<0.000000e+00> : vector<32xf32>
    %126 = vector.multi_reduction <add>, %125, %cst_28 [1] : vector<32x128xf32> to vector<32xf32>
    %127 = vector.shape_cast %126 : vector<32xf32> to vector<32x1xf32>
    %cst_29 = arith.constant 3.125000e-02 : f32
    %128 = vector.broadcast %cst_29 : f32 to vector<32x1xf32>
    %129 = arith.mulf %127, %128 : vector<32x1xf32>
    %cst_30 = arith.constant dense<0.000000e+00> : vector<16x1xf32>
    %130 = tpu.matmul %13, %129, %cst_30 {dimension_numbers = #tpu.dot_dimension_numbers<[1], [0], [0], [1], [0, 0, 1, 1], [], []>} : vector<16x32xf32>, vector<32x1xf32>, vector<16x1xf32> -> vector<16x1xf32>
    %131 = arith.addf %130, %14 : vector<16x1xf32>
    %cst_31 = arith.constant 0.000000e+00 : f32
    %132 = vector.broadcast %cst_31 : f32 to vector<16x1xf32>
    %133 = arith.maximumf %131, %132 : vector<16x1xf32>
    %cst_32 = arith.constant dense<0.000000e+00> : vector<32x1xf32>
    %134 = tpu.matmul %15, %133, %cst_32 {dimension_numbers = #tpu.dot_dimension_numbers<[1], [0], [0], [1], [0, 0, 1, 1], [], []>} : vector<32x16xf32>, vector<16x1xf32>, vector<32x1xf32> -> vector<32x1xf32>
    %135 = arith.addf %134, %22 : vector<32x1xf32>
    %136 = arith.negf %135 : vector<32x1xf32>
    %137 = math.exp %136 : vector<32x1xf32>
    %cst_33 = arith.constant 1.000000e+00 : f32
    %138 = vector.broadcast %cst_33 : f32 to vector<32x1xf32>
    %139 = arith.addf %138, %137 : vector<32x1xf32>
    %140 = arith.divf %138, %139 : vector<32x1xf32>
    %141 = vector.broadcast %140 : vector<32x1xf32> to vector<32x128xf32>
    %142 = arith.mulf %125, %141 : vector<32x128xf32>
    %143 = arith.addf %142, %7 : vector<32x128xf32>
    %144 = arith.truncf %143 : vector<32x128xf32> to vector<32x128xbf16>
    %c0_34 = arith.constant 0 : index
    %c0_35 = arith.constant 0 : index
    %c0_36 = arith.constant 0 : index
    %145 = vector.load %arg10[%c0_34, %c0_35, %c0_36] : memref<1x32x128xbf16, #tpu.memory_space<vmem>>, vector<1x32x128xbf16>
    %146 = vector.shape_cast %145 : vector<1x32x128xbf16> to vector<32x128xbf16>
    %147 = vector.shape_cast %144 : vector<32x128xbf16> to vector<1x32x128xbf16>
    tpu.vector_store %arg10[%c0_34, %c0_35, %c0_36], %147 {strides = array<i32>} : memref<1x32x128xbf16, #tpu.memory_space<vmem>>, vector<1x32x128xbf16>,
    return
  }
  func.func @transform_0(%arg0: i32) -> (i32, i32, i32) {
    %c0_i32 = arith.constant 0 : i32
    %c0_i32_0 = arith.constant 0 : i32
    %c0_i32_1 = arith.constant 0 : i32
    return %arg0, %c0_i32, %c0_i32_0 : i32, i32, i32
  }
  func.func @transform_1(%arg0: i32) -> (i32, i32) {
    %c0_i32 = arith.constant 0 : i32
    %c0_i32_0 = arith.constant 0 : i32
    %c0_i32_1 = arith.constant 0 : i32
    return %c0_i32, %c0_i32_0 : i32, i32
  }
  func.func @transform_2(%arg0: i32) -> (i32, i32, i32) {
    %c0_i32 = arith.constant 0 : i32
    %c0_i32_0 = arith.constant 0 : i32
    %c0_i32_1 = arith.constant 0 : i32
    %c0_i32_2 = arith.constant 0 : i32
    return %c0_i32, %c0_i32_0, %c0_i32_1 : i32, i32, i32
  }
  func.func @transform_3(%arg0: i32) -> (i32, i32) {
    %c0_i32 = arith.constant 0 : i32
    %c0_i32_0 = arith.constant 0 : i32
    %c0_i32_1 = arith.constant 0 : i32
    return %c0_i32, %c0_i32_0 : i32, i32
  }
  func.func @transform_4(%arg0: i32) -> (i32, i32) {
    %c0_i32 = arith.constant 0 : i32
    %c0_i32_0 = arith.constant 0 : i32
    %c0_i32_1 = arith.constant 0 : i32
    return %c0_i32, %c0_i32_0 : i32, i32
  }
  func.func @transform_5(%arg0: i32) -> (i32, i32) {
    %c0_i32 = arith.constant 0 : i32
    %c0_i32_0 = arith.constant 0 : i32
    %c0_i32_1 = arith.constant 0 : i32
    return %c0_i32, %c0_i32_0 : i32, i32
  }
  func.func @transform_6(%arg0: i32) -> (i32, i32) {
    %c0_i32 = arith.constant 0 : i32
    %c0_i32_0 = arith.constant 0 : i32
    %c0_i32_1 = arith.constant 0 : i32
    return %c0_i32, %c0_i32_0 : i32, i32
  }
  func.func @transform_7(%arg0: i32) -> (i32, i32) {
    %c0_i32 = arith.constant 0 : i32
    %c0_i32_0 = arith.constant 0 : i32
    %c0_i32_1 = arith.constant 0 : i32
    return %c0_i32, %c0_i32_0 : i32, i32
  }
  func.func @transform_8(%arg0: i32) -> (i32, i32) {
    %c0_i32 = arith.constant 0 : i32
    %c0_i32_0 = arith.constant 0 : i32
    %c0_i32_1 = arith.constant 0 : i32
    return %c0_i32, %c0_i32_0 : i32, i32
  }
  func.func @transform_9(%arg0: i32) -> (i32, i32, i32) {
    %c0_i32 = arith.constant 0 : i32
    %c0_i32_0 = arith.constant 0 : i32
    %c0_i32_1 = arith.constant 0 : i32
    return %arg0, %c0_i32, %c0_i32_0 : i32, i32, i32
  }
}

module attributes {stable_mosaic.version = 11 : i64} {
  func.func @_stem_block2_kernel(%arg0: i32, %arg1: memref<1x16x128xbf16, #tpu.memory_space<vmem>>, %arg2: memref<32x80xbf16, #tpu.memory_space<vmem>>, %arg3: memref<32x3xf32, #tpu.memory_space<vmem>>, %arg4: memref<32x32xbf16, #tpu.memory_space<vmem>>, %arg5: memref<3x8x24xbf16, #tpu.memory_space<vmem>>, %arg6: memref<32x32xbf16, #tpu.memory_space<vmem>>, %arg7: memref<32x8xf32, #tpu.memory_space<vmem>>, %arg8: memref<8x9xf32, #tpu.memory_space<vmem>>, %arg9: memref<16x32xf32, #tpu.memory_space<vmem>>, %arg10: memref<16x1xf32, #tpu.memory_space<vmem>>, %arg11: memref<32x16xf32, #tpu.memory_space<vmem>>, %arg12: memref<1x32x128xbf16, #tpu.memory_space<vmem>>, %arg13: memref<1x32x128xbf16, #tpu.memory_space<vmem>>) attributes {dimension_semantics = [#tpu.dimension_semantics<parallel>], iteration_bounds = array<i64: 2>, scalar_prefetch = 0 : i64, scratch_operands = 0 : i64, tpu.core_type = #tpu.core_type<tc>, window_params = [{transform_indices = @transform_0, window_bounds = array<i64: 1, 16, 128>}, {pipeline_mode = #tpu.pipeline_mode<synchronous>, transform_indices = @transform_1, window_bounds = array<i64: 32, 80>}, {pipeline_mode = #tpu.pipeline_mode<synchronous>, transform_indices = @transform_2, window_bounds = array<i64: 32, 3>}, {pipeline_mode = #tpu.pipeline_mode<synchronous>, transform_indices = @transform_3, window_bounds = array<i64: 32, 32>}, {pipeline_mode = #tpu.pipeline_mode<synchronous>, transform_indices = @transform_4, window_bounds = array<i64: 3, 8, 24>}, {pipeline_mode = #tpu.pipeline_mode<synchronous>, transform_indices = @transform_5, window_bounds = array<i64: 32, 32>}, {pipeline_mode = #tpu.pipeline_mode<synchronous>, transform_indices = @transform_6, window_bounds = array<i64: 32, 8>}, {pipeline_mode = #tpu.pipeline_mode<synchronous>, transform_indices = @transform_7, window_bounds = array<i64: 8, 9>}, {pipeline_mode = #tpu.pipeline_mode<synchronous>, transform_indices = @transform_8, window_bounds = array<i64: 16, 32>}, {pipeline_mode = #tpu.pipeline_mode<synchronous>, transform_indices = @transform_9, window_bounds = array<i64: 16, 1>}, {pipeline_mode = #tpu.pipeline_mode<synchronous>, transform_indices = @transform_10, window_bounds = array<i64: 32, 16>}, {transform_indices = @transform_11, window_bounds = array<i64: 1, 32, 128>}, {transform_indices = @transform_12, window_bounds = array<i64: 1, 32, 128>}]} {
    %0 = tpu.iota {dimensions = array<i32: 1>} : vector<1x128xi32>
    %c32_i32 = arith.constant 32 : i32
    %1 = vector.broadcast %c32_i32 : i32 to vector<1x128xi32>
    %2 = arith.cmpi slt, %0, %1 : vector<1x128xi32>
    %3 = arith.extui %2 : vector<1x128xi1> to vector<1x128xi32>
    %4 = arith.sitofp %3 : vector<1x128xi32> to vector<1x128xf32>
    %c0 = arith.constant 0 : index
    %c0_0 = arith.constant 0 : index
    %5 = vector.load %arg3[%c0, %c0_0] : memref<32x3xf32, #tpu.memory_space<vmem>>, vector<32x3xf32>
    %c0_1 = arith.constant 0 : index
    %c0_2 = arith.constant 0 : index
    %c0_3 = arith.constant 0 : index
    %6 = vector.load %arg1[%c0_1, %c0_2, %c0_3] : memref<1x16x128xbf16, #tpu.memory_space<vmem>>, vector<1x16x128xbf16>
    %7 = vector.shape_cast %6 : vector<1x16x128xbf16> to vector<16x128xbf16>
    %c0_4 = arith.constant 0 : index
    %c0_5 = arith.constant 0 : index
    %8 = vector.load %arg2[%c0_4, %c0_5] : memref<32x80xbf16, #tpu.memory_space<vmem>>, vector<32x80xbf16>
    %9 = vector.extract_strided_slice %7 {offsets = [0, 126], sizes = [16, 2], strides = [1, 1]} : vector<16x128xbf16> to vector<16x2xbf16>
    %10 = vector.extract_strided_slice %7 {offsets = [0, 0], sizes = [16, 126], strides = [1, 1]} : vector<16x128xbf16> to vector<16x126xbf16>
    %11 = tpu.concatenate %9, %10 in 1 : vector<16x2xbf16>, vector<16x126xbf16> -> vector<16x128xbf16>
    %12 = vector.extract_strided_slice %7 {offsets = [0, 127], sizes = [16, 1], strides = [1, 1]} : vector<16x128xbf16> to vector<16x1xbf16>
    %13 = vector.extract_strided_slice %7 {offsets = [0, 0], sizes = [16, 127], strides = [1, 1]} : vector<16x128xbf16> to vector<16x127xbf16>
    %14 = tpu.concatenate %12, %13 in 1 : vector<16x1xbf16>, vector<16x127xbf16> -> vector<16x128xbf16>
    %15 = vector.extract_strided_slice %7 {offsets = [0, 1], sizes = [16, 127], strides = [1, 1]} : vector<16x128xbf16> to vector<16x127xbf16>
    %16 = vector.extract_strided_slice %7 {offsets = [0, 0], sizes = [16, 1], strides = [1, 1]} : vector<16x128xbf16> to vector<16x1xbf16>
    %17 = tpu.concatenate %15, %16 in 1 : vector<16x127xbf16>, vector<16x1xbf16> -> vector<16x128xbf16>
    %18 = vector.extract_strided_slice %7 {offsets = [0, 2], sizes = [16, 126], strides = [1, 1]} : vector<16x128xbf16> to vector<16x126xbf16>
    %19 = vector.extract_strided_slice %7 {offsets = [0, 0], sizes = [16, 2], strides = [1, 1]} : vector<16x128xbf16> to vector<16x2xbf16>
    %20 = tpu.concatenate %18, %19 in 1 : vector<16x126xbf16>, vector<16x2xbf16> -> vector<16x128xbf16>
    %21 = tpu.concatenate %11, %14, %7, %17, %20 in 0 : vector<16x128xbf16>, vector<16x128xbf16>, vector<16x128xbf16>, vector<16x128xbf16>, vector<16x128xbf16> -> vector<80x128xbf16>
    %cst = arith.constant dense<0.000000e+00> : vector<32x128xf32>
    %22 = tpu.matmul %8, %21, %cst {dimension_numbers = #tpu.dot_dimension_numbers<[1], [0], [0], [1], [0, 0, 1, 1], [], []>} : vector<32x80xbf16>, vector<80x128xbf16>, vector<32x128xf32> -> vector<32x128xf32>
    %23 = vector.extract_strided_slice %5 {offsets = [0, 0], sizes = [32, 1], strides = [1, 1]} : vector<32x3xf32> to vector<32x1xf32>
    %24 = vector.broadcast %23 : vector<32x1xf32> to vector<32x128xf32>
    %25 = arith.addf %22, %24 : vector<32x128xf32>
    %cst_6 = arith.constant 0.000000e+00 : f32
    %26 = vector.broadcast %cst_6 : f32 to vector<32x128xf32>
    %27 = arith.maximumf %25, %26 : vector<32x128xf32>
    %28 = vector.extract_strided_slice %5 {offsets = [0, 1], sizes = [32, 1], strides = [1, 1]} : vector<32x3xf32> to vector<32x1xf32>
    %29 = vector.broadcast %28 : vector<32x1xf32> to vector<32x128xf32>
    %30 = arith.mulf %27, %29 : vector<32x128xf32>
    %31 = vector.extract_strided_slice %5 {offsets = [0, 2], sizes = [32, 1], strides = [1, 1]} : vector<32x3xf32> to vector<32x1xf32>
    %32 = vector.broadcast %31 : vector<32x1xf32> to vector<32x128xf32>
    %33 = arith.addf %30, %32 : vector<32x128xf32>
    %34 = vector.broadcast %4 : vector<1x128xf32> to vector<32x128xf32>
    %35 = arith.mulf %33, %34 : vector<32x128xf32>
    %c0_7 = arith.constant 0 : index
    %c0_8 = arith.constant 0 : index
    %36 = vector.load %arg4[%c0_7, %c0_8] : memref<32x32xbf16, #tpu.memory_space<vmem>>, vector<32x32xbf16>
    %c0_9 = arith.constant 0 : index
    %c0_10 = arith.constant 0 : index
    %37 = vector.load %arg6[%c0_9, %c0_10] : memref<32x32xbf16, #tpu.memory_space<vmem>>, vector<32x32xbf16>
    %c0_11 = arith.constant 0 : index
    %c0_12 = arith.constant 0 : index
    %c0_13 = arith.constant 0 : index
    %38 = vector.load %arg5[%c0_11, %c0_12, %c0_13] : memref<3x8x24xbf16, #tpu.memory_space<vmem>>, vector<3x8x24xbf16>
    %c0_14 = arith.constant 0 : index
    %c0_15 = arith.constant 0 : index
    %39 = vector.load %arg7[%c0_14, %c0_15] : memref<32x8xf32, #tpu.memory_space<vmem>>, vector<32x8xf32>
    %c0_16 = arith.constant 0 : index
    %c0_17 = arith.constant 0 : index
    %40 = vector.load %arg8[%c0_16, %c0_17] : memref<8x9xf32, #tpu.memory_space<vmem>>, vector<8x9xf32>
    %c0_18 = arith.constant 0 : index
    %c0_19 = arith.constant 0 : index
    %41 = vector.load %arg9[%c0_18, %c0_19] : memref<16x32xf32, #tpu.memory_space<vmem>>, vector<16x32xf32>
    %c0_20 = arith.constant 0 : index
    %c0_21 = arith.constant 0 : index
    %42 = vector.load %arg10[%c0_20, %c0_21] : memref<16x1xf32, #tpu.memory_space<vmem>>, vector<16x1xf32>
    %c0_22 = arith.constant 0 : index
    %c0_23 = arith.constant 0 : index
    %43 = vector.load %arg11[%c0_22, %c0_23] : memref<32x16xf32, #tpu.memory_space<vmem>>, vector<32x16xf32>
    %44 = vector.extract_strided_slice %39 {offsets = [0, 0], sizes = [32, 1], strides = [1, 1]} : vector<32x8xf32> to vector<32x1xf32>
    %45 = vector.extract_strided_slice %39 {offsets = [0, 1], sizes = [32, 1], strides = [1, 1]} : vector<32x8xf32> to vector<32x1xf32>
    %46 = vector.extract_strided_slice %39 {offsets = [0, 2], sizes = [32, 1], strides = [1, 1]} : vector<32x8xf32> to vector<32x1xf32>
    %47 = vector.extract_strided_slice %39 {offsets = [0, 3], sizes = [32, 1], strides = [1, 1]} : vector<32x8xf32> to vector<32x1xf32>
    %48 = vector.extract_strided_slice %39 {offsets = [0, 4], sizes = [32, 1], strides = [1, 1]} : vector<32x8xf32> to vector<32x1xf32>
    %49 = vector.extract_strided_slice %39 {offsets = [0, 5], sizes = [32, 1], strides = [1, 1]} : vector<32x8xf32> to vector<32x1xf32>
    %50 = vector.extract_strided_slice %39 {offsets = [0, 6], sizes = [32, 1], strides = [1, 1]} : vector<32x8xf32> to vector<32x1xf32>
    %51 = arith.truncf %35 : vector<32x128xf32> to vector<32x128xbf16>
    %cst_24 = arith.constant dense<0.000000e+00> : vector<32x128xf32>
    %52 = tpu.matmul %36, %51, %cst_24 {dimension_numbers = #tpu.dot_dimension_numbers<[1], [0], [0], [1], [0, 0, 1, 1], [], []>} : vector<32x32xbf16>, vector<32x128xbf16>, vector<32x128xf32> -> vector<32x128xf32>
    %53 = vector.broadcast %44 : vector<32x1xf32> to vector<32x128xf32>
    %54 = arith.addf %52, %53 : vector<32x128xf32>
    %cst_25 = arith.constant 0.000000e+00 : f32
    %55 = vector.broadcast %cst_25 : f32 to vector<32x128xf32>
    %56 = arith.maximumf %54, %55 : vector<32x128xf32>
    %57 = vector.broadcast %45 : vector<32x1xf32> to vector<32x128xf32>
    %58 = arith.mulf %56, %57 : vector<32x128xf32>
    %59 = vector.broadcast %46 : vector<32x1xf32> to vector<32x128xf32>
    %60 = arith.addf %58, %59 : vector<32x128xf32>
    %61 = vector.broadcast %4 : vector<1x128xf32> to vector<32x128xf32>
    %62 = arith.mulf %60, %61 : vector<32x128xf32>
    %63 = vector.extract_strided_slice %62 {offsets = [0, 0], sizes = [8, 128], strides = [1, 1]} : vector<32x128xf32> to vector<8x128xf32>
    %64 = arith.truncf %63 : vector<8x128xf32> to vector<8x128xbf16>
    %65 = vector.extract_strided_slice %38 {offsets = [0, 0, 0], sizes = [1, 8, 24], strides = [1, 1, 1]} : vector<3x8x24xbf16> to vector<1x8x24xbf16>
    %66 = vector.shape_cast %65 : vector<1x8x24xbf16> to vector<8x24xbf16>
    %67 = vector.extract_strided_slice %64 {offsets = [0, 126], sizes = [8, 2], strides = [1, 1]} : vector<8x128xbf16> to vector<8x2xbf16>
    %68 = vector.extract_strided_slice %64 {offsets = [0, 0], sizes = [8, 126], strides = [1, 1]} : vector<8x128xbf16> to vector<8x126xbf16>
    %69 = tpu.concatenate %67, %68 in 1 : vector<8x2xbf16>, vector<8x126xbf16> -> vector<8x128xbf16>
    %70 = vector.extract_strided_slice %64 {offsets = [0, 2], sizes = [8, 126], strides = [1, 1]} : vector<8x128xbf16> to vector<8x126xbf16>
    %71 = vector.extract_strided_slice %64 {offsets = [0, 0], sizes = [8, 2], strides = [1, 1]} : vector<8x128xbf16> to vector<8x2xbf16>
    %72 = tpu.concatenate %70, %71 in 1 : vector<8x126xbf16>, vector<8x2xbf16> -> vector<8x128xbf16>
    %73 = tpu.concatenate %69, %64, %72 in 0 : vector<8x128xbf16>, vector<8x128xbf16>, vector<8x128xbf16> -> vector<24x128xbf16>
    %cst_26 = arith.constant dense<0.000000e+00> : vector<8x128xf32>
    %74 = tpu.matmul %66, %73, %cst_26 {dimension_numbers = #tpu.dot_dimension_numbers<[1], [0], [0], [1], [0, 0, 1, 1], [], []>} : vector<8x24xbf16>, vector<24x128xbf16>, vector<8x128xf32> -> vector<8x128xf32>
    %75 = vector.extract_strided_slice %40 {offsets = [0, 0], sizes = [8, 1], strides = [1, 1]} : vector<8x9xf32> to vector<8x1xf32>
    %76 = vector.broadcast %75 : vector<8x1xf32> to vector<8x128xf32>
    %77 = arith.addf %74, %76 : vector<8x128xf32>
    %cst_27 = arith.constant 0.000000e+00 : f32
    %78 = vector.broadcast %cst_27 : f32 to vector<8x128xf32>
    %79 = arith.maximumf %77, %78 : vector<8x128xf32>
    %80 = vector.extract_strided_slice %40 {offsets = [0, 3], sizes = [8, 1], strides = [1, 1]} : vector<8x9xf32> to vector<8x1xf32>
    %81 = vector.broadcast %80 : vector<8x1xf32> to vector<8x128xf32>
    %82 = arith.mulf %79, %81 : vector<8x128xf32>
    %83 = vector.extract_strided_slice %40 {offsets = [0, 6], sizes = [8, 1], strides = [1, 1]} : vector<8x9xf32> to vector<8x1xf32>
    %84 = vector.broadcast %83 : vector<8x1xf32> to vector<8x128xf32>
    %85 = arith.addf %82, %84 : vector<8x128xf32>
    %86 = vector.broadcast %4 : vector<1x128xf32> to vector<8x128xf32>
    %87 = arith.mulf %85, %86 : vector<8x128xf32>
    %88 = vector.extract_strided_slice %62 {offsets = [8, 0], sizes = [8, 128], strides = [1, 1]} : vector<32x128xf32> to vector<8x128xf32>
    %89 = arith.addf %87, %88 : vector<8x128xf32>
    %90 = arith.truncf %89 : vector<8x128xf32> to vector<8x128xbf16>
    %91 = vector.extract_strided_slice %38 {offsets = [1, 0, 0], sizes = [1, 8, 24], strides = [1, 1, 1]} : vector<3x8x24xbf16> to vector<1x8x24xbf16>
    %92 = vector.shape_cast %91 : vector<1x8x24xbf16> to vector<8x24xbf16>
    %93 = vector.extract_strided_slice %90 {offsets = [0, 126], sizes = [8, 2], strides = [1, 1]} : vector<8x128xbf16> to vector<8x2xbf16>
    %94 = vector.extract_strided_slice %90 {offsets = [0, 0], sizes = [8, 126], strides = [1, 1]} : vector<8x128xbf16> to vector<8x126xbf16>
    %95 = tpu.concatenate %93, %94 in 1 : vector<8x2xbf16>, vector<8x126xbf16> -> vector<8x128xbf16>
    %96 = vector.extract_strided_slice %90 {offsets = [0, 2], sizes = [8, 126], strides = [1, 1]} : vector<8x128xbf16> to vector<8x126xbf16>
    %97 = vector.extract_strided_slice %90 {offsets = [0, 0], sizes = [8, 2], strides = [1, 1]} : vector<8x128xbf16> to vector<8x2xbf16>
    %98 = tpu.concatenate %96, %97 in 1 : vector<8x126xbf16>, vector<8x2xbf16> -> vector<8x128xbf16>
    %99 = tpu.concatenate %95, %90, %98 in 0 : vector<8x128xbf16>, vector<8x128xbf16>, vector<8x128xbf16> -> vector<24x128xbf16>
    %cst_28 = arith.constant dense<0.000000e+00> : vector<8x128xf32>
    %100 = tpu.matmul %92, %99, %cst_28 {dimension_numbers = #tpu.dot_dimension_numbers<[1], [0], [0], [1], [0, 0, 1, 1], [], []>} : vector<8x24xbf16>, vector<24x128xbf16>, vector<8x128xf32> -> vector<8x128xf32>
    %101 = vector.extract_strided_slice %40 {offsets = [0, 1], sizes = [8, 1], strides = [1, 1]} : vector<8x9xf32> to vector<8x1xf32>
    %102 = vector.broadcast %101 : vector<8x1xf32> to vector<8x128xf32>
    %103 = arith.addf %100, %102 : vector<8x128xf32>
    %cst_29 = arith.constant 0.000000e+00 : f32
    %104 = vector.broadcast %cst_29 : f32 to vector<8x128xf32>
    %105 = arith.maximumf %103, %104 : vector<8x128xf32>
    %106 = vector.extract_strided_slice %40 {offsets = [0, 4], sizes = [8, 1], strides = [1, 1]} : vector<8x9xf32> to vector<8x1xf32>
    %107 = vector.broadcast %106 : vector<8x1xf32> to vector<8x128xf32>
    %108 = arith.mulf %105, %107 : vector<8x128xf32>
    %109 = vector.extract_strided_slice %40 {offsets = [0, 7], sizes = [8, 1], strides = [1, 1]} : vector<8x9xf32> to vector<8x1xf32>
    %110 = vector.broadcast %109 : vector<8x1xf32> to vector<8x128xf32>
    %111 = arith.addf %108, %110 : vector<8x128xf32>
    %112 = vector.broadcast %4 : vector<1x128xf32> to vector<8x128xf32>
    %113 = arith.mulf %111, %112 : vector<8x128xf32>
    %114 = vector.extract_strided_slice %62 {offsets = [16, 0], sizes = [8, 128], strides = [1, 1]} : vector<32x128xf32> to vector<8x128xf32>
    %115 = arith.addf %113, %114 : vector<8x128xf32>
    %116 = arith.truncf %115 : vector<8x128xf32> to vector<8x128xbf16>
    %117 = vector.extract_strided_slice %38 {offsets = [2, 0, 0], sizes = [1, 8, 24], strides = [1, 1, 1]} : vector<3x8x24xbf16> to vector<1x8x24xbf16>
    %118 = vector.shape_cast %117 : vector<1x8x24xbf16> to vector<8x24xbf16>
    %119 = vector.extract_strided_slice %116 {offsets = [0, 126], sizes = [8, 2], strides = [1, 1]} : vector<8x128xbf16> to vector<8x2xbf16>
    %120 = vector.extract_strided_slice %116 {offsets = [0, 0], sizes = [8, 126], strides = [1, 1]} : vector<8x128xbf16> to vector<8x126xbf16>
    %121 = tpu.concatenate %119, %120 in 1 : vector<8x2xbf16>, vector<8x126xbf16> -> vector<8x128xbf16>
    %122 = vector.extract_strided_slice %116 {offsets = [0, 2], sizes = [8, 126], strides = [1, 1]} : vector<8x128xbf16> to vector<8x126xbf16>
    %123 = vector.extract_strided_slice %116 {offsets = [0, 0], sizes = [8, 2], strides = [1, 1]} : vector<8x128xbf16> to vector<8x2xbf16>
    %124 = tpu.concatenate %122, %123 in 1 : vector<8x126xbf16>, vector<8x2xbf16> -> vector<8x128xbf16>
    %125 = tpu.concatenate %121, %116, %124 in 0 : vector<8x128xbf16>, vector<8x128xbf16>, vector<8x128xbf16> -> vector<24x128xbf16>
    %cst_30 = arith.constant dense<0.000000e+00> : vector<8x128xf32>
    %126 = tpu.matmul %118, %125, %cst_30 {dimension_numbers = #tpu.dot_dimension_numbers<[1], [0], [0], [1], [0, 0, 1, 1], [], []>} : vector<8x24xbf16>, vector<24x128xbf16>, vector<8x128xf32> -> vector<8x128xf32>
    %127 = vector.extract_strided_slice %40 {offsets = [0, 2], sizes = [8, 1], strides = [1, 1]} : vector<8x9xf32> to vector<8x1xf32>
    %128 = vector.broadcast %127 : vector<8x1xf32> to vector<8x128xf32>
    %129 = arith.addf %126, %128 : vector<8x128xf32>
    %cst_31 = arith.constant 0.000000e+00 : f32
    %130 = vector.broadcast %cst_31 : f32 to vector<8x128xf32>
    %131 = arith.maximumf %129, %130 : vector<8x128xf32>
    %132 = vector.extract_strided_slice %40 {offsets = [0, 5], sizes = [8, 1], strides = [1, 1]} : vector<8x9xf32> to vector<8x1xf32>
    %133 = vector.broadcast %132 : vector<8x1xf32> to vector<8x128xf32>
    %134 = arith.mulf %131, %133 : vector<8x128xf32>
    %135 = vector.extract_strided_slice %40 {offsets = [0, 8], sizes = [8, 1], strides = [1, 1]} : vector<8x9xf32> to vector<8x1xf32>
    %136 = vector.broadcast %135 : vector<8x1xf32> to vector<8x128xf32>
    %137 = arith.addf %134, %136 : vector<8x128xf32>
    %138 = vector.broadcast %4 : vector<1x128xf32> to vector<8x128xf32>
    %139 = arith.mulf %137, %138 : vector<8x128xf32>
    %140 = vector.extract_strided_slice %62 {offsets = [24, 0], sizes = [8, 128], strides = [1, 1]} : vector<32x128xf32> to vector<8x128xf32>
    %141 = tpu.concatenate %87, %113, %139, %140 in 0 : vector<8x128xf32>, vector<8x128xf32>, vector<8x128xf32>, vector<8x128xf32> -> vector<32x128xf32>
    %142 = arith.truncf %141 : vector<32x128xf32> to vector<32x128xbf16>
    %cst_32 = arith.constant dense<0.000000e+00> : vector<32x128xf32>
    %143 = tpu.matmul %37, %142, %cst_32 {dimension_numbers = #tpu.dot_dimension_numbers<[1], [0], [0], [1], [0, 0, 1, 1], [], []>} : vector<32x32xbf16>, vector<32x128xbf16>, vector<32x128xf32> -> vector<32x128xf32>
    %144 = vector.broadcast %47 : vector<32x1xf32> to vector<32x128xf32>
    %145 = arith.addf %143, %144 : vector<32x128xf32>
    %cst_33 = arith.constant 0.000000e+00 : f32
    %146 = vector.broadcast %cst_33 : f32 to vector<32x128xf32>
    %147 = arith.maximumf %145, %146 : vector<32x128xf32>
    %148 = vector.broadcast %48 : vector<32x1xf32> to vector<32x128xf32>
    %149 = arith.mulf %147, %148 : vector<32x128xf32>
    %150 = vector.broadcast %49 : vector<32x1xf32> to vector<32x128xf32>
    %151 = arith.addf %149, %150 : vector<32x128xf32>
    %152 = vector.broadcast %4 : vector<1x128xf32> to vector<32x128xf32>
    %153 = arith.mulf %151, %152 : vector<32x128xf32>
    %cst_34 = arith.constant dense<0.000000e+00> : vector<32xf32>
    %154 = vector.multi_reduction <add>, %153, %cst_34 [1] : vector<32x128xf32> to vector<32xf32>
    %155 = vector.shape_cast %154 : vector<32xf32> to vector<32x1xf32>
    %cst_35 = arith.constant 3.125000e-02 : f32
    %156 = vector.broadcast %cst_35 : f32 to vector<32x1xf32>
    %157 = arith.mulf %155, %156 : vector<32x1xf32>
    %cst_36 = arith.constant dense<0.000000e+00> : vector<16x1xf32>
    %158 = tpu.matmul %41, %157, %cst_36 {dimension_numbers = #tpu.dot_dimension_numbers<[1], [0], [0], [1], [0, 0, 1, 1], [], []>} : vector<16x32xf32>, vector<32x1xf32>, vector<16x1xf32> -> vector<16x1xf32>
    %159 = arith.addf %158, %42 : vector<16x1xf32>
    %cst_37 = arith.constant 0.000000e+00 : f32
    %160 = vector.broadcast %cst_37 : f32 to vector<16x1xf32>
    %161 = arith.maximumf %159, %160 : vector<16x1xf32>
    %cst_38 = arith.constant dense<0.000000e+00> : vector<32x1xf32>
    %162 = tpu.matmul %43, %161, %cst_38 {dimension_numbers = #tpu.dot_dimension_numbers<[1], [0], [0], [1], [0, 0, 1, 1], [], []>} : vector<32x16xf32>, vector<16x1xf32>, vector<32x1xf32> -> vector<32x1xf32>
    %163 = arith.addf %162, %50 : vector<32x1xf32>
    %164 = arith.negf %163 : vector<32x1xf32>
    %165 = math.exp %164 : vector<32x1xf32>
    %cst_39 = arith.constant 1.000000e+00 : f32
    %166 = vector.broadcast %cst_39 : f32 to vector<32x1xf32>
    %167 = arith.addf %166, %165 : vector<32x1xf32>
    %168 = arith.divf %166, %167 : vector<32x1xf32>
    %169 = vector.broadcast %168 : vector<32x1xf32> to vector<32x128xf32>
    %170 = arith.mulf %153, %169 : vector<32x128xf32>
    %171 = arith.addf %170, %35 : vector<32x128xf32>
    %172 = arith.truncf %171 : vector<32x128xf32> to vector<32x128xbf16>
    %c0_40 = arith.constant 0 : index
    %c0_41 = arith.constant 0 : index
    %c0_42 = arith.constant 0 : index
    %173 = vector.load %arg12[%c0_40, %c0_41, %c0_42] : memref<1x32x128xbf16, #tpu.memory_space<vmem>>, vector<1x32x128xbf16>
    %174 = vector.shape_cast %173 : vector<1x32x128xbf16> to vector<32x128xbf16>
    %175 = vector.shape_cast %172 : vector<32x128xbf16> to vector<1x32x128xbf16>
    tpu.vector_store %arg12[%c0_40, %c0_41, %c0_42], %175 {strides = array<i32>} : memref<1x32x128xbf16, #tpu.memory_space<vmem>>, vector<1x32x128xbf16>,
    %176 = arith.addf %35, %171 : vector<32x128xf32>
    %177 = arith.truncf %176 : vector<32x128xf32> to vector<32x128xbf16>
    %c0_43 = arith.constant 0 : index
    %c0_44 = arith.constant 0 : index
    %c0_45 = arith.constant 0 : index
    %178 = vector.load %arg13[%c0_43, %c0_44, %c0_45] : memref<1x32x128xbf16, #tpu.memory_space<vmem>>, vector<1x32x128xbf16>
    %179 = vector.shape_cast %178 : vector<1x32x128xbf16> to vector<32x128xbf16>
    %180 = vector.shape_cast %177 : vector<32x128xbf16> to vector<1x32x128xbf16>
    tpu.vector_store %arg13[%c0_43, %c0_44, %c0_45], %180 {strides = array<i32>} : memref<1x32x128xbf16, #tpu.memory_space<vmem>>, vector<1x32x128xbf16>,
    return
  }
  func.func @transform_0(%arg0: i32) -> (i32, i32, i32) {
    %c0_i32 = arith.constant 0 : i32
    %c0_i32_0 = arith.constant 0 : i32
    %c0_i32_1 = arith.constant 0 : i32
    return %arg0, %c0_i32, %c0_i32_0 : i32, i32, i32
  }
  func.func @transform_1(%arg0: i32) -> (i32, i32) {
    %c0_i32 = arith.constant 0 : i32
    %c0_i32_0 = arith.constant 0 : i32
    %c0_i32_1 = arith.constant 0 : i32
    return %c0_i32, %c0_i32_0 : i32, i32
  }
  func.func @transform_2(%arg0: i32) -> (i32, i32) {
    %c0_i32 = arith.constant 0 : i32
    %c0_i32_0 = arith.constant 0 : i32
    %c0_i32_1 = arith.constant 0 : i32
    return %c0_i32, %c0_i32_0 : i32, i32
  }
  func.func @transform_3(%arg0: i32) -> (i32, i32) {
    %c0_i32 = arith.constant 0 : i32
    %c0_i32_0 = arith.constant 0 : i32
    %c0_i32_1 = arith.constant 0 : i32
    return %c0_i32, %c0_i32_0 : i32, i32
  }
  func.func @transform_4(%arg0: i32) -> (i32, i32, i32) {
    %c0_i32 = arith.constant 0 : i32
    %c0_i32_0 = arith.constant 0 : i32
    %c0_i32_1 = arith.constant 0 : i32
    %c0_i32_2 = arith.constant 0 : i32
    return %c0_i32, %c0_i32_0, %c0_i32_1 : i32, i32, i32
  }
  func.func @transform_5(%arg0: i32) -> (i32, i32) {
    %c0_i32 = arith.constant 0 : i32
    %c0_i32_0 = arith.constant 0 : i32
    %c0_i32_1 = arith.constant 0 : i32
    return %c0_i32, %c0_i32_0 : i32, i32
  }
  func.func @transform_6(%arg0: i32) -> (i32, i32) {
    %c0_i32 = arith.constant 0 : i32
    %c0_i32_0 = arith.constant 0 : i32
    %c0_i32_1 = arith.constant 0 : i32
    return %c0_i32, %c0_i32_0 : i32, i32
  }
  func.func @transform_7(%arg0: i32) -> (i32, i32) {
    %c0_i32 = arith.constant 0 : i32
    %c0_i32_0 = arith.constant 0 : i32
    %c0_i32_1 = arith.constant 0 : i32
    return %c0_i32, %c0_i32_0 : i32, i32
  }
  func.func @transform_8(%arg0: i32) -> (i32, i32) {
    %c0_i32 = arith.constant 0 : i32
    %c0_i32_0 = arith.constant 0 : i32
    %c0_i32_1 = arith.constant 0 : i32
    return %c0_i32, %c0_i32_0 : i32, i32
  }
  func.func @transform_9(%arg0: i32) -> (i32, i32) {
    %c0_i32 = arith.constant 0 : i32
    %c0_i32_0 = arith.constant 0 : i32
    %c0_i32_1 = arith.constant 0 : i32
    return %c0_i32, %c0_i32_0 : i32, i32
  }
  func.func @transform_10(%arg0: i32) -> (i32, i32) {
    %c0_i32 = arith.constant 0 : i32
    %c0_i32_0 = arith.constant 0 : i32
    %c0_i32_1 = arith.constant 0 : i32
    return %c0_i32, %c0_i32_0 : i32, i32
  }
  func.func @transform_11(%arg0: i32) -> (i32, i32, i32) {
    %c0_i32 = arith.constant 0 : i32
    %c0_i32_0 = arith.constant 0 : i32
    %c0_i32_1 = arith.constant 0 : i32
    return %arg0, %c0_i32, %c0_i32_0 : i32, i32, i32
  }
  func.func @transform_12(%arg0: i32) -> (i32, i32, i32) {
    %c0_i32 = arith.constant 0 : i32
    %c0_i32_0 = arith.constant 0 : i32
    %c0_i32_1 = arith.constant 0 : i32
    return %arg0, %c0_i32, %c0_i32_0 : i32, i32, i32
  }
}

module attributes {stable_mosaic.version = 11 : i64} {
  func.func @kernel(%arg0: i32, %arg1: memref<1x32x128xbf16, #tpu.memory_space<vmem>>, %arg2: memref<32x32xbf16, #tpu.memory_space<vmem>>, %arg3: memref<3x8x24xbf16, #tpu.memory_space<vmem>>, %arg4: memref<32x32xbf16, #tpu.memory_space<vmem>>, %arg5: memref<32x8xf32, #tpu.memory_space<vmem>>, %arg6: memref<8x9xf32, #tpu.memory_space<vmem>>, %arg7: memref<16x32xf32, #tpu.memory_space<vmem>>, %arg8: memref<16x1xf32, #tpu.memory_space<vmem>>, %arg9: memref<32x16xf32, #tpu.memory_space<vmem>>, %arg10: memref<1x32x128xbf16, #tpu.memory_space<vmem>>, %arg11: memref<1x32x128xbf16, #tpu.memory_space<vmem>>) attributes {dimension_semantics = [#tpu.dimension_semantics<parallel>], iteration_bounds = array<i64: 2>, scalar_prefetch = 0 : i64, scratch_operands = 0 : i64, tpu.core_type = #tpu.core_type<tc>, window_params = [{transform_indices = @transform_0, window_bounds = array<i64: 1, 32, 128>}, {pipeline_mode = #tpu.pipeline_mode<synchronous>, transform_indices = @transform_1, window_bounds = array<i64: 32, 32>}, {pipeline_mode = #tpu.pipeline_mode<synchronous>, transform_indices = @transform_2, window_bounds = array<i64: 3, 8, 24>}, {pipeline_mode = #tpu.pipeline_mode<synchronous>, transform_indices = @transform_3, window_bounds = array<i64: 32, 32>}, {pipeline_mode = #tpu.pipeline_mode<synchronous>, transform_indices = @transform_4, window_bounds = array<i64: 32, 8>}, {pipeline_mode = #tpu.pipeline_mode<synchronous>, transform_indices = @transform_5, window_bounds = array<i64: 8, 9>}, {pipeline_mode = #tpu.pipeline_mode<synchronous>, transform_indices = @transform_6, window_bounds = array<i64: 16, 32>}, {pipeline_mode = #tpu.pipeline_mode<synchronous>, transform_indices = @transform_7, window_bounds = array<i64: 16, 1>}, {pipeline_mode = #tpu.pipeline_mode<synchronous>, transform_indices = @transform_8, window_bounds = array<i64: 32, 16>}, {transform_indices = @transform_9, window_bounds = array<i64: 1, 32, 128>}, {transform_indices = @transform_10, window_bounds = array<i64: 1, 32, 128>}]} {
    %0 = tpu.iota {dimensions = array<i32: 1>} : vector<1x128xi32>
    %c32_i32 = arith.constant 32 : i32
    %1 = vector.broadcast %c32_i32 : i32 to vector<1x128xi32>
    %2 = arith.cmpi slt, %0, %1 : vector<1x128xi32>
    %3 = arith.extui %2 : vector<1x128xi1> to vector<1x128xi32>
    %4 = arith.sitofp %3 : vector<1x128xi32> to vector<1x128xf32>
    %c0 = arith.constant 0 : index
    %c0_0 = arith.constant 0 : index
    %c0_1 = arith.constant 0 : index
    %5 = vector.load %arg1[%c0, %c0_0, %c0_1] : memref<1x32x128xbf16, #tpu.memory_space<vmem>>, vector<1x32x128xbf16>
    %6 = vector.shape_cast %5 : vector<1x32x128xbf16> to vector<32x128xbf16>
    %7 = arith.extf %6 : vector<32x128xbf16> to vector<32x128xf32>
    %c0_2 = arith.constant 0 : index
    %c0_3 = arith.constant 0 : index
    %8 = vector.load %arg2[%c0_2, %c0_3] : memref<32x32xbf16, #tpu.memory_space<vmem>>, vector<32x32xbf16>
    %c0_4 = arith.constant 0 : index
    %c0_5 = arith.constant 0 : index
    %9 = vector.load %arg4[%c0_4, %c0_5] : memref<32x32xbf16, #tpu.memory_space<vmem>>, vector<32x32xbf16>
    %c0_6 = arith.constant 0 : index
    %c0_7 = arith.constant 0 : index
    %c0_8 = arith.constant 0 : index
    %10 = vector.load %arg3[%c0_6, %c0_7, %c0_8] : memref<3x8x24xbf16, #tpu.memory_space<vmem>>, vector<3x8x24xbf16>
    %c0_9 = arith.constant 0 : index
    %c0_10 = arith.constant 0 : index
    %11 = vector.load %arg5[%c0_9, %c0_10] : memref<32x8xf32, #tpu.memory_space<vmem>>, vector<32x8xf32>
    %c0_11 = arith.constant 0 : index
    %c0_12 = arith.constant 0 : index
    %12 = vector.load %arg6[%c0_11, %c0_12] : memref<8x9xf32, #tpu.memory_space<vmem>>, vector<8x9xf32>
    %c0_13 = arith.constant 0 : index
    %c0_14 = arith.constant 0 : index
    %13 = vector.load %arg7[%c0_13, %c0_14] : memref<16x32xf32, #tpu.memory_space<vmem>>, vector<16x32xf32>
    %c0_15 = arith.constant 0 : index
    %c0_16 = arith.constant 0 : index
    %14 = vector.load %arg8[%c0_15, %c0_16] : memref<16x1xf32, #tpu.memory_space<vmem>>, vector<16x1xf32>
    %c0_17 = arith.constant 0 : index
    %c0_18 = arith.constant 0 : index
    %15 = vector.load %arg9[%c0_17, %c0_18] : memref<32x16xf32, #tpu.memory_space<vmem>>, vector<32x16xf32>
    %16 = vector.extract_strided_slice %11 {offsets = [0, 0], sizes = [32, 1], strides = [1, 1]} : vector<32x8xf32> to vector<32x1xf32>
    %17 = vector.extract_strided_slice %11 {offsets = [0, 1], sizes = [32, 1], strides = [1, 1]} : vector<32x8xf32> to vector<32x1xf32>
    %18 = vector.extract_strided_slice %11 {offsets = [0, 2], sizes = [32, 1], strides = [1, 1]} : vector<32x8xf32> to vector<32x1xf32>
    %19 = vector.extract_strided_slice %11 {offsets = [0, 3], sizes = [32, 1], strides = [1, 1]} : vector<32x8xf32> to vector<32x1xf32>
    %20 = vector.extract_strided_slice %11 {offsets = [0, 4], sizes = [32, 1], strides = [1, 1]} : vector<32x8xf32> to vector<32x1xf32>
    %21 = vector.extract_strided_slice %11 {offsets = [0, 5], sizes = [32, 1], strides = [1, 1]} : vector<32x8xf32> to vector<32x1xf32>
    %22 = vector.extract_strided_slice %11 {offsets = [0, 6], sizes = [32, 1], strides = [1, 1]} : vector<32x8xf32> to vector<32x1xf32>
    %23 = arith.truncf %7 : vector<32x128xf32> to vector<32x128xbf16>
    %cst = arith.constant dense<0.000000e+00> : vector<32x128xf32>
    %24 = tpu.matmul %8, %23, %cst {dimension_numbers = #tpu.dot_dimension_numbers<[1], [0], [0], [1], [0, 0, 1, 1], [], []>} : vector<32x32xbf16>, vector<32x128xbf16>, vector<32x128xf32> -> vector<32x128xf32>
    %25 = vector.broadcast %16 : vector<32x1xf32> to vector<32x128xf32>
    %26 = arith.addf %24, %25 : vector<32x128xf32>
    %cst_19 = arith.constant 0.000000e+00 : f32
    %27 = vector.broadcast %cst_19 : f32 to vector<32x128xf32>
    %28 = arith.maximumf %26, %27 : vector<32x128xf32>
    %29 = vector.broadcast %17 : vector<32x1xf32> to vector<32x128xf32>
    %30 = arith.mulf %28, %29 : vector<32x128xf32>
    %31 = vector.broadcast %18 : vector<32x1xf32> to vector<32x128xf32>
    %32 = arith.addf %30, %31 : vector<32x128xf32>
    %33 = vector.broadcast %4 : vector<1x128xf32> to vector<32x128xf32>
    %34 = arith.mulf %32, %33 : vector<32x128xf32>
    %35 = vector.extract_strided_slice %34 {offsets = [0, 0], sizes = [8, 128], strides = [1, 1]} : vector<32x128xf32> to vector<8x128xf32>
    %36 = arith.truncf %35 : vector<8x128xf32> to vector<8x128xbf16>
    %37 = vector.extract_strided_slice %10 {offsets = [0, 0, 0], sizes = [1, 8, 24], strides = [1, 1, 1]} : vector<3x8x24xbf16> to vector<1x8x24xbf16>
    %38 = vector.shape_cast %37 : vector<1x8x24xbf16> to vector<8x24xbf16>
    %39 = vector.extract_strided_slice %36 {offsets = [0, 125], sizes = [8, 3], strides = [1, 1]} : vector<8x128xbf16> to vector<8x3xbf16>
    %40 = vector.extract_strided_slice %36 {offsets = [0, 0], sizes = [8, 125], strides = [1, 1]} : vector<8x128xbf16> to vector<8x125xbf16>
    %41 = tpu.concatenate %39, %40 in 1 : vector<8x3xbf16>, vector<8x125xbf16> -> vector<8x128xbf16>
    %42 = vector.extract_strided_slice %36 {offsets = [0, 3], sizes = [8, 125], strides = [1, 1]} : vector<8x128xbf16> to vector<8x125xbf16>
    %43 = vector.extract_strided_slice %36 {offsets = [0, 0], sizes = [8, 3], strides = [1, 1]} : vector<8x128xbf16> to vector<8x3xbf16>
    %44 = tpu.concatenate %42, %43 in 1 : vector<8x125xbf16>, vector<8x3xbf16> -> vector<8x128xbf16>
    %45 = tpu.concatenate %41, %36, %44 in 0 : vector<8x128xbf16>, vector<8x128xbf16>, vector<8x128xbf16> -> vector<24x128xbf16>
    %cst_20 = arith.constant dense<0.000000e+00> : vector<8x128xf32>
    %46 = tpu.matmul %38, %45, %cst_20 {dimension_numbers = #tpu.dot_dimension_numbers<[1], [0], [0], [1], [0, 0, 1, 1], [], []>} : vector<8x24xbf16>, vector<24x128xbf16>, vector<8x128xf32> -> vector<8x128xf32>
    %47 = vector.extract_strided_slice %12 {offsets = [0, 0], sizes = [8, 1], strides = [1, 1]} : vector<8x9xf32> to vector<8x1xf32>
    %48 = vector.broadcast %47 : vector<8x1xf32> to vector<8x128xf32>
    %49 = arith.addf %46, %48 : vector<8x128xf32>
    %cst_21 = arith.constant 0.000000e+00 : f32
    %50 = vector.broadcast %cst_21 : f32 to vector<8x128xf32>
    %51 = arith.maximumf %49, %50 : vector<8x128xf32>
    %52 = vector.extract_strided_slice %12 {offsets = [0, 3], sizes = [8, 1], strides = [1, 1]} : vector<8x9xf32> to vector<8x1xf32>
    %53 = vector.broadcast %52 : vector<8x1xf32> to vector<8x128xf32>
    %54 = arith.mulf %51, %53 : vector<8x128xf32>
    %55 = vector.extract_strided_slice %12 {offsets = [0, 6], sizes = [8, 1], strides = [1, 1]} : vector<8x9xf32> to vector<8x1xf32>
    %56 = vector.broadcast %55 : vector<8x1xf32> to vector<8x128xf32>
    %57 = arith.addf %54, %56 : vector<8x128xf32>
    %58 = vector.broadcast %4 : vector<1x128xf32> to vector<8x128xf32>
    %59 = arith.mulf %57, %58 : vector<8x128xf32>
    %60 = vector.extract_strided_slice %34 {offsets = [8, 0], sizes = [8, 128], strides = [1, 1]} : vector<32x128xf32> to vector<8x128xf32>
    %61 = arith.addf %59, %60 : vector<8x128xf32>
    %62 = arith.truncf %61 : vector<8x128xf32> to vector<8x128xbf16>
    %63 = vector.extract_strided_slice %10 {offsets = [1, 0, 0], sizes = [1, 8, 24], strides = [1, 1, 1]} : vector<3x8x24xbf16> to vector<1x8x24xbf16>
    %64 = vector.shape_cast %63 : vector<1x8x24xbf16> to vector<8x24xbf16>
    %65 = vector.extract_strided_slice %62 {offsets = [0, 125], sizes = [8, 3], strides = [1, 1]} : vector<8x128xbf16> to vector<8x3xbf16>
    %66 = vector.extract_strided_slice %62 {offsets = [0, 0], sizes = [8, 125], strides = [1, 1]} : vector<8x128xbf16> to vector<8x125xbf16>
    %67 = tpu.concatenate %65, %66 in 1 : vector<8x3xbf16>, vector<8x125xbf16> -> vector<8x128xbf16>
    %68 = vector.extract_strided_slice %62 {offsets = [0, 3], sizes = [8, 125], strides = [1, 1]} : vector<8x128xbf16> to vector<8x125xbf16>
    %69 = vector.extract_strided_slice %62 {offsets = [0, 0], sizes = [8, 3], strides = [1, 1]} : vector<8x128xbf16> to vector<8x3xbf16>
    %70 = tpu.concatenate %68, %69 in 1 : vector<8x125xbf16>, vector<8x3xbf16> -> vector<8x128xbf16>
    %71 = tpu.concatenate %67, %62, %70 in 0 : vector<8x128xbf16>, vector<8x128xbf16>, vector<8x128xbf16> -> vector<24x128xbf16>
    %cst_22 = arith.constant dense<0.000000e+00> : vector<8x128xf32>
    %72 = tpu.matmul %64, %71, %cst_22 {dimension_numbers = #tpu.dot_dimension_numbers<[1], [0], [0], [1], [0, 0, 1, 1], [], []>} : vector<8x24xbf16>, vector<24x128xbf16>, vector<8x128xf32> -> vector<8x128xf32>
    %73 = vector.extract_strided_slice %12 {offsets = [0, 1], sizes = [8, 1], strides = [1, 1]} : vector<8x9xf32> to vector<8x1xf32>
    %74 = vector.broadcast %73 : vector<8x1xf32> to vector<8x128xf32>
    %75 = arith.addf %72, %74 : vector<8x128xf32>
    %cst_23 = arith.constant 0.000000e+00 : f32
    %76 = vector.broadcast %cst_23 : f32 to vector<8x128xf32>
    %77 = arith.maximumf %75, %76 : vector<8x128xf32>
    %78 = vector.extract_strided_slice %12 {offsets = [0, 4], sizes = [8, 1], strides = [1, 1]} : vector<8x9xf32> to vector<8x1xf32>
    %79 = vector.broadcast %78 : vector<8x1xf32> to vector<8x128xf32>
    %80 = arith.mulf %77, %79 : vector<8x128xf32>
    %81 = vector.extract_strided_slice %12 {offsets = [0, 7], sizes = [8, 1], strides = [1, 1]} : vector<8x9xf32> to vector<8x1xf32>
    %82 = vector.broadcast %81 : vector<8x1xf32> to vector<8x128xf32>
    %83 = arith.addf %80, %82 : vector<8x128xf32>
    %84 = vector.broadcast %4 : vector<1x128xf32> to vector<8x128xf32>
    %85 = arith.mulf %83, %84 : vector<8x128xf32>
    %86 = vector.extract_strided_slice %34 {offsets = [16, 0], sizes = [8, 128], strides = [1, 1]} : vector<32x128xf32> to vector<8x128xf32>
    %87 = arith.addf %85, %86 : vector<8x128xf32>
    %88 = arith.truncf %87 : vector<8x128xf32> to vector<8x128xbf16>
    %89 = vector.extract_strided_slice %10 {offsets = [2, 0, 0], sizes = [1, 8, 24], strides = [1, 1, 1]} : vector<3x8x24xbf16> to vector<1x8x24xbf16>
    %90 = vector.shape_cast %89 : vector<1x8x24xbf16> to vector<8x24xbf16>
    %91 = vector.extract_strided_slice %88 {offsets = [0, 125], sizes = [8, 3], strides = [1, 1]} : vector<8x128xbf16> to vector<8x3xbf16>
    %92 = vector.extract_strided_slice %88 {offsets = [0, 0], sizes = [8, 125], strides = [1, 1]} : vector<8x128xbf16> to vector<8x125xbf16>
    %93 = tpu.concatenate %91, %92 in 1 : vector<8x3xbf16>, vector<8x125xbf16> -> vector<8x128xbf16>
    %94 = vector.extract_strided_slice %88 {offsets = [0, 3], sizes = [8, 125], strides = [1, 1]} : vector<8x128xbf16> to vector<8x125xbf16>
    %95 = vector.extract_strided_slice %88 {offsets = [0, 0], sizes = [8, 3], strides = [1, 1]} : vector<8x128xbf16> to vector<8x3xbf16>
    %96 = tpu.concatenate %94, %95 in 1 : vector<8x125xbf16>, vector<8x3xbf16> -> vector<8x128xbf16>
    %97 = tpu.concatenate %93, %88, %96 in 0 : vector<8x128xbf16>, vector<8x128xbf16>, vector<8x128xbf16> -> vector<24x128xbf16>
    %cst_24 = arith.constant dense<0.000000e+00> : vector<8x128xf32>
    %98 = tpu.matmul %90, %97, %cst_24 {dimension_numbers = #tpu.dot_dimension_numbers<[1], [0], [0], [1], [0, 0, 1, 1], [], []>} : vector<8x24xbf16>, vector<24x128xbf16>, vector<8x128xf32> -> vector<8x128xf32>
    %99 = vector.extract_strided_slice %12 {offsets = [0, 2], sizes = [8, 1], strides = [1, 1]} : vector<8x9xf32> to vector<8x1xf32>
    %100 = vector.broadcast %99 : vector<8x1xf32> to vector<8x128xf32>
    %101 = arith.addf %98, %100 : vector<8x128xf32>
    %cst_25 = arith.constant 0.000000e+00 : f32
    %102 = vector.broadcast %cst_25 : f32 to vector<8x128xf32>
    %103 = arith.maximumf %101, %102 : vector<8x128xf32>
    %104 = vector.extract_strided_slice %12 {offsets = [0, 5], sizes = [8, 1], strides = [1, 1]} : vector<8x9xf32> to vector<8x1xf32>
    %105 = vector.broadcast %104 : vector<8x1xf32> to vector<8x128xf32>
    %106 = arith.mulf %103, %105 : vector<8x128xf32>
    %107 = vector.extract_strided_slice %12 {offsets = [0, 8], sizes = [8, 1], strides = [1, 1]} : vector<8x9xf32> to vector<8x1xf32>
    %108 = vector.broadcast %107 : vector<8x1xf32> to vector<8x128xf32>
    %109 = arith.addf %106, %108 : vector<8x128xf32>
    %110 = vector.broadcast %4 : vector<1x128xf32> to vector<8x128xf32>
    %111 = arith.mulf %109, %110 : vector<8x128xf32>
    %112 = vector.extract_strided_slice %34 {offsets = [24, 0], sizes = [8, 128], strides = [1, 1]} : vector<32x128xf32> to vector<8x128xf32>
    %113 = tpu.concatenate %59, %85, %111, %112 in 0 : vector<8x128xf32>, vector<8x128xf32>, vector<8x128xf32>, vector<8x128xf32> -> vector<32x128xf32>
    %114 = arith.truncf %113 : vector<32x128xf32> to vector<32x128xbf16>
    %cst_26 = arith.constant dense<0.000000e+00> : vector<32x128xf32>
    %115 = tpu.matmul %9, %114, %cst_26 {dimension_numbers = #tpu.dot_dimension_numbers<[1], [0], [0], [1], [0, 0, 1, 1], [], []>} : vector<32x32xbf16>, vector<32x128xbf16>, vector<32x128xf32> -> vector<32x128xf32>
    %116 = vector.broadcast %19 : vector<32x1xf32> to vector<32x128xf32>
    %117 = arith.addf %115, %116 : vector<32x128xf32>
    %cst_27 = arith.constant 0.000000e+00 : f32
    %118 = vector.broadcast %cst_27 : f32 to vector<32x128xf32>
    %119 = arith.maximumf %117, %118 : vector<32x128xf32>
    %120 = vector.broadcast %20 : vector<32x1xf32> to vector<32x128xf32>
    %121 = arith.mulf %119, %120 : vector<32x128xf32>
    %122 = vector.broadcast %21 : vector<32x1xf32> to vector<32x128xf32>
    %123 = arith.addf %121, %122 : vector<32x128xf32>
    %124 = vector.broadcast %4 : vector<1x128xf32> to vector<32x128xf32>
    %125 = arith.mulf %123, %124 : vector<32x128xf32>
    %cst_28 = arith.constant dense<0.000000e+00> : vector<32xf32>
    %126 = vector.multi_reduction <add>, %125, %cst_28 [1] : vector<32x128xf32> to vector<32xf32>
    %127 = vector.shape_cast %126 : vector<32xf32> to vector<32x1xf32>
    %cst_29 = arith.constant 3.125000e-02 : f32
    %128 = vector.broadcast %cst_29 : f32 to vector<32x1xf32>
    %129 = arith.mulf %127, %128 : vector<32x1xf32>
    %cst_30 = arith.constant dense<0.000000e+00> : vector<16x1xf32>
    %130 = tpu.matmul %13, %129, %cst_30 {dimension_numbers = #tpu.dot_dimension_numbers<[1], [0], [0], [1], [0, 0, 1, 1], [], []>} : vector<16x32xf32>, vector<32x1xf32>, vector<16x1xf32> -> vector<16x1xf32>
    %131 = arith.addf %130, %14 : vector<16x1xf32>
    %cst_31 = arith.constant 0.000000e+00 : f32
    %132 = vector.broadcast %cst_31 : f32 to vector<16x1xf32>
    %133 = arith.maximumf %131, %132 : vector<16x1xf32>
    %cst_32 = arith.constant dense<0.000000e+00> : vector<32x1xf32>
    %134 = tpu.matmul %15, %133, %cst_32 {dimension_numbers = #tpu.dot_dimension_numbers<[1], [0], [0], [1], [0, 0, 1, 1], [], []>} : vector<32x16xf32>, vector<16x1xf32>, vector<32x1xf32> -> vector<32x1xf32>
    %135 = arith.addf %134, %22 : vector<32x1xf32>
    %136 = arith.negf %135 : vector<32x1xf32>
    %137 = math.exp %136 : vector<32x1xf32>
    %cst_33 = arith.constant 1.000000e+00 : f32
    %138 = vector.broadcast %cst_33 : f32 to vector<32x1xf32>
    %139 = arith.addf %138, %137 : vector<32x1xf32>
    %140 = arith.divf %138, %139 : vector<32x1xf32>
    %141 = vector.broadcast %140 : vector<32x1xf32> to vector<32x128xf32>
    %142 = arith.mulf %125, %141 : vector<32x128xf32>
    %143 = arith.addf %142, %7 : vector<32x128xf32>
    %144 = arith.truncf %143 : vector<32x128xf32> to vector<32x128xbf16>
    %c0_34 = arith.constant 0 : index
    %c0_35 = arith.constant 0 : index
    %c0_36 = arith.constant 0 : index
    %145 = vector.load %arg10[%c0_34, %c0_35, %c0_36] : memref<1x32x128xbf16, #tpu.memory_space<vmem>>, vector<1x32x128xbf16>
    %146 = vector.shape_cast %145 : vector<1x32x128xbf16> to vector<32x128xbf16>
    %147 = vector.shape_cast %144 : vector<32x128xbf16> to vector<1x32x128xbf16>
    tpu.vector_store %arg10[%c0_34, %c0_35, %c0_36], %147 {strides = array<i32>} : memref<1x32x128xbf16, #tpu.memory_space<vmem>>, vector<1x32x128xbf16>,
    %148 = arith.addf %7, %143 : vector<32x128xf32>
    %149 = arith.truncf %148 : vector<32x128xf32> to vector<32x128xbf16>
    %c0_37 = arith.constant 0 : index
    %c0_38 = arith.constant 0 : index
    %c0_39 = arith.constant 0 : index
    %150 = vector.load %arg11[%c0_37, %c0_38, %c0_39] : memref<1x32x128xbf16, #tpu.memory_space<vmem>>, vector<1x32x128xbf16>
    %151 = vector.shape_cast %150 : vector<1x32x128xbf16> to vector<32x128xbf16>
    %152 = vector.shape_cast %149 : vector<32x128xbf16> to vector<1x32x128xbf16>
    tpu.vector_store %arg11[%c0_37, %c0_38, %c0_39], %152 {strides = array<i32>} : memref<1x32x128xbf16, #tpu.memory_space<vmem>>, vector<1x32x128xbf16>,
    return
  }
  func.func @transform_0(%arg0: i32) -> (i32, i32, i32) {
    %c0_i32 = arith.constant 0 : i32
    %c0_i32_0 = arith.constant 0 : i32
    %c0_i32_1 = arith.constant 0 : i32
    return %arg0, %c0_i32, %c0_i32_0 : i32, i32, i32
  }
  func.func @transform_1(%arg0: i32) -> (i32, i32) {
    %c0_i32 = arith.constant 0 : i32
    %c0_i32_0 = arith.constant 0 : i32
    %c0_i32_1 = arith.constant 0 : i32
    return %c0_i32, %c0_i32_0 : i32, i32
  }
  func.func @transform_2(%arg0: i32) -> (i32, i32, i32) {
    %c0_i32 = arith.constant 0 : i32
    %c0_i32_0 = arith.constant 0 : i32
    %c0_i32_1 = arith.constant 0 : i32
    %c0_i32_2 = arith.constant 0 : i32
    return %c0_i32, %c0_i32_0, %c0_i32_1 : i32, i32, i32
  }
  func.func @transform_3(%arg0: i32) -> (i32, i32) {
    %c0_i32 = arith.constant 0 : i32
    %c0_i32_0 = arith.constant 0 : i32
    %c0_i32_1 = arith.constant 0 : i32
    return %c0_i32, %c0_i32_0 : i32, i32
  }
  func.func @transform_4(%arg0: i32) -> (i32, i32) {
    %c0_i32 = arith.constant 0 : i32
    %c0_i32_0 = arith.constant 0 : i32
    %c0_i32_1 = arith.constant 0 : i32
    return %c0_i32, %c0_i32_0 : i32, i32
  }
  func.func @transform_5(%arg0: i32) -> (i32, i32) {
    %c0_i32 = arith.constant 0 : i32
    %c0_i32_0 = arith.constant 0 : i32
    %c0_i32_1 = arith.constant 0 : i32
    return %c0_i32, %c0_i32_0 : i32, i32
  }
  func.func @transform_6(%arg0: i32) -> (i32, i32) {
    %c0_i32 = arith.constant 0 : i32
    %c0_i32_0 = arith.constant 0 : i32
    %c0_i32_1 = arith.constant 0 : i32
    return %c0_i32, %c0_i32_0 : i32, i32
  }
  func.func @transform_7(%arg0: i32) -> (i32, i32) {
    %c0_i32 = arith.constant 0 : i32
    %c0_i32_0 = arith.constant 0 : i32
    %c0_i32_1 = arith.constant 0 : i32
    return %c0_i32, %c0_i32_0 : i32, i32
  }
  func.func @transform_8(%arg0: i32) -> (i32, i32) {
    %c0_i32 = arith.constant 0 : i32
    %c0_i32_0 = arith.constant 0 : i32
    %c0_i32_1 = arith.constant 0 : i32
    return %c0_i32, %c0_i32_0 : i32, i32
  }
  func.func @transform_9(%arg0: i32) -> (i32, i32, i32) {
    %c0_i32 = arith.constant 0 : i32
    %c0_i32_0 = arith.constant 0 : i32
    %c0_i32_1 = arith.constant 0 : i32
    return %arg0, %c0_i32, %c0_i32_0 : i32, i32, i32
  }
  func.func @transform_10(%arg0: i32) -> (i32, i32, i32) {
    %c0_i32 = arith.constant 0 : i32
    %c0_i32_0 = arith.constant 0 : i32
    %c0_i32_1 = arith.constant 0 : i32
    return %arg0, %c0_i32, %c0_i32_0 : i32, i32, i32
  }
}

module attributes {stable_mosaic.version = 11 : i64} {
  func.func @_tail_kernel(%arg0: i32, %arg1: memref<1x32x128xbf16, #tpu.memory_space<vmem>>, %arg2: memref<1x32x128xbf16, #tpu.memory_space<vmem>>, %arg3: memref<1x32x128xbf16, #tpu.memory_space<vmem>>, %arg4: memref<96x96xbf16, #tpu.memory_space<vmem>>, %arg5: memref<96x2xf32, #tpu.memory_space<vmem>>, %arg6: memref<16x96xbf16, #tpu.memory_space<vmem>>, %arg7: memref<16x1xf32, #tpu.memory_space<vmem>>, %arg8: memref<96x16xbf16, #tpu.memory_space<vmem>>, %arg9: memref<16x192xf32, #tpu.memory_space<vmem>>, %arg10: memref<16x1xf32, #tpu.memory_space<vmem>>, %arg11: memref<1x16x1xf32, #tpu.memory_space<vmem>>) attributes {dimension_semantics = [#tpu.dimension_semantics<parallel>], iteration_bounds = array<i64: 2>, scalar_prefetch = 0 : i64, scratch_operands = 0 : i64, tpu.core_type = #tpu.core_type<tc>, window_params = [{transform_indices = @transform_0, window_bounds = array<i64: 1, 32, 128>}, {transform_indices = @transform_1, window_bounds = array<i64: 1, 32, 128>}, {transform_indices = @transform_2, window_bounds = array<i64: 1, 32, 128>}, {pipeline_mode = #tpu.pipeline_mode<synchronous>, transform_indices = @transform_3, window_bounds = array<i64: 96, 96>}, {pipeline_mode = #tpu.pipeline_mode<synchronous>, transform_indices = @transform_4, window_bounds = array<i64: 96, 2>}, {pipeline_mode = #tpu.pipeline_mode<synchronous>, transform_indices = @transform_5, window_bounds = array<i64: 16, 96>}, {pipeline_mode = #tpu.pipeline_mode<synchronous>, transform_indices = @transform_6, window_bounds = array<i64: 16, 1>}, {pipeline_mode = #tpu.pipeline_mode<synchronous>, transform_indices = @transform_7, window_bounds = array<i64: 96, 16>}, {pipeline_mode = #tpu.pipeline_mode<synchronous>, transform_indices = @transform_8, window_bounds = array<i64: 16, 192>}, {pipeline_mode = #tpu.pipeline_mode<synchronous>, transform_indices = @transform_9, window_bounds = array<i64: 16, 1>}, {transform_indices = @transform_10, window_bounds = array<i64: 1, 16, 1>}]} {
    %0 = tpu.iota {dimensions = array<i32: 1>} : vector<1x128xi32>
    %c32_i32 = arith.constant 32 : i32
    %1 = vector.broadcast %c32_i32 : i32 to vector<1x128xi32>
    %2 = arith.cmpi slt, %0, %1 : vector<1x128xi32>
    %c0 = arith.constant 0 : index
    %c0_0 = arith.constant 0 : index
    %c0_1 = arith.constant 0 : index
    %3 = vector.load %arg1[%c0, %c0_0, %c0_1] : memref<1x32x128xbf16, #tpu.memory_space<vmem>>, vector<1x32x128xbf16>
    %4 = vector.shape_cast %3 : vector<1x32x128xbf16> to vector<32x128xbf16>
    %c0_2 = arith.constant 0 : index
    %c0_3 = arith.constant 0 : index
    %c0_4 = arith.constant 0 : index
    %5 = vector.load %arg2[%c0_2, %c0_3, %c0_4] : memref<1x32x128xbf16, #tpu.memory_space<vmem>>, vector<1x32x128xbf16>
    %6 = vector.shape_cast %5 : vector<1x32x128xbf16> to vector<32x128xbf16>
    %c0_5 = arith.constant 0 : index
    %c0_6 = arith.constant 0 : index
    %c0_7 = arith.constant 0 : index
    %7 = vector.load %arg3[%c0_5, %c0_6, %c0_7] : memref<1x32x128xbf16, #tpu.memory_space<vmem>>, vector<1x32x128xbf16>
    %8 = vector.shape_cast %7 : vector<1x32x128xbf16> to vector<32x128xbf16>
    %9 = tpu.concatenate %4, %6, %8 in 0 : vector<32x128xbf16>, vector<32x128xbf16>, vector<32x128xbf16> -> vector<96x128xbf16>
    %c0_8 = arith.constant 0 : index
    %c0_9 = arith.constant 0 : index
    %10 = vector.load %arg4[%c0_8, %c0_9] : memref<96x96xbf16, #tpu.memory_space<vmem>>, vector<96x96xbf16>
    %cst = arith.constant dense<0.000000e+00> : vector<96x128xf32>
    %11 = tpu.matmul %10, %9, %cst {dimension_numbers = #tpu.dot_dimension_numbers<[1], [0], [0], [1], [0, 0, 1, 1], [], []>} : vector<96x96xbf16>, vector<96x128xbf16>, vector<96x128xf32> -> vector<96x128xf32>
    %c0_10 = arith.constant 0 : index
    %c0_11 = arith.constant 0 : index
    %12 = vector.load %arg5[%c0_10, %c0_11] : memref<96x2xf32, #tpu.memory_space<vmem>>, vector<96x2xf32>
    %13 = vector.extract_strided_slice %12 {offsets = [0, 0], sizes = [96, 1], strides = [1, 1]} : vector<96x2xf32> to vector<96x1xf32>
    %14 = vector.broadcast %13 : vector<96x1xf32> to vector<96x128xf32>
    %15 = arith.addf %11, %14 : vector<96x128xf32>
    %cst_12 = arith.constant 0.000000e+00 : f32
    %16 = vector.broadcast %cst_12 : f32 to vector<96x128xf32>
    %17 = arith.maximumf %15, %16 : vector<96x128xf32>
    %c0_13 = arith.constant 0 : index
    %c0_14 = arith.constant 0 : index
    %18 = vector.load %arg6[%c0_13, %c0_14] : memref<16x96xbf16, #tpu.memory_space<vmem>>, vector<16x96xbf16>
    %19 = arith.truncf %17 : vector<96x128xf32> to vector<96x128xbf16>
    %cst_15 = arith.constant dense<0.000000e+00> : vector<16x128xf32>
    %20 = tpu.matmul %18, %19, %cst_15 {dimension_numbers = #tpu.dot_dimension_numbers<[1], [0], [0], [1], [0, 0, 1, 1], [], []>} : vector<16x96xbf16>, vector<96x128xbf16>, vector<16x128xf32> -> vector<16x128xf32>
    %c0_16 = arith.constant 0 : index
    %c0_17 = arith.constant 0 : index
    %21 = vector.load %arg7[%c0_16, %c0_17] : memref<16x1xf32, #tpu.memory_space<vmem>>, vector<16x1xf32>
    %22 = vector.broadcast %21 : vector<16x1xf32> to vector<16x128xf32>
    %23 = arith.addf %20, %22 : vector<16x128xf32>
    %24 = math.tanh %23 : vector<16x128xf32>
    %c0_18 = arith.constant 0 : index
    %c0_19 = arith.constant 0 : index
    %25 = vector.load %arg8[%c0_18, %c0_19] : memref<96x16xbf16, #tpu.memory_space<vmem>>, vector<96x16xbf16>
    %26 = arith.truncf %24 : vector<16x128xf32> to vector<16x128xbf16>
    %cst_20 = arith.constant dense<0.000000e+00> : vector<96x128xf32>
    %27 = tpu.matmul %25, %26, %cst_20 {dimension_numbers = #tpu.dot_dimension_numbers<[1], [0], [0], [1], [0, 0, 1, 1], [], []>} : vector<96x16xbf16>, vector<16x128xbf16>, vector<96x128xf32> -> vector<96x128xf32>
    %28 = vector.extract_strided_slice %12 {offsets = [0, 1], sizes = [96, 1], strides = [1, 1]} : vector<96x2xf32> to vector<96x1xf32>
    %29 = vector.broadcast %28 : vector<96x1xf32> to vector<96x128xf32>
    %30 = arith.addf %27, %29 : vector<96x128xf32>
    %cst_21 = arith.constant -1.000000e+30 : f32
    %31 = vector.shape_cast %2 : vector<1x128xi1> to vector<1x128xi1>
    %32 = vector.broadcast %31 : vector<1x128xi1> to vector<96x128xi1>
    %33 = vector.broadcast %cst_21 : f32 to vector<96x128xf32>
    %34 = arith.select %32, %30, %33 : vector<96x128xi1>, vector<96x128xf32>
    %cst_22 = arith.constant dense<0xFF800000> : vector<96xf32>
    %35 = vector.multi_reduction <maximumf>, %34, %cst_22 [1] : vector<96x128xf32> to vector<96xf32>
    %36 = vector.shape_cast %35 : vector<96xf32> to vector<96x1xf32>
    %37 = vector.broadcast %36 : vector<96x1xf32> to vector<96x128xf32>
    %38 = arith.subf %34, %37 : vector<96x128xf32>
    %39 = math.exp %38 : vector<96x128xf32>
    %cst_23 = arith.constant dense<0.000000e+00> : vector<96xf32>
    %40 = vector.multi_reduction <add>, %39, %cst_23 [1] : vector<96x128xf32> to vector<96xf32>
    %41 = vector.shape_cast %40 : vector<96xf32> to vector<96x1xf32>
    %42 = vector.broadcast %41 : vector<96x1xf32> to vector<96x128xf32>
    %43 = arith.divf %39, %42 : vector<96x128xf32>
    %44 = arith.mulf %43, %17 : vector<96x128xf32>
    %cst_24 = arith.constant dense<0.000000e+00> : vector<96xf32>
    %45 = vector.multi_reduction <add>, %44, %cst_24 [1] : vector<96x128xf32> to vector<96xf32>
    %46 = vector.shape_cast %45 : vector<96xf32> to vector<96x1xf32>
    %47 = arith.mulf %43, %17 : vector<96x128xf32>
    %48 = arith.mulf %47, %17 : vector<96x128xf32>
    %cst_25 = arith.constant dense<0.000000e+00> : vector<96xf32>
    %49 = vector.multi_reduction <add>, %48, %cst_25 [1] : vector<96x128xf32> to vector<96xf32>
    %50 = vector.shape_cast %49 : vector<96xf32> to vector<96x1xf32>
    %51 = arith.mulf %46, %46 : vector<96x1xf32>
    %52 = arith.subf %50, %51 : vector<96x1xf32>
    %cst_26 = arith.constant 9.99999971E-10 : f32
    %53 = vector.broadcast %cst_26 : f32 to vector<96x1xf32>
    %54 = arith.maximumf %52, %53 : vector<96x1xf32>
    %55 = math.sqrt %54 : vector<96x1xf32>
    %56 = tpu.concatenate %46, %55 in 0 : vector<96x1xf32>, vector<96x1xf32> -> vector<192x1xf32>
    %c0_27 = arith.constant 0 : index
    %c0_28 = arith.constant 0 : index
    %57 = vector.load %arg9[%c0_27, %c0_28] : memref<16x192xf32, #tpu.memory_space<vmem>>, vector<16x192xf32>
    %cst_29 = arith.constant dense<0.000000e+00> : vector<16x1xf32>
    %58 = tpu.matmul %57, %56, %cst_29 {dimension_numbers = #tpu.dot_dimension_numbers<[1], [0], [0], [1], [0, 0, 1, 1], [], []>} : vector<16x192xf32>, vector<192x1xf32>, vector<16x1xf32> -> vector<16x1xf32>
    %c0_30 = arith.constant 0 : index
    %c0_31 = arith.constant 0 : index
    %59 = vector.load %arg10[%c0_30, %c0_31] : memref<16x1xf32, #tpu.memory_space<vmem>>, vector<16x1xf32>
    %60 = arith.addf %58, %59 : vector<16x1xf32>
    %c0_32 = arith.constant 0 : index
    %c0_33 = arith.constant 0 : index
    %c0_34 = arith.constant 0 : index
    %61 = vector.load %arg11[%c0_32, %c0_33, %c0_34] : memref<1x16x1xf32, #tpu.memory_space<vmem>>, vector<1x16x1xf32>
    %62 = vector.shape_cast %61 : vector<1x16x1xf32> to vector<16x1xf32>
    %63 = vector.shape_cast %60 : vector<16x1xf32> to vector<1x16x1xf32>
    tpu.vector_store %arg11[%c0_32, %c0_33, %c0_34], %63 {strides = array<i32>} : memref<1x16x1xf32, #tpu.memory_space<vmem>>, vector<1x16x1xf32>,
    return
  }
  func.func @transform_0(%arg0: i32) -> (i32, i32, i32) {
    %c0_i32 = arith.constant 0 : i32
    %c0_i32_0 = arith.constant 0 : i32
    %c0_i32_1 = arith.constant 0 : i32
    return %arg0, %c0_i32, %c0_i32_0 : i32, i32, i32
  }
  func.func @transform_1(%arg0: i32) -> (i32, i32, i32) {
    %c0_i32 = arith.constant 0 : i32
    %c0_i32_0 = arith.constant 0 : i32
    %c0_i32_1 = arith.constant 0 : i32
    return %arg0, %c0_i32, %c0_i32_0 : i32, i32, i32
  }
  func.func @transform_2(%arg0: i32) -> (i32, i32, i32) {
    %c0_i32 = arith.constant 0 : i32
    %c0_i32_0 = arith.constant 0 : i32
    %c0_i32_1 = arith.constant 0 : i32
    return %arg0, %c0_i32, %c0_i32_0 : i32, i32, i32
  }
  func.func @transform_3(%arg0: i32) -> (i32, i32) {
    %c0_i32 = arith.constant 0 : i32
    %c0_i32_0 = arith.constant 0 : i32
    %c0_i32_1 = arith.constant 0 : i32
    return %c0_i32, %c0_i32_0 : i32, i32
  }
  func.func @transform_4(%arg0: i32) -> (i32, i32) {
    %c0_i32 = arith.constant 0 : i32
    %c0_i32_0 = arith.constant 0 : i32
    %c0_i32_1 = arith.constant 0 : i32
    return %c0_i32, %c0_i32_0 : i32, i32
  }
  func.func @transform_5(%arg0: i32) -> (i32, i32) {
    %c0_i32 = arith.constant 0 : i32
    %c0_i32_0 = arith.constant 0 : i32
    %c0_i32_1 = arith.constant 0 : i32
    return %c0_i32, %c0_i32_0 : i32, i32
  }
  func.func @transform_6(%arg0: i32) -> (i32, i32) {
    %c0_i32 = arith.constant 0 : i32
    %c0_i32_0 = arith.constant 0 : i32
    %c0_i32_1 = arith.constant 0 : i32
    return %c0_i32, %c0_i32_0 : i32, i32
  }
  func.func @transform_7(%arg0: i32) -> (i32, i32) {
    %c0_i32 = arith.constant 0 : i32
    %c0_i32_0 = arith.constant 0 : i32
    %c0_i32_1 = arith.constant 0 : i32
    return %c0_i32, %c0_i32_0 : i32, i32
  }
  func.func @transform_8(%arg0: i32) -> (i32, i32) {
    %c0_i32 = arith.constant 0 : i32
    %c0_i32_0 = arith.constant 0 : i32
    %c0_i32_1 = arith.constant 0 : i32
    return %c0_i32, %c0_i32_0 : i32, i32
  }
  func.func @transform_9(%arg0: i32) -> (i32, i32) {
    %c0_i32 = arith.constant 0 : i32
    %c0_i32_0 = arith.constant 0 : i32
    %c0_i32_1 = arith.constant 0 : i32
    return %c0_i32, %c0_i32_0 : i32, i32
  }
  func.func @transform_10(%arg0: i32) -> (i32, i32, i32) {
    %c0_i32 = arith.constant 0 : i32
    %c0_i32_0 = arith.constant 0 : i32
    %c0_i32_1 = arith.constant 0 : i32
    return %arg0, %c0_i32, %c0_i32_0 : i32, i32, i32
  }
}

</mosaic_0001>

<bundles_post_ra>
// kernel: ecapa_forward_pallas.6
= control target key start
LH: loop header
LB: loop body
LE: loop exit
PB: predicated region body
PF: predicated region fallthrough
CT: control target
= control target key end

     0   :  { %s1510_s30 = smov 0   ;;  %s1749_s0 = inlined_call_operand.vmem [shape: bf16[2,32,128], index: 0, kind: input, shape index: {}]   ;;  %s1750_s1 = inlined_call_operand.vmem [shape: bf16[32,32], index: 1, kind: input, shape index: {}]   ;;  %s1751_s2 = inlined_call_operand.vmem [shape: bf16[3,8,24], index: 2, kind: input, shape index: {}]   ;;  %s1752_s3 = inlined_call_operand.vmem [shape: bf16[32,32], index: 3, kind: input, shape index: {}]   ;;  %s1753_s4 = inlined_call_operand.vmem [shape: f32[32,8], index: 4, kind: input, shape index: {}]   ;;  %s1754_s5 = inlined_call_operand.vmem [shape: f32[8,9], index: 5, kind: input, shape index: {}]   ;;  %s1755_s6 = inlined_call_operand.vmem [shape: f32[16,32], index: 6, kind: input, shape index: {}]   ;;  %s1756_s7 = inlined_call_operand.vmem [shape: f32[16,1], index: 7, kind: input, shape index: {}]   ;;  %s1757_s8 = inlined_call_operand.vmem [shape: f32[32,16], index: 8, kind: input, shape index: {}]   ;;  %s1758_s9 = inlined_call_operand.vmem [shape: bf16[2,32,128], index: 9, kind: output, shape index: {}]  }
   0x1 LB: > { %s1204_s10 = sadd.s32 4294967295, %s1444_s30   ;;  %p1208_p0 = scmp.ge.s32.totalorder %s1444_s30, 1  ;;  %s1444_s30 = sphi %s1510_s30, %s19_s30  }
   0x2   : > { %p287_p1 = scmp.lt.s32.totalorder %s1444_s30, 3 }
   0x4   : > { %p288_p2 = pnand %p1208_p0, %p287_p1 }
   0x5   : > { %p323_p3 = scmp.lt.s32.totalorder (!%p288_p2), %s1204_s10, 1  ;;  %v1416_v0 = vld [vmem:[%s1750_s1] sm:$0xff] (!%p288_p2)   ;;  %vm413_vm0 = vcmask (!%p288_p2), 261120   ;;  %v1446_v2 = vmov (!%p288_p2), 0   ;;  %v1447_v3 = vmov (!%p288_p2), 2   ;;  %v1448_v6 = vmov (!%p288_p2), 1  }
   0x6   : > { %291 = sbr.rel (%p288_p2) target bundleno = 2285 (0x8ed), region = 56  ;;  %1293 = vmatprep.mubr.msk.bf16.mxu0 (!%p288_p2), %vm413_vm0, %v1416_v0  ;;  %v1527_v1 = vld [vmem:[%s1753_s4] sm:$0xff] (!%p288_p2)  ;;  %1384 = vset.pattern.permute.xlu0 (!%p288_p2), %v1446_v2  ;;  %v1552_v7 = vld [vmem:[%s1753_s4 + $0x8] sm:$0xff] (!%p288_p2)  ;;  %v1449_v9 = vmov (!%p288_p2), 0.0   ;;  %v334_v10 = vlaneseq (!%p288_p2)  ;;  %vm1450_vm2 = vmmov (!%p288_p2), 0   ;;  %s1451_s23 = smov (!%p288_p2), 4  }
   0x7   : > { %1386 = vset.pattern.permute.xlu1 (!%p288_p2), %v1447_v3  ;;  %373 = vperm.xlu0 (!%p288_p2), %1384, %v1527_v1   ;;  %v1417_v8 = vld [vmem:[%s1750_s1 + $0x8] sm:$0xff] (!%p288_p2)   ;;  %s1452_s24 = smov (!%p288_p2), 124   ;;  %v1580_v26 = vld [vmem:[%s1754_s5] sm:$0xff] (!%p288_p2)  ;;  %v1453_v27 = vmov (!%p288_p2), 3   ;;  %v1454_v28 = vmov (!%p288_p2), 6   ;;  %vm526_vm3 = vcmask (!%p288_p2), 1043456  }
   0x8   : > { %494 = vperm.xlu1 (!%p288_p2), %1386, %v1527_v1   ;;  %1297 = vmatprep.subr.bf16.mxu1 (!%p288_p2), %v1449_v9  ;;  %v335_v13 = vand.u32 (!%p288_p2), 127, %v334_v10  ;;  %v355_v34 = vld [vmem:[%s1751_s2] sm:$0xf] (!%p288_p2)  ;;  %vm535_vm4 = vcmask (!%p288_p2), 195584   ;;  %v1609_v57 = vld [vmem:[%s1753_s4 + $0x10] sm:$0xff] (!%p288_p2)  ;;  %v1455_v58 = vmov (!%p288_p2), 4  }
   0x9   : > { %1301 = vmatprep.mubr.msk.bf16.mxu1 (!%p288_p2), %vm1450_vm2, %v1449_v9  ;;  %v1456_v59 = vmov (!%p288_p2), 7   ;;  %vm979_vm5 = vcmask (!%p288_p2), 130048   ;;  %s1459_s29 = smov (!%p288_p2), 122  }
   0xa   : > { %vm336_vm1 = vcmp.lt.s32.totalorder (!%p288_p2), %v335_v13, 32 }
   0xb   : > { %1385 = vset.pattern.permute.xlu0 (!%p288_p2), %v1448_v6  ;;  %v1568_v22 = vsel (!%p288_p2), %vm336_vm1, 1.0, %v1449_v9 }
   0xc   : > { %1388 = vset.pattern.permute.xlu1 (!%p288_p2), %v1446_v2  ;;  %474 = vperm.xlu0 (!%p288_p2), %1385, %v1527_v1  }
   0xd   : > { %s1760_s10 = smov (!%p323_p3, %s1204_s10), 1 }
   0xe   : > { %s1243_s15 = sshll.u32 %s1760_s10, 4 }
   0xf   : > { %s327_s18 = scalar_lea.vmem %s1749_s0, %s1243_s15 }
  0x10   : > { %v1539_v4 = vld [vmem:[%s327_s18] sm:$0xff]   ;;  %v1541_v5 = vld [vmem:[%s327_s18 + $0x8] sm:$0xff]   ;;  %1387 = vset.pattern.permute.xlu0 %v1446_v2 }
  0x11   : > { %1289 = vmatprep.subr.bf16.mxu0 %v1539_v4  ;;  %378 = vperm.xlu0 %1387, %v1552_v7  }
  0x12   : > { %1290 = vmatpush3.bf16.msra.mxu0 %v1539_v4 }
  0x13   : > { %1291 = vmatprep.subr.bf16.mxu0 %v1541_v5 }
  0x15   : > { %1390 = vset.pattern.permute.xlu0 %v1453_v27 }
  0x16   : > { %1292 = vmatpush3.bf16.msra.mxu0 %v1541_v5  ;;  %583 = vperm.xlu0 %1390, %v1580_v26  }
  0x17   : > { %1305 = vmatprep.subr.bf16.mxu0 %v1449_v9 }
  0x19   : > { %1294 = vmatmul.mubr.msk.bf16.vlgmr.msra.gmra.mrb[0].mxu0 %vm413_vm0, %v1417_v8  ;;  %v356_v8 = vld [vmem:[%s1751_s2 + $0x4] sm:$0xf] }
  0x1a   : > { %1309 = vmatprep.mubr.msk.bf16.mxu0 %vm1450_vm2, %v1449_v9  ;;  %1393 = vset.pattern.permute.xlu0 %v1446_v2 }
  0x86   : > { %v374_v11 = vpop.permute.xlu0 %373 }
  0x87   : > { %v495_v20 = vpop.permute.xlu1 %494 }
  0x8b   : > { %v475_v19 = vpop.permute.xlu0 %474 }
  0x90   : > { %v379_v36 = vpop.permute.xlu0 %378 }
  0x95   : > { %v584_v45 = vpop.permute.xlu0 %583 }
  0xec   : > { %v1563_v12 = vpop.f32.mrb[0].mxu0 }
  0xed   : > { %v454_v14 = vpop.f32.mrb[1].mxu0 }
  0xee   : > { %v455_v15 = vadd.f32 %v454_v14, %v374_v11  ;;  %v1565_v16 = vpop.f32.mrb[2].mxu0 }
  0xef   : > { %v457_v17 = vpop.f32.mrb[3].mxu0 }
  0xf0   : > { %v469_v18 = vmax.f32 %v455_v15, 0.0  ;;  %v458_v38 = vadd.f32 %v457_v17, %v379_v36 }
  0xf2   : > { %v489_v21 = vmul.f32 %v475_v19, %v469_v18  ;;  %v470_v41 = vmax.f32 %v458_v38, 0.0  ;;  %v1457_v38 = vmov 5  }
  0xf4   : > { %v509_v23 = vadd.f32 %v495_v20, %v489_v21 }
  0xf6   : > { %v513_v24 = vmul.f32 %v1568_v22, %v509_v23 }
  0xf8   : > { %v517_v25 = vpack.c.bf16 %v513_v24, %v513_v24 }
  0xfa   : > { %519 = vrot.lane.b32.xlu1 %v517_v25, %s1451_s23  ;;  %v525_v29 = vrot.slane %v517_v25, 4 }
  0xfe   : > { %522 = vrot.lane.b32.xlu1 %v517_v25, %s1452_s24 }
 0x102   : > { %532 = vperm.xlu1 %1388, %v1580_v26  }
 0x106   : > { %1389 = vset.pattern.permute.xlu1 %v1448_v6 }
 0x107   : > { %478 = vperm.xlu1 %1389, %v1552_v7  }
 0x10b   : > { %1391 = vset.pattern.permute.xlu1 %v1447_v3 }
 0x10c   : > { %498 = vperm.xlu1 %1391, %v1552_v7  }
 0x110   : > { %1392 = vset.pattern.permute.xlu1 %v1454_v28 }
 0x111   : > { %588 = vperm.xlu1 %1392, %v1580_v26  }
 0x115   : > { %1394 = vset.pattern.permute.xlu1 %v1448_v6 }
 0x16c   : > { %v520_v30 = vpop.permute.xlu1 %519 }
 0x16d   : > { %v528_v31 = vsel %vm526_vm3, %v520_v30, %v525_v29 }
 0x16e   : > { %1298 = vmatpush3.bf16.msra.mxu1 %v528_v31 }
 0x16f   : > { %1299 = vmatprep.subr.bf16.mxu1 %v1449_v9 }
 0x170   : > { %v523_v32 = vpop.permute.xlu1 %522 }
 0x171   : > { %v539_v33 = vsel %vm526_vm3, %v523_v32, 0 }
 0x172   : > { %1300 = vmatpush3.bf16.msra.mxu1 %v539_v33 }
 0x173   : > { %1313 = vmatprep.subr.bf16.mxu1 %v1449_v9 }
 0x175   : > { %1302 = vmatmul.mubr.msk.bf16.vlgmr.msra.gmra.mrb[0].mxu1 %vm535_vm4, %v355_v34 }
 0x176   : > { %1317 = vmatprep.mubr.msk.bf16.mxu1 %vm1450_vm2, %v1449_v9 }
 0x181   : > { %v533_v35 = vpop.permute.xlu1 %532 }
 0x186   : > { %v479_v37 = vpop.permute.xlu1 %478 }
 0x187   : > { %v490_v46 = vmul.f32 %v479_v37, %v470_v41  ;;  %v1636_v37 = vld [vmem:[%s1753_s4 + $0x18] sm:$0xff]  ;;  %v357_v41 = vld [vmem:[%s1751_s2 + $0x8] sm:$0xf] }
 0x18b   : > { %v499_v39 = vpop.permute.xlu1 %498 }
 0x18c   : > { %v510_v50 = vadd.f32 %v499_v39, %v490_v46  ;;  %v1458_v39 = vmov 8  }
 0x18e   : > { %v514_v53 = vmul.f32 %v1568_v22, %v510_v50 }
 0x190   : > { %v589_v49 = vpop.permute.xlu1 %588 }
 0x248   : > { %v575_v40 = vpop.f32.mrb[0].mxu1 }
 0x249   : > { %v576_v42 = vadd.f32 %v575_v40, %v533_v35  ;;  %v1303_v43 = vpop.f32.mrb[1].mxu1 }
 0x24a   : > { %v578_v44 = vpop.f32.mrb[2].mxu1 }
 0x24b   : > { %v581_v47 = vmax.f32 %v576_v42, 0.0  ;;  %v1304_v48 = vpop.f32.mrb[3].mxu1 }
 0x24d   : > { %v586_v51 = vmul.f32 %v584_v45, %v581_v47 }
 0x24f   : > { %v591_v52 = vadd.f32 %v589_v49, %v586_v51 }
 0x251   : > { %v592_v54 = vmul.f32 %v1568_v22, %v591_v52 }
 0x253   : > { %v593_v55 = vadd.f32 %v592_v54, %v514_v53 }
 0x255   : > { %v594_v56 = vpack.c.bf16 %v593_v55, %v593_v55 }
 0x257   : > { %599 = vrot.lane.b32.xlu1 %v594_v56, %s1452_s24  ;;  %596 = vrot.lane.b32.xlu0 %v594_v56, %s1451_s23  ;;  %v602_v60 = vrot.slane %v594_v56, 4 }
 0x25b   : > { %607 = vperm.xlu1 %1394, %v1580_v26   ;;  %383 = vperm.xlu0 %1393, %v1609_v57  }
 0x25f   : > { %482 = vperm.xlu1 %1394, %v1609_v57   ;;  %1395 = vset.pattern.permute.xlu0 %v1455_v58 }
 0x260   : > { %657 = vperm.xlu0 %1395, %v1580_v26  }
 0x263   : > { %1396 = vset.pattern.permute.xlu1 %v1447_v3 }
 0x264   : > { %502 = vperm.xlu1 %1396, %v1609_v57   ;;  %1398 = vset.pattern.permute.xlu0 %v1446_v2 }
 0x268   : > { %1397 = vset.pattern.permute.xlu1 %v1456_v59 }
 0x269   : > { %662 = vperm.xlu1 %1397, %v1580_v26  }
 0x26d   : > { %1399 = vset.pattern.permute.xlu1 %v1447_v3 }
 0x2c9   : > { %v597_v61 = vpop.permute.xlu0 %596  ;;  %v600_v63 = vpop.permute.xlu1 %599 }
 0x2ca   : > { %v604_v62 = vsel %vm526_vm3, %v597_v61, %v602_v60  ;;  %v613_v0 = vsel %vm526_vm3, %v600_v63, 0 }
 0x2cb   : > { %1306 = vmatpush3.bf16.msra.mxu0 %v604_v62 }
 0x2cc   : > { %1307 = vmatprep.subr.bf16.mxu0 %v1449_v9 }
 0x2cf   : > { %1308 = vmatpush3.bf16.msra.mxu0 %v613_v0 }
 0x2d2   : > { %1310 = vmatmul.mubr.msk.bf16.vlgmr.msra.gmra.mrb[4].mxu0 %vm535_vm4, %v356_v8 }
 0x2da   : > { %v608_v10 = vpop.permute.xlu1 %607  ;;  %v384_v11 = vpop.permute.xlu0 %383 }
 0x2db   : > { %v463_v14 = vadd.f32 %v1563_v12, %v384_v11 }
 0x2dd   : > { %v471_v15 = vmax.f32 %v463_v14, 0.0 }
 0x2de   : > { %v483_v13 = vpop.permute.xlu1 %482 }
 0x2df   : > { %v658_v23 = vpop.permute.xlu0 %657  ;;  %v491_v24 = vmul.f32 %v483_v13, %v471_v15 }
 0x2e3   : > { %v503_v17 = vpop.permute.xlu1 %502 }
 0x2e4   : > { %v511_v30 = vadd.f32 %v503_v17, %v491_v24 }
 0x2e6   : > { %v515_v33 = vmul.f32 %v1568_v22, %v511_v30 }
 0x2e8   : > { %v663_v29 = vpop.permute.xlu1 %662 }
 0x3a5   : > { %v649_v18 = vpop.f32.mrb[4].mxu0 }
 0x3a6   : > { %v650_v19 = vadd.f32 %v649_v18, %v608_v10  ;;  %v1311_v20 = vpop.f32.mrb[5].mxu0 }
 0x3a7   : > { %v652_v21 = vpop.f32.mrb[6].mxu0 }
 0x3a8   : > { %v655_v25 = vmax.f32 %v650_v19, 0.0  ;;  %v1312_v28 = vpop.f32.mrb[7].mxu0 }
 0x3aa   : > { %v660_v31 = vmul.f32 %v658_v23, %v655_v25 }
 0x3ac   : > { %v665_v32 = vadd.f32 %v663_v29, %v660_v31 }
 0x3ae   : > { %v666_v34 = vmul.f32 %v1568_v22, %v665_v32 }
 0x3b0   : > { %v741_v35 = vpack.c.bf16 %v666_v34, %v592_v54  ;;  %v667_v12 = vadd.f32 %v666_v34, %v515_v33 }
 0x3b2   : > { %1321 = vmatprep.subr.bf16.mxu0 %v741_v35  ;;  %v668_v36 = vpack.c.bf16 %v667_v12, %v667_v12 }
 0x3b3   : > { %1322 = vmatpush3.bf16.msra.mxu0 %v741_v35 }
 0x3b4   : > { %673 = vrot.lane.b32.xlu1 %v668_v36, %s1452_s24  ;;  %670 = vrot.lane.b32.xlu0 %v668_v36, %s1451_s23  ;;  %s332_s24 = scalar_lea.vmem %s1758_s9, %s1243_s15 }
 0x3b8   : > { %681 = vperm.xlu1 %1399, %v1580_v26   ;;  %388 = vperm.xlu0 %1398, %v1636_v37  }
 0x3bc   : > { %1400 = vset.pattern.permute.xlu1 %v1448_v6  ;;  %1401 = vset.pattern.permute.xlu0 %v1457_v38 }
 0x3bd   : > { %486 = vperm.xlu1 %1400, %v1636_v37   ;;  %731 = vperm.xlu0 %1401, %v1580_v26  }
 0x3c1   : > { %1402 = vset.pattern.permute.xlu1 %v1447_v3  ;;  %1404 = vset.pattern.permute.xlu0 %v1453_v27  ;;  %v676_v3 = vrot.slane %v668_v36, 4 }
 0x3c2   : > { %506 = vperm.xlu1 %1402, %v1636_v37   ;;  %744 = vperm.xlu0 %1404, %v1527_v1  }
 0x3c6   : > { %1403 = vset.pattern.permute.xlu1 %v1458_v39  ;;  %756 = vperm.xlu0 %1404, %v1636_v37  }
 0x3c7   : > { %736 = vperm.xlu1 %1403, %v1580_v26  }
 0x3ca   : > { %1407 = vset.pattern.permute.xlu0 %v1455_v58 }
 0x3cb   : > { %1405 = vset.pattern.permute.xlu1 %v1453_v27  ;;  %833 = vperm.xlu0 %1407, %v1552_v7  }
 0x3cc   : > { %748 = vperm.xlu1 %1405, %v1552_v7  }
 0x3cf   : > { %837 = vperm.xlu0 %1407, %v1609_v57  }
 0x3d0   : > { %752 = vperm.xlu1 %1405, %v1609_v57  }
 0x3d3   : > { %1410 = vset.pattern.permute.xlu0 %v1457_v38 }
 0x3d4   : > { %1406 = vset.pattern.permute.xlu1 %v1455_v58  ;;  %857 = vperm.xlu0 %1410, %v1609_v57  }
 0x3d5   : > { %829 = vperm.xlu1 %1406, %v1527_v1  }
 0x3d8   : > { %1413 = vset.pattern.permute.xlu0 %v1446_v2 }
 0x3d9   : > { %1408 = vset.pattern.permute.xlu1 %v1457_v38 }
 0x3da   : > { %849 = vperm.xlu1 %1408, %v1527_v1  }
 0x3de   : > { %853 = vperm.xlu1 %1408, %v1552_v7  }
 0x3e2   : > { %1409 = vset.pattern.permute.xlu1 %v1455_v58 }
 0x3e3   : > { %841 = vperm.xlu1 %1409, %v1636_v37  }
 0x3e7   : > { %1411 = vset.pattern.permute.xlu1 %v1457_v38 }
 0x3e8   : > { %861 = vperm.xlu1 %1411, %v1636_v37  }
 0x3ec   : > { %1412 = vset.pattern.permute.xlu1 %v1446_v2  ;;  %v1418_v2 = vld [vmem:[%s1752_s3] sm:$0xff]  }
 0x3ed   : > { %1325 = vmatprep.mubr.msk.bf16.mxu0 %vm413_vm0, %v1418_v2 }
 0x426   : > { %v671_v6 = vpop.permute.xlu0 %670  ;;  %v674_v27 = vpop.permute.xlu1 %673 }
 0x427   : > { %v678_v26 = vsel %vm526_vm3, %v671_v6, %v676_v3  ;;  %v687_v40 = vsel %vm526_vm3, %v674_v27, 0 }
 0x428   : > { %1314 = vmatpush3.bf16.msra.mxu1 %v678_v26 }
 0x429   : > { %1315 = vmatprep.subr.bf16.mxu1 %v1449_v9 }
 0x42c   : > { %1316 = vmatpush3.bf16.msra.mxu1 %v687_v40 }
 0x42f   : > { %1318 = vmatmul.mubr.msk.bf16.vlgmr.msra.gmra.mrb[4].mxu1 %vm535_vm4, %v357_v41 }
 0x437   : > { %v682_v42 = vpop.permute.xlu1 %681  ;;  %v389_v43 = vpop.permute.xlu0 %388 }
 0x438   : > { %v466_v9 = vadd.f32 %v1565_v16, %v389_v43  ;;  %v1419_v16 = vld [vmem:[%s1752_s3 + $0x8] sm:$0xff]   ;;  %v363_v43 = vld [vmem:[%s1755_s6] sm:$0xff] }
 0x439   : > { %1337 = vmatprep.mubr.msk.f32.mxu1 %vm413_vm0, %v363_v43 }
 0x43a   : > { %v472_v45 = vmax.f32 %v466_v9, 0.0 }
 0x43c   : > { %v487_v44 = vpop.permute.xlu1 %486  ;;  %v732_v51 = vpop.permute.xlu0 %731 }
 0x43d   : > { %v492_v52 = vmul.f32 %v487_v44, %v472_v45 }
 0x441   : > { %v507_v46 = vpop.permute.xlu1 %506  ;;  %v745_v10 = vpop.permute.xlu0 %744 }
 0x442   : > { %v512_v56 = vadd.f32 %v507_v46, %v492_v52  ;;  %v364_v52 = vld [vmem:[%s1755_s6 + $0x8] sm:$0xff] }
 0x444   : > { %v516_v60 = vmul.f32 %v1568_v22, %v512_v56 }
 0x445   : > { %v757_v13 = vpop.permute.xlu0 %756 }
 0x446   : > { %v737_v55 = vpop.permute.xlu1 %736 }
 0x44a   : > { %v834_v15 = vpop.permute.xlu0 %833 }
 0x44b   : > { %v749_v63 = vpop.permute.xlu1 %748 }
 0x44e   : > { %v838_v24 = vpop.permute.xlu0 %837 }
 0x44f   : > { %v753_v0 = vpop.permute.xlu1 %752 }
 0x453   : > { %v858_v3 = vpop.permute.xlu0 %857 }
 0x454   : > { %v830_v8 = vpop.permute.xlu1 %829 }
 0x459   : > { %v850_v11 = vpop.permute.xlu1 %849 }
 0x45d   : > { %v854_v14 = vpop.permute.xlu1 %853 }
 0x462   : > { %v842_v20 = vpop.permute.xlu1 %841 }
 0x467   : > { %v862_v12 = vpop.permute.xlu1 %861 }
 0x502   : > { %v723_v47 = vpop.f32.mrb[4].mxu1 }
 0x503   : > { %v724_v48 = vadd.f32 %v723_v47, %v682_v42  ;;  %v1319_v49 = vpop.f32.mrb[5].mxu1 }
 0x504   : > { %v726_v50 = vpop.f32.mrb[6].mxu1 }
 0x505   : > { %v729_v53 = vmax.f32 %v724_v48, 0.0  ;;  %v1320_v54 = vpop.f32.mrb[7].mxu1 }
 0x506   : > { %v366_v54 = vld [vmem:[%s1756_s7 + $0x8] sm:$0xff] }
 0x507   : > { %v734_v58 = vmul.f32 %v732_v51, %v729_v53  ;;  %v367_v53 = vld [vmem:[%s1757_s8] sm:$0xff] }
 0x509   : > { %v739_v59 = vadd.f32 %v737_v55, %v734_v58  ;;  %v365_v55 = vld [vmem:[%s1756_s7] sm:$0xff] }
 0x50b   : > { %v740_v61 = vmul.f32 %v1568_v22, %v739_v59 }
 0x50d   : > { %v742_v62 = vpack.c.bf16 %v516_v60, %v740_v61 }
 0x50f   : > { %1323 = vmatprep.subr.bf16.mxu0 %v742_v62 }
 0x510   : > { %1324 = vmatpush3.bf16.msra.mxu0 %v742_v62 }
 0x513   : > { %1326 = vmatmul.mubr.msk.bf16.vlgmr.msra.gmra.mrb[8].mxu0 %vm413_vm0, %v1419_v16 }
 0x5e6   : > { %v1327_v17 = vpop.f32.mrb[8].mxu0 }
 0x5e7   : > { %v818_v18 = vadd.f32 %v1327_v17, %v753_v0  ;;  %v809_v19 = vpop.f32.mrb[9].mxu0 }
 0x5e8   : > { %v810_v21 = vadd.f32 %v809_v19, %v745_v10  ;;  %v1328_v23 = vpop.f32.mrb[10].mxu0 }
 0x5e9   : > { %v821_v25 = vadd.f32 %v1328_v23, %v757_v13  ;;  %v812_v28 = vpop.f32.mrb[11].mxu0  ;;  %v826_v29 = vmax.f32 %v818_v18, 0.0 }
 0x5ea   : > { %v824_v30 = vmax.f32 %v810_v21, 0.0  ;;  %v813_v31 = vadd.f32 %v812_v28, %v749_v63 }
 0x5eb   : > { %v827_v32 = vmax.f32 %v821_v25, 0.0  ;;  %v846_v36 = vmul.f32 %v838_v24, %v826_v29 }
 0x5ec   : > { %v844_v33 = vmul.f32 %v830_v8, %v824_v30  ;;  %v825_v34 = vmax.f32 %v813_v31, 0.0 }
 0x5ed   : > { %v847_v35 = vmul.f32 %v842_v20, %v827_v32  ;;  %v866_v40 = vadd.f32 %v858_v3, %v846_v36  ;;  %v343_v3 = vunpack.c.l.bf16 %v1539_v4 }
 0x5ee   : > { %v845_v38 = vmul.f32 %v834_v15, %v825_v34  ;;  %v864_v39 = vadd.f32 %v850_v11, %v844_v33 }
 0x5ef   : > { %v867_v6 = vadd.f32 %v862_v12, %v847_v35  ;;  %v1696_v42 = vmul.f32 %v1568_v22, %v866_v40 }
 0x5f0   : > { %v1684_v26 = vmul.f32 %v1568_v22, %v864_v39  ;;  %v865_v27 = vadd.f32 %v854_v14, %v845_v38  ;;  %v344_v39 = vunpack.c.h.bf16 %v1539_v4 }
 0x5f1   : > { %v1692_v2 = vmul.f32 %v1568_v22, %v867_v6 }
 0x5f2   : > { %872 = vadd.xlane.f32.xlu1 %v1684_v26  ;;  %v1688_v41 = vmul.f32 %v1568_v22, %v865_v27 }
 0x5f4   : > { %874 = vadd.xlane.f32.xlu0 %v1688_v41 }
 0x5f6   : > { %878 = vadd.xlane.f32.xlu1 %v1692_v2 }
 0x5f8   : > { %876 = vadd.xlane.f32.xlu0 %v1696_v42 }
 0x607   : > { %969 = vrot.lane.b32.xlu1 %v1552_v7, %s1459_s29 }
 0x60b   : > { %971 = vrot.lane.b32.xlu1 %v1609_v57, %s1459_s29  ;;  %v369_v57 = vld [vmem:[%s1757_s8 + $0x10] sm:$0xff] }
 0x60e   : > { %967 = vrot.lane.b32.xlu0 %v1527_v1, %s1459_s29  ;;  %v368_v1 = vld [vmem:[%s1757_s8 + $0x8] sm:$0xff] }
 0x612   : > { %973 = vrot.lane.b32.xlu0 %v1636_v37, %s1459_s29  ;;  %v370_v37 = vld [vmem:[%s1757_s8 + $0x18] sm:$0xff] }
 0x67f   : > { %v873_v44 = vpop.xlane.xlu1 %872 }
 0x680   : > { %v880_v45 = vmul.f32 0.03125, %v873_v44 }
 0x681   : > { %v875_v9 = vpop.xlane.xlu0 %874 }
 0x682   : > { %v881_v46 = vmul.f32 0.03125, %v875_v9 }
 0x683   : > { %v879_v47 = vpop.xlane.xlu1 %878 }
 0x684   : > { %v1350_v48 = vpack.c.bf16 %v881_v46, %v880_v45  ;;  %v883_v50 = vmul.f32 0.03125, %v879_v47  ;;  %v345_v47 = vunpack.c.l.bf16 %v1541_v5 }
 0x685   : > { %v877_v49 = vpop.xlane.xlu0 %876 }
 0x686   : > { %v882_v51 = vmul.f32 0.03125, %v877_v49  ;;  %1351 = vmatprep.subr.bf16.mxu1 %v1350_v48 }
 0x687   : > { %1353 = vmatpush3.bf16.msra.mxu1 %v1350_v48  ;;  %v970_v63 = vpop.permute.xlu1 %969  ;;  %v346_v48 = vunpack.c.h.bf16 %v1541_v5 }
 0x688   : > { %v1354_v22 = vpack.c.bf16 %v883_v50, %v882_v51 }
 0x689   : > { %v968_v16 = vpop.permute.xlu0 %967 }
 0x68a   : > { %1355 = vmatprep.subr.bf16.mxu1 %v1354_v22 }
 0x68b   : > { %1357 = vmatpush3.bf16.msra.mxu1 %v1354_v22  ;;  %v972_v15 = vpop.permute.xlu1 %971 }
 0x68d   : > { %v974_v13 = vpop.permute.xlu0 %973 }
 0x68e   : > { %1338 = vmatmul.mubr.msk.f32.vlgmr.msra.gmra.mrb[8].mxu1 %vm413_vm0, %v364_v52 }
 0x68f   : > { %1344 = vmatprep.mubr.msk.f32.mxu1 %vm979_vm5, %v367_v53 }
 0x761   : > { %v1339_v56 = vpop.f32.mrb[8].mxu1 }
 0x762   : > { %v962_v58 = vadd.f32 %v1339_v56, %v366_v54  ;;  %v956_v59 = vpop.f32.mrb[9].mxu1 }
 0x763   : > { %v957_v60 = vadd.f32 %v956_v59, %v365_v55 }
 0x764   : > { %v966_v61 = vmax.f32 %v962_v58, 0.0 }
 0x765   : > { %v965_v7 = vmax.f32 %v957_v60, 0.0 }
 0x767   : > { %v1358_v62 = vpack.c.bf16 %v966_v61, %v965_v7 }
 0x769   : > { %1359 = vmatprep.subr.bf16.mxu1 %v1358_v62 }
 0x76a   : > { %1361 = vmatpush3.bf16.msra.mxu1 %v1358_v62 }
 0x76d   : > { %1345 = vmatmul.mubr.msk.f32.vlgmr.msra.gmra.mrb[10].mxu1 %vm979_vm5, %v368_v1 }
 0x76e   : > { %1347 = vmatprep.mubr.msk.f32.mxu1 %vm979_vm5, %v369_v57 }
 0x771   : > { %1348 = vmatmul.mubr.msk.f32.gmra.mrb[12].mxu1 %vm979_vm5, %v370_v37 }
 0x840   : > { %v1346_v0 = vpop.f32.mrb[10].mxu1 }
 0x841   : > { %v1064_v8 = vadd.f32 %v1346_v0, %v970_v63  ;;  %v1058_v10 = vpop.f32.mrb[11].mxu1 }
 0x842   : > { %v1059_v11 = vadd.f32 %v1058_v10, %v968_v16 }
 0x843   : > { %v1234_v14 = vmul.f32 -1.442695, %v1064_v8 }
 0x844   : > { %v1233_v17 = vmul.f32 -1.442695, %v1059_v11  ;;  %v1349_v18 = vpop.f32.mrb[12].mxu1 }
 0x845   : > { %1422 = vpow2.f32 %v1234_v14  ;;  %v1074_v19 = vadd.f32 %v1349_v18, %v974_v13  ;;  %v1068_v20 = vpop.f32.mrb[13].mxu1 }
 0x846   : > { %1424 = vpow2.f32 %v1233_v17  ;;  %v1069_v21 = vadd.f32 %v1068_v20, %v972_v15 }
 0x847   : > { %v1236_v23 = vmul.f32 -1.442695, %v1074_v19 }
 0x848   : > { %v1235_v24 = vmul.f32 -1.442695, %v1069_v21 }
 0x849   : > { %1426 = vpow2.f32 %v1236_v23 }
 0x84a   : > { %1428 = vpow2.f32 %v1235_v24 }
 0x84f   : > { %v1423_v25 = vpop.eup %1422 }
 0x850   : > { %v1425_v28 = vpop.eup %1424  ;;  %v1090_v29 = vadd.f32 1.0, %v1423_v25 }
 0x851   : > { %v1089_v30 = vadd.f32 1.0, %v1425_v28 }
 0x852   : > { %1430 = vrcp.f32 %v1090_v29 }
 0x853   : > { %v1427_v31 = vpop.eup %1426  ;;  %1432 = vrcp.f32 %v1089_v30 }
 0x854   : > { %v1429_v32 = vpop.eup %1428  ;;  %v1092_v34 = vadd.f32 1.0, %v1427_v31 }
 0x855   : > { %v1091_v33 = vadd.f32 1.0, %v1429_v32 }
 0x857   : > { %1434 = vrcp.f32 %v1091_v33 }
 0x858   : > { %1436 = vrcp.f32 %v1092_v34 }
 0x85c   : > { %v1431_v35 = vpop.eup %1430 }
 0x85d   : > { %v1433_v12 = vpop.eup %1432  ;;  %1108 = vperm.xlu0 %1413, %v1431_v35  }
 0x85e   : > { %1103 = vperm.xlu1 %1412, %v1433_v12  }
 0x861   : > { %v1435_v36 = vpop.eup %1434 }
 0x862   : > { %1113 = vperm.xlu1 %1412, %v1435_v36   ;;  %v1437_v38 = vpop.eup %1436 }
 0x866   : > { %1118 = vperm.xlu1 %1412, %v1437_v38  }
 0x8dc   : > { %v1109_v6 = vpop.permute.xlu0 %1108 }
 0x8dd   : > { %v1122_v27 = vmul.f32 %v1109_v6, %v1688_v41  ;;  %v1104_v40 = vpop.permute.xlu1 %1103 }
 0x8de   : > { %v1121_v43 = vmul.f32 %v1104_v40, %v1684_v26 }
 0x8df   : > { %v1126_v44 = vadd.f32 %v1122_v27, %v344_v39 }
 0x8e0   : > { %v1125_v9 = vadd.f32 %v1121_v43, %v343_v3 }
 0x8e1   : > { %v1114_v45 = vpop.permute.xlu1 %1113 }
 0x8e2   : > { %v1252_v46 = vpack.c.bf16 %v1126_v44, %v1125_v9  ;;  %v1123_v4 = vmul.f32 %v1114_v45, %v1696_v42 }
 0x8e4   : > { %1253 = vst [vmem:[%s332_s24] sm:$0xff] %v1252_v46   ;;  %v1127_v26 = vadd.f32 %v1123_v4, %v345_v47 }
 0x8e5   : > { %v1119_v41 = vpop.permute.xlu1 %1118 }
 0x8e6   : > { %v1124_v49 = vmul.f32 %v1119_v41, %v1692_v2 }
 0x8e8   : > { %v1128_v50 = vadd.f32 %v1124_v49, %v346_v48 }
 0x8ea   : > { %v1257_v51 = vpack.c.bf16 %v1128_v50, %v1127_v26 }
 0x8ec   : > { %1259 = vst [vmem:[%s332_s24 + $0x8] sm:$0xff] %v1257_v51  }
 0x8ed PF: > { %s19_s30 = sadd.s32 1, %s1444_s30  }
 0x8ee   : > { %p16_p4 = scmp.ge.s32.totalorder %s19_s30, 4  }
 0x8f0   :  { %18 = sbr.rel (!%p16_p4) target bundleno = 1 (0x1), region = 86 }

// kernel: ecapa_forward_pallas.5
= control target key start
LH: loop header
LB: loop body
LE: loop exit
PB: predicated region body
PF: predicated region fallthrough
CT: control target
= control target key end

     0   :  { %s1634_s13 = smov 0   ;;  %s1874_s0 = inlined_call_operand.vmem [shape: bf16[2,32,128], index: 0, kind: input, shape index: {}]   ;;  %s1875_s1 = inlined_call_operand.vmem [shape: bf16[32,32], index: 1, kind: input, shape index: {}]   ;;  %s1876_s2 = inlined_call_operand.vmem [shape: bf16[3,8,24], index: 2, kind: input, shape index: {}]   ;;  %s1877_s3 = inlined_call_operand.vmem [shape: bf16[32,32], index: 3, kind: input, shape index: {}]   ;;  %s1878_s4 = inlined_call_operand.vmem [shape: f32[32,8], index: 4, kind: input, shape index: {}]   ;;  %s1879_s5 = inlined_call_operand.vmem [shape: f32[8,9], index: 5, kind: input, shape index: {}]   ;;  %s1880_s6 = inlined_call_operand.vmem [shape: f32[16,32], index: 6, kind: input, shape index: {}]   ;;  %s1881_s7 = inlined_call_operand.vmem [shape: f32[16,1], index: 7, kind: input, shape index: {}]   ;;  %s1882_s8 = inlined_call_operand.vmem [shape: f32[32,16], index: 8, kind: input, shape index: {}]   ;;  %s1883_s9 = inlined_call_operand.vmem [shape: bf16[2,32,128], index: 9, kind: output, shape index: {0}]   ;;  %s1884_s10 = inlined_call_operand.vmem [shape: bf16[2,32,128], index: 10, kind: output, shape index: {1}]  }
   0x1 LB: > { %s1301_s14 = sadd.s32 4294967295, %s1563_s13   ;;  %p1305_p0 = scmp.ge.s32.totalorder %s1563_s13, 1  ;;  %s1563_s13 = sphi %s1634_s13, %s21_s13  }
   0x2   : > { %p315_p1 = scmp.lt.s32.totalorder %s1563_s13, 3 }
   0x4   : > { %p316_p2 = pnand %p1305_p0, %p315_p1 }
   0x5   : > { %p358_p3 = scmp.lt.s32.totalorder (!%p316_p2), %s1301_s14, 1  ;;  %v1535_v0 = vld [vmem:[%s1875_s1] sm:$0xff] (!%p316_p2)   ;;  %vm453_vm0 = vcmask (!%p316_p2), 261120   ;;  %v1565_v2 = vmov (!%p316_p2), 0   ;;  %v1566_v3 = vmov (!%p316_p2), 2   ;;  %v1567_v6 = vmov (!%p316_p2), 1  }
   0x6   : > { %319 = sbr.rel (%p316_p2) target bundleno = 2287 (0x8ef), region = 56  ;;  %1412 = vmatprep.mubr.msk.bf16.mxu0 (!%p316_p2), %vm453_vm0, %v1535_v0  ;;  %v1649_v1 = vld [vmem:[%s1878_s4] sm:$0xff] (!%p316_p2)  ;;  %1503 = vset.pattern.permute.xlu0 (!%p316_p2), %v1565_v2  ;;  %v1674_v7 = vld [vmem:[%s1878_s4 + $0x8] sm:$0xff] (!%p316_p2)  ;;  %v1568_v9 = vmov (!%p316_p2), 0.0   ;;  %v374_v10 = vlaneseq (!%p316_p2)  ;;  %vm1569_vm2 = vmmov (!%p316_p2), 0   ;;  %s1570_s27 = smov (!%p316_p2), 3  }
   0x7   : > { %1505 = vset.pattern.permute.xlu1 (!%p316_p2), %v1566_v3  ;;  %413 = vperm.xlu0 (!%p316_p2), %1503, %v1649_v1   ;;  %v1536_v8 = vld [vmem:[%s1875_s1 + $0x8] sm:$0xff] (!%p316_p2)   ;;  %s1571_s28 = smov (!%p316_p2), 125   ;;  %v1702_v26 = vld [vmem:[%s1879_s5] sm:$0xff] (!%p316_p2)  ;;  %v1572_v27 = vmov (!%p316_p2), 3   ;;  %v1573_v28 = vmov (!%p316_p2), 6   ;;  %vm566_vm3 = vcmask (!%p316_p2), 1043456  }
   0x8   : > { %534 = vperm.xlu1 (!%p316_p2), %1505, %v1649_v1   ;;  %1416 = vmatprep.subr.bf16.mxu1 (!%p316_p2), %v1568_v9  ;;  %v375_v13 = vand.u32 (!%p316_p2), 127, %v374_v10  ;;  %v395_v34 = vld [vmem:[%s1876_s2] sm:$0xf] (!%p316_p2)  ;;  %vm575_vm4 = vcmask (!%p316_p2), 195584   ;;  %v1731_v57 = vld [vmem:[%s1878_s4 + $0x10] sm:$0xff] (!%p316_p2)  ;;  %v1574_v58 = vmov (!%p316_p2), 4  }
   0x9   : > { %1420 = vmatprep.mubr.msk.bf16.mxu1 (!%p316_p2), %vm1569_vm2, %v1568_v9  ;;  %v1575_v59 = vmov (!%p316_p2), 7   ;;  %vm1019_vm5 = vcmask (!%p316_p2), 130048  }
   0xa   : > { %vm376_vm1 = vcmp.lt.s32.totalorder (!%p316_p2), %v375_v13, 32 }
   0xb   : > { %1504 = vset.pattern.permute.xlu0 (!%p316_p2), %v1567_v6  ;;  %v1690_v22 = vsel (!%p316_p2), %vm376_vm1, 1.0, %v1568_v9 }
   0xc   : > { %1507 = vset.pattern.permute.xlu1 (!%p316_p2), %v1565_v2  ;;  %514 = vperm.xlu0 (!%p316_p2), %1504, %v1649_v1  }
   0xd   : > { %s1886_s14 = smov (!%p358_p3, %s1301_s14), 1 }
   0xe   : > { %s1653_s19 = sshll.u32 %s1886_s14, 4  ;;  %s1578_s14 = smov 122  }
   0xf   : > { %s362_s22 = scalar_lea.vmem %s1874_s0, %s1653_s19  ;;  %s372_s11 = scalar_lea.vmem %s1884_s10, %s1653_s19 }
  0x10   : > { %v1661_v4 = vld [vmem:[%s362_s22] sm:$0xff]   ;;  %v1663_v5 = vld [vmem:[%s362_s22 + $0x8] sm:$0xff]   ;;  %1506 = vset.pattern.permute.xlu0 %v1565_v2 }
  0x11   : > { %1408 = vmatprep.subr.bf16.mxu0 %v1661_v4  ;;  %418 = vperm.xlu0 %1506, %v1674_v7  }
  0x12   : > { %1409 = vmatpush3.bf16.msra.mxu0 %v1661_v4 }
  0x13   : > { %1410 = vmatprep.subr.bf16.mxu0 %v1663_v5 }
  0x15   : > { %1509 = vset.pattern.permute.xlu0 %v1572_v27 }
  0x16   : > { %1411 = vmatpush3.bf16.msra.mxu0 %v1663_v5  ;;  %623 = vperm.xlu0 %1509, %v1702_v26  }
  0x17   : > { %1424 = vmatprep.subr.bf16.mxu0 %v1568_v9 }
  0x19   : > { %1413 = vmatmul.mubr.msk.bf16.vlgmr.msra.gmra.mrb[0].mxu0 %vm453_vm0, %v1536_v8  ;;  %v396_v8 = vld [vmem:[%s1876_s2 + $0x4] sm:$0xf] }
  0x1a   : > { %1428 = vmatprep.mubr.msk.bf16.mxu0 %vm1569_vm2, %v1568_v9  ;;  %1512 = vset.pattern.permute.xlu0 %v1565_v2 }
  0x86   : > { %v414_v11 = vpop.permute.xlu0 %413 }
  0x87   : > { %v535_v20 = vpop.permute.xlu1 %534 }
  0x8b   : > { %v515_v19 = vpop.permute.xlu0 %514 }
  0x90   : > { %v419_v36 = vpop.permute.xlu0 %418 }
  0x95   : > { %v624_v45 = vpop.permute.xlu0 %623 }
  0xec   : > { %v1685_v12 = vpop.f32.mrb[0].mxu0 }
  0xed   : > { %v494_v14 = vpop.f32.mrb[1].mxu0 }
  0xee   : > { %v495_v15 = vadd.f32 %v494_v14, %v414_v11  ;;  %v1687_v16 = vpop.f32.mrb[2].mxu0 }
  0xef   : > { %v497_v17 = vpop.f32.mrb[3].mxu0 }
  0xf0   : > { %v509_v18 = vmax.f32 %v495_v15, 0.0  ;;  %v498_v38 = vadd.f32 %v497_v17, %v419_v36 }
  0xf2   : > { %v529_v21 = vmul.f32 %v515_v19, %v509_v18  ;;  %v510_v41 = vmax.f32 %v498_v38, 0.0  ;;  %v1576_v38 = vmov 5  }
  0xf4   : > { %v549_v23 = vadd.f32 %v535_v20, %v529_v21 }
  0xf6   : > { %v553_v24 = vmul.f32 %v1690_v22, %v549_v23 }
  0xf8   : > { %v557_v25 = vpack.c.bf16 %v553_v24, %v553_v24 }
  0xfa   : > { %559 = vrot.lane.b32.xlu1 %v557_v25, %s1570_s27  ;;  %v565_v29 = vrot.slane %v557_v25, 4 }
  0xfe   : > { %562 = vrot.lane.b32.xlu1 %v557_v25, %s1571_s28 }
 0x102   : > { %572 = vperm.xlu1 %1507, %v1702_v26  }
 0x106   : > { %1508 = vset.pattern.permute.xlu1 %v1567_v6 }
 0x107   : > { %518 = vperm.xlu1 %1508, %v1674_v7  }
 0x10b   : > { %1510 = vset.pattern.permute.xlu1 %v1566_v3 }
 0x10c   : > { %538 = vperm.xlu1 %1510, %v1674_v7  }
 0x110   : > { %1511 = vset.pattern.permute.xlu1 %v1573_v28 }
 0x111   : > { %628 = vperm.xlu1 %1511, %v1702_v26  }
 0x115   : > { %1513 = vset.pattern.permute.xlu1 %v1567_v6 }
 0x16c   : > { %v560_v30 = vpop.permute.xlu1 %559 }
 0x16d   : > { %v568_v31 = vsel %vm566_vm3, %v560_v30, %v565_v29 }
 0x16e   : > { %1417 = vmatpush3.bf16.msra.mxu1 %v568_v31 }
 0x16f   : > { %1418 = vmatprep.subr.bf16.mxu1 %v1568_v9 }
 0x170   : > { %v563_v32 = vpop.permute.xlu1 %562 }
 0x171   : > { %v579_v33 = vsel %vm566_vm3, %v563_v32, 0 }
 0x172   : > { %1419 = vmatpush3.bf16.msra.mxu1 %v579_v33 }
 0x173   : > { %1432 = vmatprep.subr.bf16.mxu1 %v1568_v9 }
 0x175   : > { %1421 = vmatmul.mubr.msk.bf16.vlgmr.msra.gmra.mrb[0].mxu1 %vm575_vm4, %v395_v34 }
 0x176   : > { %1436 = vmatprep.mubr.msk.bf16.mxu1 %vm1569_vm2, %v1568_v9 }
 0x181   : > { %v573_v35 = vpop.permute.xlu1 %572 }
 0x186   : > { %v519_v37 = vpop.permute.xlu1 %518 }
 0x187   : > { %v530_v46 = vmul.f32 %v519_v37, %v510_v41  ;;  %v1758_v37 = vld [vmem:[%s1878_s4 + $0x18] sm:$0xff]  ;;  %v397_v41 = vld [vmem:[%s1876_s2 + $0x8] sm:$0xf] }
 0x18b   : > { %v539_v39 = vpop.permute.xlu1 %538 }
 0x18c   : > { %v550_v50 = vadd.f32 %v539_v39, %v530_v46  ;;  %v1577_v39 = vmov 8  }
 0x18e   : > { %v554_v53 = vmul.f32 %v1690_v22, %v550_v50 }
 0x190   : > { %v629_v49 = vpop.permute.xlu1 %628 }
 0x248   : > { %v615_v40 = vpop.f32.mrb[0].mxu1 }
 0x249   : > { %v616_v42 = vadd.f32 %v615_v40, %v573_v35  ;;  %v1422_v43 = vpop.f32.mrb[1].mxu1 }
 0x24a   : > { %v618_v44 = vpop.f32.mrb[2].mxu1 }
 0x24b   : > { %v621_v47 = vmax.f32 %v616_v42, 0.0  ;;  %v1423_v48 = vpop.f32.mrb[3].mxu1 }
 0x24d   : > { %v626_v51 = vmul.f32 %v624_v45, %v621_v47 }
 0x24f   : > { %v631_v52 = vadd.f32 %v629_v49, %v626_v51 }
 0x251   : > { %v632_v54 = vmul.f32 %v1690_v22, %v631_v52 }
 0x253   : > { %v633_v55 = vadd.f32 %v632_v54, %v554_v53 }
 0x255   : > { %v634_v56 = vpack.c.bf16 %v633_v55, %v633_v55 }
 0x257   : > { %639 = vrot.lane.b32.xlu1 %v634_v56, %s1571_s28  ;;  %636 = vrot.lane.b32.xlu0 %v634_v56, %s1570_s27  ;;  %v642_v60 = vrot.slane %v634_v56, 4 }
 0x25b   : > { %647 = vperm.xlu1 %1513, %v1702_v26   ;;  %423 = vperm.xlu0 %1512, %v1731_v57  }
 0x25f   : > { %522 = vperm.xlu1 %1513, %v1731_v57   ;;  %1514 = vset.pattern.permute.xlu0 %v1574_v58 }
 0x260   : > { %697 = vperm.xlu0 %1514, %v1702_v26  }
 0x263   : > { %1515 = vset.pattern.permute.xlu1 %v1566_v3 }
 0x264   : > { %542 = vperm.xlu1 %1515, %v1731_v57   ;;  %1517 = vset.pattern.permute.xlu0 %v1565_v2 }
 0x268   : > { %1516 = vset.pattern.permute.xlu1 %v1575_v59 }
 0x269   : > { %702 = vperm.xlu1 %1516, %v1702_v26  }
 0x26d   : > { %1518 = vset.pattern.permute.xlu1 %v1566_v3 }
 0x2c9   : > { %v637_v61 = vpop.permute.xlu0 %636  ;;  %v640_v63 = vpop.permute.xlu1 %639 }
 0x2ca   : > { %v644_v62 = vsel %vm566_vm3, %v637_v61, %v642_v60  ;;  %v653_v0 = vsel %vm566_vm3, %v640_v63, 0 }
 0x2cb   : > { %1425 = vmatpush3.bf16.msra.mxu0 %v644_v62 }
 0x2cc   : > { %1426 = vmatprep.subr.bf16.mxu0 %v1568_v9 }
 0x2cf   : > { %1427 = vmatpush3.bf16.msra.mxu0 %v653_v0 }
 0x2d2   : > { %1429 = vmatmul.mubr.msk.bf16.vlgmr.msra.gmra.mrb[4].mxu0 %vm575_vm4, %v396_v8 }
 0x2da   : > { %v648_v10 = vpop.permute.xlu1 %647  ;;  %v424_v11 = vpop.permute.xlu0 %423 }
 0x2db   : > { %v503_v14 = vadd.f32 %v1685_v12, %v424_v11 }
 0x2dd   : > { %v511_v15 = vmax.f32 %v503_v14, 0.0 }
 0x2de   : > { %v523_v13 = vpop.permute.xlu1 %522 }
 0x2df   : > { %v698_v23 = vpop.permute.xlu0 %697  ;;  %v531_v24 = vmul.f32 %v523_v13, %v511_v15 }
 0x2e3   : > { %v543_v17 = vpop.permute.xlu1 %542 }
 0x2e4   : > { %v551_v30 = vadd.f32 %v543_v17, %v531_v24 }
 0x2e6   : > { %v555_v33 = vmul.f32 %v1690_v22, %v551_v30 }
 0x2e8   : > { %v703_v29 = vpop.permute.xlu1 %702 }
 0x3a5   : > { %v689_v18 = vpop.f32.mrb[4].mxu0 }
 0x3a6   : > { %v690_v19 = vadd.f32 %v689_v18, %v648_v10  ;;  %v1430_v20 = vpop.f32.mrb[5].mxu0 }
 0x3a7   : > { %v692_v21 = vpop.f32.mrb[6].mxu0 }
 0x3a8   : > { %v695_v25 = vmax.f32 %v690_v19, 0.0  ;;  %v1431_v28 = vpop.f32.mrb[7].mxu0 }
 0x3aa   : > { %v700_v31 = vmul.f32 %v698_v23, %v695_v25 }
 0x3ac   : > { %v705_v32 = vadd.f32 %v703_v29, %v700_v31 }
 0x3ae   : > { %v706_v34 = vmul.f32 %v1690_v22, %v705_v32 }
 0x3b0   : > { %v781_v35 = vpack.c.bf16 %v706_v34, %v632_v54  ;;  %v707_v12 = vadd.f32 %v706_v34, %v555_v33 }
 0x3b2   : > { %1440 = vmatprep.subr.bf16.mxu0 %v781_v35  ;;  %v708_v36 = vpack.c.bf16 %v707_v12, %v707_v12 }
 0x3b3   : > { %1441 = vmatpush3.bf16.msra.mxu0 %v781_v35 }
 0x3b4   : > { %713 = vrot.lane.b32.xlu1 %v708_v36, %s1571_s28  ;;  %710 = vrot.lane.b32.xlu0 %v708_v36, %s1570_s27  ;;  %s367_s28 = scalar_lea.vmem %s1883_s9, %s1653_s19 }
 0x3b8   : > { %721 = vperm.xlu1 %1518, %v1702_v26   ;;  %428 = vperm.xlu0 %1517, %v1758_v37  }
 0x3bc   : > { %1519 = vset.pattern.permute.xlu1 %v1567_v6  ;;  %1520 = vset.pattern.permute.xlu0 %v1576_v38 }
 0x3bd   : > { %526 = vperm.xlu1 %1519, %v1758_v37   ;;  %771 = vperm.xlu0 %1520, %v1702_v26  }
 0x3c1   : > { %1521 = vset.pattern.permute.xlu1 %v1566_v3  ;;  %1523 = vset.pattern.permute.xlu0 %v1572_v27  ;;  %v716_v3 = vrot.slane %v708_v36, 4 }
 0x3c2   : > { %546 = vperm.xlu1 %1521, %v1758_v37   ;;  %784 = vperm.xlu0 %1523, %v1649_v1  }
 0x3c6   : > { %1522 = vset.pattern.permute.xlu1 %v1577_v39  ;;  %796 = vperm.xlu0 %1523, %v1758_v37  }
 0x3c7   : > { %776 = vperm.xlu1 %1522, %v1702_v26  }
 0x3ca   : > { %1526 = vset.pattern.permute.xlu0 %v1574_v58 }
 0x3cb   : > { %1524 = vset.pattern.permute.xlu1 %v1572_v27  ;;  %873 = vperm.xlu0 %1526, %v1674_v7  }
 0x3cc   : > { %788 = vperm.xlu1 %1524, %v1674_v7  }
 0x3cf   : > { %877 = vperm.xlu0 %1526, %v1731_v57  }
 0x3d0   : > { %792 = vperm.xlu1 %1524, %v1731_v57  }
 0x3d3   : > { %1529 = vset.pattern.permute.xlu0 %v1576_v38 }
 0x3d4   : > { %1525 = vset.pattern.permute.xlu1 %v1574_v58  ;;  %897 = vperm.xlu0 %1529, %v1731_v57  }
 0x3d5   : > { %869 = vperm.xlu1 %1525, %v1649_v1  }
 0x3d8   : > { %1532 = vset.pattern.permute.xlu0 %v1565_v2 }
 0x3d9   : > { %1527 = vset.pattern.permute.xlu1 %v1576_v38 }
 0x3da   : > { %889 = vperm.xlu1 %1527, %v1649_v1  }
 0x3de   : > { %893 = vperm.xlu1 %1527, %v1674_v7  }
 0x3e2   : > { %1528 = vset.pattern.permute.xlu1 %v1574_v58 }
 0x3e3   : > { %881 = vperm.xlu1 %1528, %v1758_v37  }
 0x3e7   : > { %1530 = vset.pattern.permute.xlu1 %v1576_v38 }
 0x3e8   : > { %901 = vperm.xlu1 %1530, %v1758_v37  }
 0x3ec   : > { %1531 = vset.pattern.permute.xlu1 %v1565_v2  ;;  %v1537_v2 = vld [vmem:[%s1877_s3] sm:$0xff]  }
 0x3ed   : > { %1444 = vmatprep.mubr.msk.bf16.mxu0 %vm453_vm0, %v1537_v2 }
 0x426   : > { %v711_v6 = vpop.permute.xlu0 %710  ;;  %v714_v27 = vpop.permute.xlu1 %713 }
 0x427   : > { %v718_v26 = vsel %vm566_vm3, %v711_v6, %v716_v3  ;;  %v727_v40 = vsel %vm566_vm3, %v714_v27, 0 }
 0x428   : > { %1433 = vmatpush3.bf16.msra.mxu1 %v718_v26 }
 0x429   : > { %1434 = vmatprep.subr.bf16.mxu1 %v1568_v9 }
 0x42c   : > { %1435 = vmatpush3.bf16.msra.mxu1 %v727_v40 }
 0x42f   : > { %1437 = vmatmul.mubr.msk.bf16.vlgmr.msra.gmra.mrb[4].mxu1 %vm575_vm4, %v397_v41 }
 0x437   : > { %v722_v42 = vpop.permute.xlu1 %721  ;;  %v429_v43 = vpop.permute.xlu0 %428 }
 0x438   : > { %v506_v9 = vadd.f32 %v1687_v16, %v429_v43  ;;  %v1538_v16 = vld [vmem:[%s1877_s3 + $0x8] sm:$0xff]   ;;  %v403_v43 = vld [vmem:[%s1880_s6] sm:$0xff] }
 0x439   : > { %1456 = vmatprep.mubr.msk.f32.mxu1 %vm453_vm0, %v403_v43 }
 0x43a   : > { %v512_v45 = vmax.f32 %v506_v9, 0.0 }
 0x43c   : > { %v527_v44 = vpop.permute.xlu1 %526  ;;  %v772_v51 = vpop.permute.xlu0 %771 }
 0x43d   : > { %v532_v52 = vmul.f32 %v527_v44, %v512_v45 }
 0x441   : > { %v547_v46 = vpop.permute.xlu1 %546  ;;  %v785_v10 = vpop.permute.xlu0 %784 }
 0x442   : > { %v552_v56 = vadd.f32 %v547_v46, %v532_v52  ;;  %v404_v52 = vld [vmem:[%s1880_s6 + $0x8] sm:$0xff] }
 0x444   : > { %v556_v60 = vmul.f32 %v1690_v22, %v552_v56 }
 0x445   : > { %v797_v13 = vpop.permute.xlu0 %796 }
 0x446   : > { %v777_v55 = vpop.permute.xlu1 %776 }
 0x44a   : > { %v874_v15 = vpop.permute.xlu0 %873 }
 0x44b   : > { %v789_v63 = vpop.permute.xlu1 %788 }
 0x44e   : > { %v878_v24 = vpop.permute.xlu0 %877 }
 0x44f   : > { %v793_v0 = vpop.permute.xlu1 %792 }
 0x453   : > { %v898_v3 = vpop.permute.xlu0 %897 }
 0x454   : > { %v870_v8 = vpop.permute.xlu1 %869 }
 0x459   : > { %v890_v11 = vpop.permute.xlu1 %889 }
 0x45d   : > { %v894_v14 = vpop.permute.xlu1 %893 }
 0x462   : > { %v882_v20 = vpop.permute.xlu1 %881 }
 0x467   : > { %v902_v12 = vpop.permute.xlu1 %901 }
 0x502   : > { %v763_v47 = vpop.f32.mrb[4].mxu1 }
 0x503   : > { %v764_v48 = vadd.f32 %v763_v47, %v722_v42  ;;  %v1438_v49 = vpop.f32.mrb[5].mxu1 }
 0x504   : > { %v766_v50 = vpop.f32.mrb[6].mxu1 }
 0x505   : > { %v769_v53 = vmax.f32 %v764_v48, 0.0  ;;  %v1439_v54 = vpop.f32.mrb[7].mxu1 }
 0x506   : > { %v406_v54 = vld [vmem:[%s1881_s7 + $0x8] sm:$0xff] }
 0x507   : > { %v774_v58 = vmul.f32 %v772_v51, %v769_v53  ;;  %v407_v53 = vld [vmem:[%s1882_s8] sm:$0xff] }
 0x509   : > { %v779_v59 = vadd.f32 %v777_v55, %v774_v58  ;;  %v405_v55 = vld [vmem:[%s1881_s7] sm:$0xff] }
 0x50b   : > { %v780_v61 = vmul.f32 %v1690_v22, %v779_v59 }
 0x50d   : > { %v782_v62 = vpack.c.bf16 %v556_v60, %v780_v61 }
 0x50f   : > { %1442 = vmatprep.subr.bf16.mxu0 %v782_v62 }
 0x510   : > { %1443 = vmatpush3.bf16.msra.mxu0 %v782_v62 }
 0x513   : > { %1445 = vmatmul.mubr.msk.bf16.vlgmr.msra.gmra.mrb[8].mxu0 %vm453_vm0, %v1538_v16 }
 0x5e6   : > { %v1446_v17 = vpop.f32.mrb[8].mxu0 }
 0x5e7   : > { %v858_v18 = vadd.f32 %v1446_v17, %v793_v0  ;;  %v849_v19 = vpop.f32.mrb[9].mxu0 }
 0x5e8   : > { %v850_v21 = vadd.f32 %v849_v19, %v785_v10  ;;  %v1447_v23 = vpop.f32.mrb[10].mxu0 }
 0x5e9   : > { %v861_v25 = vadd.f32 %v1447_v23, %v797_v13  ;;  %v852_v28 = vpop.f32.mrb[11].mxu0  ;;  %v866_v29 = vmax.f32 %v858_v18, 0.0 }
 0x5ea   : > { %v864_v30 = vmax.f32 %v850_v21, 0.0  ;;  %v853_v31 = vadd.f32 %v852_v28, %v789_v63 }
 0x5eb   : > { %v867_v32 = vmax.f32 %v861_v25, 0.0  ;;  %v886_v36 = vmul.f32 %v878_v24, %v866_v29 }
 0x5ec   : > { %v884_v33 = vmul.f32 %v870_v8, %v864_v30  ;;  %v865_v34 = vmax.f32 %v853_v31, 0.0 }
 0x5ed   : > { %v887_v35 = vmul.f32 %v882_v20, %v867_v32  ;;  %v906_v40 = vadd.f32 %v898_v3, %v886_v36  ;;  %v383_v3 = vunpack.c.l.bf16 %v1661_v4 }
 0x5ee   : > { %v885_v38 = vmul.f32 %v874_v15, %v865_v34  ;;  %v904_v39 = vadd.f32 %v890_v11, %v884_v33 }
 0x5ef   : > { %v907_v6 = vadd.f32 %v902_v12, %v887_v35  ;;  %v1818_v42 = vmul.f32 %v1690_v22, %v906_v40 }
 0x5f0   : > { %v1806_v26 = vmul.f32 %v1690_v22, %v904_v39  ;;  %v905_v27 = vadd.f32 %v894_v14, %v885_v38  ;;  %v384_v39 = vunpack.c.h.bf16 %v1661_v4 }
 0x5f1   : > { %v1814_v2 = vmul.f32 %v1690_v22, %v907_v6 }
 0x5f2   : > { %912 = vadd.xlane.f32.xlu1 %v1806_v26  ;;  %v1810_v41 = vmul.f32 %v1690_v22, %v905_v27 }
 0x5f4   : > { %914 = vadd.xlane.f32.xlu0 %v1810_v41 }
 0x5f6   : > { %918 = vadd.xlane.f32.xlu1 %v1814_v2 }
 0x5f8   : > { %916 = vadd.xlane.f32.xlu0 %v1818_v42 }
 0x607   : > { %1009 = vrot.lane.b32.xlu1 %v1674_v7, %s1578_s14 }
 0x60b   : > { %1011 = vrot.lane.b32.xlu1 %v1731_v57, %s1578_s14  ;;  %v409_v57 = vld [vmem:[%s1882_s8 + $0x10] sm:$0xff] }
 0x60e   : > { %1007 = vrot.lane.b32.xlu0 %v1649_v1, %s1578_s14  ;;  %v408_v1 = vld [vmem:[%s1882_s8 + $0x8] sm:$0xff] }
 0x612   : > { %1013 = vrot.lane.b32.xlu0 %v1758_v37, %s1578_s14  ;;  %v410_v37 = vld [vmem:[%s1882_s8 + $0x18] sm:$0xff] }
 0x67f   : > { %v913_v44 = vpop.xlane.xlu1 %912 }
 0x680   : > { %v920_v45 = vmul.f32 0.03125, %v913_v44 }
 0x681   : > { %v915_v9 = vpop.xlane.xlu0 %914 }
 0x682   : > { %v921_v46 = vmul.f32 0.03125, %v915_v9 }
 0x683   : > { %v919_v47 = vpop.xlane.xlu1 %918 }
 0x684   : > { %v1469_v48 = vpack.c.bf16 %v921_v46, %v920_v45  ;;  %v923_v50 = vmul.f32 0.03125, %v919_v47 }
 0x685   : > { %v917_v49 = vpop.xlane.xlu0 %916 }
 0x686   : > { %v922_v51 = vmul.f32 0.03125, %v917_v49  ;;  %1470 = vmatprep.subr.bf16.mxu1 %v1469_v48  ;;  %v385_v49 = vunpack.c.l.bf16 %v1663_v5 }
 0x687   : > { %1472 = vmatpush3.bf16.msra.mxu1 %v1469_v48  ;;  %v1010_v63 = vpop.permute.xlu1 %1009 }
 0x688   : > { %v1473_v22 = vpack.c.bf16 %v923_v50, %v922_v51 }
 0x689   : > { %v1008_v16 = vpop.permute.xlu0 %1007 }
 0x68a   : > { %1474 = vmatprep.subr.bf16.mxu1 %v1473_v22 }
 0x68b   : > { %1476 = vmatpush3.bf16.msra.mxu1 %v1473_v22  ;;  %v1012_v15 = vpop.permute.xlu1 %1011 }
 0x68d   : > { %v1014_v13 = vpop.permute.xlu0 %1013 }
 0x68e   : > { %1457 = vmatmul.mubr.msk.f32.vlgmr.msra.gmra.mrb[8].mxu1 %vm453_vm0, %v404_v52 }
 0x68f   : > { %1463 = vmatprep.mubr.msk.f32.mxu1 %vm1019_vm5, %v407_v53 }
 0x761   : > { %v1458_v56 = vpop.f32.mrb[8].mxu1 }
 0x762   : > { %v1002_v58 = vadd.f32 %v1458_v56, %v406_v54  ;;  %v996_v59 = vpop.f32.mrb[9].mxu1 }
 0x763   : > { %v997_v60 = vadd.f32 %v996_v59, %v405_v55 }
 0x764   : > { %v1006_v61 = vmax.f32 %v1002_v58, 0.0 }
 0x765   : > { %v1005_v7 = vmax.f32 %v997_v60, 0.0 }
 0x767   : > { %v1477_v62 = vpack.c.bf16 %v1006_v61, %v1005_v7 }
 0x769   : > { %1478 = vmatprep.subr.bf16.mxu1 %v1477_v62 }
 0x76a   : > { %1480 = vmatpush3.bf16.msra.mxu1 %v1477_v62 }
 0x76d   : > { %1464 = vmatmul.mubr.msk.f32.vlgmr.msra.gmra.mrb[10].mxu1 %vm1019_vm5, %v408_v1 }
 0x76e   : > { %1466 = vmatprep.mubr.msk.f32.mxu1 %vm1019_vm5, %v409_v57 }
 0x771   : > { %1467 = vmatmul.mubr.msk.f32.gmra.mrb[12].mxu1 %vm1019_vm5, %v410_v37 }
 0x840   : > { %v1465_v0 = vpop.f32.mrb[10].mxu1 }
 0x841   : > { %v1104_v8 = vadd.f32 %v1465_v0, %v1010_v63  ;;  %v1098_v10 = vpop.f32.mrb[11].mxu1 }
 0x842   : > { %v1099_v11 = vadd.f32 %v1098_v10, %v1008_v16 }
 0x843   : > { %v1333_v14 = vmul.f32 -1.442695, %v1104_v8 }
 0x844   : > { %v1332_v17 = vmul.f32 -1.442695, %v1099_v11  ;;  %v1468_v18 = vpop.f32.mrb[12].mxu1 }
 0x845   : > { %1541 = vpow2.f32 %v1333_v14  ;;  %v1114_v19 = vadd.f32 %v1468_v18, %v1014_v13  ;;  %v1108_v20 = vpop.f32.mrb[13].mxu1 }
 0x846   : > { %1543 = vpow2.f32 %v1332_v17  ;;  %v1109_v21 = vadd.f32 %v1108_v20, %v1012_v15 }
 0x847   : > { %v1335_v23 = vmul.f32 -1.442695, %v1114_v19 }
 0x848   : > { %v1334_v24 = vmul.f32 -1.442695, %v1109_v21 }
 0x849   : > { %1545 = vpow2.f32 %v1335_v23 }
 0x84a   : > { %1547 = vpow2.f32 %v1334_v24 }
 0x84f   : > { %v1542_v25 = vpop.eup %1541 }
 0x850   : > { %v1544_v28 = vpop.eup %1543  ;;  %v1130_v29 = vadd.f32 1.0, %v1542_v25 }
 0x851   : > { %v1129_v30 = vadd.f32 1.0, %v1544_v28 }
 0x852   : > { %1549 = vrcp.f32 %v1130_v29 }
 0x853   : > { %v1546_v31 = vpop.eup %1545  ;;  %1551 = vrcp.f32 %v1129_v30 }
 0x854   : > { %v1548_v32 = vpop.eup %1547  ;;  %v1132_v34 = vadd.f32 1.0, %v1546_v31 }
 0x855   : > { %v1131_v33 = vadd.f32 1.0, %v1548_v32 }
 0x857   : > { %1553 = vrcp.f32 %v1131_v33 }
 0x858   : > { %1555 = vrcp.f32 %v1132_v34 }
 0x85c   : > { %v1550_v35 = vpop.eup %1549 }
 0x85d   : > { %v1552_v12 = vpop.eup %1551  ;;  %1148 = vperm.xlu0 %1532, %v1550_v35  }
 0x85e   : > { %1143 = vperm.xlu1 %1531, %v1552_v12  }
 0x861   : > { %v1554_v36 = vpop.eup %1553 }
 0x862   : > { %1153 = vperm.xlu1 %1531, %v1554_v36   ;;  %v1556_v38 = vpop.eup %1555 }
 0x866   : > { %1158 = vperm.xlu1 %1531, %v1556_v38  }
 0x8dc   : > { %v1149_v6 = vpop.permute.xlu0 %1148 }
 0x8dd   : > { %v1162_v27 = vmul.f32 %v1149_v6, %v1810_v41  ;;  %v1144_v40 = vpop.permute.xlu1 %1143  ;;  %v386_v41 = vunpack.c.h.bf16 %v1663_v5 }
 0x8de   : > { %v1161_v43 = vmul.f32 %v1144_v40, %v1806_v26 }
 0x8df   : > { %v1166_v44 = vadd.f32 %v1162_v27, %v384_v39 }
 0x8e0   : > { %v1165_v9 = vadd.f32 %v1161_v43, %v383_v3 }
 0x8e1   : > { %v1190_v45 = vadd.f32 %v1166_v44, %v384_v39  ;;  %v1154_v46 = vpop.permute.xlu1 %1153 }
 0x8e2   : > { %v1360_v47 = vpack.c.bf16 %v1166_v44, %v1165_v9  ;;  %v1189_v48 = vadd.f32 %v1165_v9, %v383_v3  ;;  %v1163_v4 = vmul.f32 %v1154_v46, %v1818_v42 }
 0x8e4   : > { %1361 = vst [vmem:[%s367_s28] sm:$0xff] %v1360_v47   ;;  %v1370_v26 = vpack.c.bf16 %v1190_v45, %v1189_v48  ;;  %v1167_v51 = vadd.f32 %v1163_v4, %v385_v49 }
 0x8e5   : > { %v1159_v50 = vpop.permute.xlu1 %1158 }
 0x8e6   : > { %1371 = vst [vmem:[%s372_s11] sm:$0xff] %v1370_v26   ;;  %v1164_v22 = vmul.f32 %v1159_v50, %v1814_v2  ;;  %v1191_v53 = vadd.f32 %v1167_v51, %v385_v49 }
 0x8e8   : > { %v1168_v52 = vadd.f32 %v1164_v22, %v386_v41 }
 0x8ea   : > { %v1365_v54 = vpack.c.bf16 %v1168_v52, %v1167_v51  ;;  %v1192_v55 = vadd.f32 %v1168_v52, %v386_v41 }
 0x8ec   : > { %1377 = vst [vmem:[%s367_s28 + $0x8] sm:$0xff] %v1365_v54   ;;  %v1375_v56 = vpack.c.bf16 %v1192_v55, %v1191_v53 }
 0x8ee   : > { %1378 = vst [vmem:[%s372_s11 + $0x8] sm:$0xff] %v1375_v56  }
 0x8ef PF: > { %s21_s13 = sadd.s32 1, %s1563_s13  }
 0x8f0   : > { %p18_p4 = scmp.ge.s32.totalorder %s21_s13, 4  }
 0x8f2   :  { %20 = sbr.rel (!%p18_p4) target bundleno = 1 (0x1), region = 98 }

// kernel: ecapa_forward_pallas.4
= control target key start
LH: loop header
LB: loop body
LE: loop exit
PB: predicated region body
PF: predicated region fallthrough
CT: control target
= control target key end

     0   :  { %s1881_s21 = smov 0   ;;  %s2162_s0 = inlined_call_operand.vmem [shape: bf16[2,16,128], index: 0, kind: input, shape index: {}]   ;;  %s2163_s1 = inlined_call_operand.vmem [shape: bf16[32,80], index: 1, kind: input, shape index: {}]   ;;  %s2164_s2 = inlined_call_operand.vmem [shape: f32[32,3], index: 2, kind: input, shape index: {}]   ;;  %s2165_s3 = inlined_call_operand.vmem [shape: bf16[32,32], index: 3, kind: input, shape index: {}]   ;;  %s2166_s4 = inlined_call_operand.vmem [shape: bf16[3,8,24], index: 4, kind: input, shape index: {}]   ;;  %s2167_s5 = inlined_call_operand.vmem [shape: bf16[32,32], index: 5, kind: input, shape index: {}]   ;;  %s2168_s6 = inlined_call_operand.vmem [shape: f32[32,8], index: 6, kind: input, shape index: {}]   ;;  %s2169_s7 = inlined_call_operand.vmem [shape: f32[8,9], index: 7, kind: input, shape index: {}]   ;;  %s2170_s8 = inlined_call_operand.vmem [shape: f32[16,32], index: 8, kind: input, shape index: {}]   ;;  %s2171_s9 = inlined_call_operand.vmem [shape: f32[16,1], index: 9, kind: input, shape index: {}]   ;;  %s2172_s10 = inlined_call_operand.vmem [shape: f32[32,16], index: 10, kind: input, shape index: {}]   ;;  %s2173_s11 = inlined_call_operand.vmem [shape: bf16[2,32,128], index: 11, kind: output, shape index: {0}]   ;;  %s2174_s12 = inlined_call_operand.vmem [shape: bf16[2,32,128], index: 12, kind: output, shape index: {1}]  }
   0x1 LB: > { %s1503_s22 = sadd.s32 4294967295, %s1798_s21   ;;  %p1507_p0 = scmp.ge.s32.totalorder %s1798_s21, 1  ;;  %s1798_s21 = sphi %s1881_s21, %s23_s21  }
   0x2   : > { %p365_p1 = scmp.lt.s32.totalorder %s1798_s21, 3 }
   0x4   : > { %p366_p2 = pnand %p1507_p0, %p365_p1 }
   0x5   : > { %p412_p3 = scmp.lt.s32.totalorder (!%p366_p2), %s1503_s22, 1  ;;  %s1800_s27 = smov (!%p366_p2), 2   ;;  %v1770_v1 = vld [vmem:[%s2163_s1] sm:$0xff] (!%p366_p2)   ;;  %vm495_vm0 = vcmask (!%p366_p2), 654336   ;;  %v434_v2 = vld [vmem:[%s2164_s2 + $0x8] sm:$0xff] (!%p366_p2)  ;;  %v1804_v4 = vmov (!%p366_p2), 0   ;;  %v428_v25 = vlaneseq (!%p366_p2) }
   0x6   : > { %369 = sbr.rel (%p366_p2) target bundleno = 2649 (0xa59), region = 64  ;;  %s1801_s28 = smov (!%p366_p2), 127   ;;  %1630 = vmatprep.mubr.msk.bf16.mxu0 (!%p366_p2), %vm495_vm0, %v1770_v1  ;;  %v433_v3 = vld [vmem:[%s2164_s2] sm:$0xff] (!%p366_p2)  ;;  %1732 = vset.pattern.permute.xlu1 (!%p366_p2), %v1804_v4  ;;  %v435_v5 = vld [vmem:[%s2164_s2 + $0x10] sm:$0xff] (!%p366_p2)  ;;  %v436_v6 = vld [vmem:[%s2164_s2 + $0x18] sm:$0xff] (!%p366_p2)  ;;  %v1805_v7 = vmov (!%p366_p2), 1  }
   0x7   : > { %s1802_s29 = smov (!%p366_p2), 1   ;;  %s1803_s30 = smov (!%p366_p2), 126   ;;  %1731 = vset.pattern.permute.xlu0 (!%p366_p2), %v1804_v4  ;;  %v1806_v8 = vmov (!%p366_p2), 2   ;;  %v1771_v13 = vld [vmem:[%s2163_s1 + $0x8] sm:$0xff] (!%p366_p2)   ;;  %v1807_v14 = vmov (!%p366_p2), 0.0   ;;  %v1772_v15 = vld [vmem:[%s2165_s3] sm:$0xff] (!%p366_p2)  }
   0x8   : > { %vm655_vm1 = vcmask (!%p366_p2), 261120   ;;  %v1935_v16 = vld [vmem:[%s2168_s6] sm:$0xff] (!%p366_p2)  ;;  %v429_v33 = vand.u32 (!%p366_p2), 127, %v428_v25  ;;  %v1773_v58 = vld [vmem:[%s2165_s3 + $0x8] sm:$0xff] (!%p366_p2)   ;;  %vm1808_vm3 = vmmov (!%p366_p2), 0   ;;  %vm768_vm4 = vcmask (!%p366_p2), 1043456  }
   0x9   : > { %1638 = vmatprep.mubr.msk.bf16.mxu1 (!%p366_p2), %vm655_vm1, %v1772_v15  ;;  %v1810_v15 = vmov (!%p366_p2), 6   ;;  %vm777_vm5 = vcmask (!%p366_p2), 195584   ;;  %vm1221_vm6 = vcmask (!%p366_p2), 130048  }
   0xa   : > { %vm430_vm2 = vcmp.lt.s32.totalorder (!%p366_p2), %v429_v33, 32 }
   0xb   : > { %v1944_v48 = vsel (!%p366_p2), %vm430_vm2, 1.0, %v1807_v14 }
   0xd   : > { %s2176_s22 = smov (!%p412_p3, %s1503_s22), 1 }
   0xe   : > { %s1551_s23 = sshll.u32 %s2176_s22, 3  ;;  %s1552_s20 = sshll.u32 %s2176_s22, 4 }
   0xf   : > { %s416_s26 = scalar_lea.vmem %s2162_s0, %s1551_s23  ;;  %s421_s25 = scalar_lea.vmem %s2173_s11, %s1552_s20 }
  0x10   : > { %v1769_v0 = vld [vmem:[%s416_s26] sm:$0xff]  }
  0x11   : > { %448 = vrot.lane.b32.xlu0 %v1769_v0, %s1800_s27  ;;  %456 = vrot.lane.b32.xlu1 %v1769_v0, %s1801_s28  ;;  %s1815_s28 = smov 122  }
  0x15   : > { %452 = vrot.lane.b32.xlu0 %v1769_v0, %s1802_s29  ;;  %460 = vrot.lane.b32.xlu1 %v1769_v0, %s1803_s30 }
  0x19   : > { %472 = vperm.xlu1 %1732, %v434_v2   ;;  %467 = vperm.xlu0 %1731, %v433_v3  }
  0x1d   : > { %477 = vperm.xlu1 %1732, %v435_v5   ;;  %482 = vperm.xlu0 %1731, %v436_v6  }
  0x21   : > { %1733 = vset.pattern.permute.xlu1 %v1805_v7  ;;  %1734 = vset.pattern.permute.xlu0 %v1805_v7 }
  0x22   : > { %556 = vperm.xlu1 %1733, %v433_v3   ;;  %560 = vperm.xlu0 %1734, %v434_v2  }
  0x26   : > { %1735 = vset.pattern.permute.xlu1 %v1806_v8  ;;  %564 = vperm.xlu0 %1734, %v435_v5  }
  0x27   : > { %576 = vperm.xlu1 %1735, %v433_v3  }
  0x2a   : > { %1737 = vset.pattern.permute.xlu0 %v1806_v8 }
  0x2b   : > { %580 = vperm.xlu1 %1735, %v434_v2   ;;  %584 = vperm.xlu0 %1737, %v435_v5  }
  0x2f   : > { %1736 = vset.pattern.permute.xlu1 %v1805_v7  ;;  %1740 = vset.pattern.permute.xlu0 %v1805_v7 }
  0x30   : > { %568 = vperm.xlu1 %1736, %v436_v6   ;;  %716 = vperm.xlu0 %1740, %v1935_v16  }
  0x34   : > { %1738 = vset.pattern.permute.xlu1 %v1806_v8  ;;  %1743 = vset.pattern.permute.xlu0 %v1804_v4 }
  0x35   : > { %588 = vperm.xlu1 %1738, %v436_v6  }
  0x39   : > { %1739 = vset.pattern.permute.xlu1 %v1804_v4 }
  0x3a   : > { %627 = vperm.xlu1 %1739, %v1935_v16  }
  0x3e   : > { %1741 = vset.pattern.permute.xlu1 %v1806_v8 }
  0x3f   : > { %736 = vperm.xlu1 %1741, %v1935_v16  }
  0x43   : > { %1742 = vset.pattern.permute.xlu1 %v1804_v4 }
  0x83   : > { %v449_v9 = vpop.permute.xlu0 %448  ;;  %v457_v11 = vpop.permute.xlu1 %456 }
  0x84   : > { %1620 = vmatprep.subr.bf16.mxu0 %v449_v9 }
  0x85   : > { %1621 = vmatpush3.bf16.msra.mxu0 %v449_v9 }
  0x87   : > { %v453_v10 = vpop.permute.xlu0 %452  ;;  %v461_v12 = vpop.permute.xlu1 %460 }
  0x88   : > { %1622 = vmatprep.subr.bf16.mxu0 %v453_v10 }
  0x89   : > { %1623 = vmatpush3.bf16.msra.mxu0 %v453_v10 }
  0x8a   : > { %1624 = vmatprep.subr.bf16.mxu0 %v1769_v0 }
  0x8d   : > { %1625 = vmatpush3.bf16.msra.mxu0 %v1769_v0 }
  0x8e   : > { %1626 = vmatprep.subr.bf16.mxu0 %v457_v11 }
  0x91   : > { %1627 = vmatpush3.bf16.msra.mxu0 %v457_v11  ;;  %v1981_v11 = vld [vmem:[%s2168_s6 + $0x8] sm:$0xff] }
  0x92   : > { %1628 = vmatprep.subr.bf16.mxu0 %v461_v12 }
  0x95   : > { %1629 = vmatpush3.bf16.msra.mxu0 %v461_v12  ;;  %v1986_v12 = vld [vmem:[%s2169_s7] sm:$0xff] }
  0x96   : > { %1658 = vmatprep.subr.bf16.mxu0 %v1807_v14 }
  0x98   : > { %1631 = vmatmul.mubr.msk.bf16.vlgmr.msra.gmra.mrb[0].mxu0 %vm495_vm0, %v1771_v13  ;;  %v473_v17 = vpop.permute.xlu1 %472  ;;  %v468_v20 = vpop.permute.xlu0 %467  ;;  %v1809_v13 = vmov 3  }
  0x99   : > { %1662 = vmatprep.mubr.msk.bf16.mxu0 %vm1808_vm3, %v1807_v14 }
  0x9c   : > { %v478_v18 = vpop.permute.xlu1 %477  ;;  %v483_v22 = vpop.permute.xlu0 %482 }
  0xa1   : > { %v557_v19 = vpop.permute.xlu1 %556  ;;  %v561_v24 = vpop.permute.xlu0 %560 }
  0xa5   : > { %v565_v30 = vpop.permute.xlu0 %564 }
  0xa6   : > { %v577_v21 = vpop.permute.xlu1 %576 }
  0xaa   : > { %v581_v23 = vpop.permute.xlu1 %580  ;;  %v585_v45 = vpop.permute.xlu0 %584 }
  0xaf   : > { %v569_v27 = vpop.permute.xlu1 %568  ;;  %v717_v1 = vpop.permute.xlu0 %716 }
  0xb4   : > { %v589_v43 = vpop.permute.xlu1 %588 }
  0xb9   : > { %v628_v59 = vpop.permute.xlu1 %627 }
  0xbe   : > { %v737_v3 = vpop.permute.xlu1 %736 }
 0x16b   : > { %v1632_v26 = vpop.f32.mrb[0].mxu0 }
 0x16c   : > { %v545_v28 = vadd.f32 %v1632_v26, %v478_v18  ;;  %v536_v29 = vpop.f32.mrb[1].mxu0 }
 0x16d   : > { %v537_v31 = vadd.f32 %v536_v29, %v468_v20  ;;  %v1633_v32 = vpop.f32.mrb[2].mxu0 }
 0x16e   : > { %v553_v34 = vmax.f32 %v545_v28, 0.0  ;;  %v548_v35 = vadd.f32 %v1633_v32, %v483_v22  ;;  %v539_v36 = vpop.f32.mrb[3].mxu0  ;;  %v607_v22 = vld [vmem:[%s2166_s4] sm:$0xf] }
 0x16f   : > { %v551_v37 = vmax.f32 %v537_v31, 0.0  ;;  %v540_v38 = vadd.f32 %v539_v36, %v473_v17 }
 0x170   : > { %v554_v39 = vmax.f32 %v548_v35, 0.0  ;;  %v573_v41 = vmul.f32 %v565_v30, %v553_v34 }
 0x171   : > { %v571_v40 = vmul.f32 %v557_v19, %v551_v37  ;;  %v552_v42 = vmax.f32 %v540_v38, 0.0 }
 0x172   : > { %v574_v44 = vmul.f32 %v569_v27, %v554_v39  ;;  %v593_v51 = vadd.f32 %v585_v45, %v573_v41  ;;  %v2016_v45 = vld [vmem:[%s2168_s6 + $0x10] sm:$0xff] }
 0x173   : > { %v591_v46 = vadd.f32 %v577_v21, %v571_v40  ;;  %v572_v47 = vmul.f32 %v561_v24, %v552_v42 }
 0x174   : > { %v594_v49 = vadd.f32 %v589_v43, %v574_v44  ;;  %v1956_v55 = vmul.f32 %v1944_v48, %v593_v51 }
 0x175   : > { %v592_v50 = vadd.f32 %v581_v23, %v572_v47  ;;  %v1950_v53 = vmul.f32 %v1944_v48, %v591_v46  ;;  %v1811_v46 = vmov 4   ;;  %v1812_v47 = vmov 7  }
 0x176   : > { %v1947_v52 = vmul.f32 %v1944_v48, %v594_v49 }
 0x177   : > { %v1953_v54 = vmul.f32 %v1944_v48, %v592_v50 }
 0x178   : > { %v624_v57 = vpack.c.bf16 %v1947_v52, %v1956_v55 }
 0x179   : > { %v623_v56 = vpack.c.bf16 %v1953_v54, %v1950_v53 }
 0x17b   : > { %1634 = vmatprep.subr.bf16.mxu1 %v623_v56 }
 0x17c   : > { %1635 = vmatpush3.bf16.msra.mxu1 %v623_v56 }
 0x17d   : > { %1636 = vmatprep.subr.bf16.mxu1 %v624_v57 }
 0x180   : > { %1637 = vmatpush3.bf16.msra.mxu1 %v624_v57 }
 0x181   : > { %1642 = vmatprep.subr.bf16.mxu1 %v1807_v14 }
 0x183   : > { %1639 = vmatmul.mubr.msk.bf16.vlgmr.msra.gmra.mrb[0].mxu1 %vm655_vm1, %v1773_v58  ;;  %v608_v58 = vld [vmem:[%s2166_s4 + $0x4] sm:$0xf] }
 0x184   : > { %1646 = vmatprep.mubr.msk.bf16.mxu1 %vm1808_vm3, %v1807_v14 }
 0x256   : > { %v1967_v60 = vpop.f32.mrb[0].mxu1 }
 0x257   : > { %v696_v61 = vpop.f32.mrb[1].mxu1 }
 0x258   : > { %v697_v62 = vadd.f32 %v696_v61, %v628_v59  ;;  %v1969_v63 = vpop.f32.mrb[2].mxu1 }
 0x259   : > { %v699_v0 = vpop.f32.mrb[3].mxu1 }
 0x25a   : > { %v711_v2 = vmax.f32 %v697_v62, 0.0 }
 0x25c   : > { %v731_v5 = vmul.f32 %v717_v1, %v711_v2 }
 0x25e   : > { %v751_v6 = vadd.f32 %v737_v3, %v731_v5 }
 0x260   : > { %v755_v9 = vmul.f32 %v1944_v48, %v751_v6 }
 0x262   : > { %v759_v10 = vpack.c.bf16 %v755_v9, %v755_v9 }
 0x264   : > { %764 = vrot.lane.b32.xlu0 %v759_v10, %s1803_s30  ;;  %761 = vrot.lane.b32.xlu1 %v759_v10, %s1800_s27  ;;  %v767_v17 = vrot.slane %v759_v10, 4 }
 0x268   : > { %632 = vperm.xlu1 %1742, %v1981_v11   ;;  %774 = vperm.xlu0 %1743, %v1986_v12  }
 0x26c   : > { %1744 = vset.pattern.permute.xlu1 %v1805_v7  ;;  %1746 = vset.pattern.permute.xlu0 %v1806_v8 }
 0x26d   : > { %720 = vperm.xlu1 %1744, %v1981_v11   ;;  %740 = vperm.xlu0 %1746, %v1981_v11  }
 0x271   : > { %1749 = vset.pattern.permute.xlu0 %v1805_v7  ;;  %1745 = vset.pattern.permute.xlu1 %v1809_v13 }
 0x272   : > { %825 = vperm.xlu1 %1745, %v1986_v12  }
 0x276   : > { %1747 = vset.pattern.permute.xlu1 %v1810_v15 }
 0x277   : > { %830 = vperm.xlu1 %1747, %v1986_v12  }
 0x27b   : > { %1748 = vset.pattern.permute.xlu1 %v1804_v4 }
 0x2d6   : > { %v762_v18 = vpop.permute.xlu1 %761  ;;  %v765_v20 = vpop.permute.xlu0 %764 }
 0x2d7   : > { %v770_v19 = vsel %vm768_vm4, %v762_v18, %v767_v17  ;;  %v781_v21 = vsel %vm768_vm4, %v765_v20, 0 }
 0x2d8   : > { %1643 = vmatpush3.bf16.msra.mxu1 %v770_v19 }
 0x2d9   : > { %1644 = vmatprep.subr.bf16.mxu1 %v1807_v14 }
 0x2dc   : > { %1645 = vmatpush3.bf16.msra.mxu1 %v781_v21 }
 0x2dd   : > { %1650 = vmatprep.subr.bf16.mxu1 %v1807_v14 }
 0x2df   : > { %1647 = vmatmul.mubr.msk.bf16.vlgmr.msra.gmra.mrb[4].mxu1 %vm777_vm5, %v607_v22 }
 0x2e0   : > { %1654 = vmatprep.mubr.msk.bf16.mxu1 %vm1808_vm3, %v1807_v14 }
 0x2e7   : > { %v633_v23 = vpop.permute.xlu1 %632  ;;  %v775_v26 = vpop.permute.xlu0 %774 }
 0x2e8   : > { %v700_v24 = vadd.f32 %v699_v0, %v633_v23 }
 0x2ea   : > { %v712_v27 = vmax.f32 %v700_v24, 0.0 }
 0x2ec   : > { %v721_v25 = vpop.permute.xlu1 %720  ;;  %v741_v33 = vpop.permute.xlu0 %740 }
 0x2ed   : > { %v732_v30 = vmul.f32 %v721_v25, %v712_v27  ;;  %v2043_v27 = vld [vmem:[%s2168_s6 + $0x18] sm:$0xff] }
 0x2ef   : > { %v752_v38 = vadd.f32 %v741_v33, %v732_v30 }
 0x2f1   : > { %v826_v28 = vpop.permute.xlu1 %825  ;;  %v756_v41 = vmul.f32 %v1944_v48, %v752_v38 }
 0x2f6   : > { %v831_v37 = vpop.permute.xlu1 %830 }
 0x3b2   : > { %v817_v29 = vpop.f32.mrb[4].mxu1 }
 0x3b3   : > { %v818_v31 = vadd.f32 %v817_v29, %v775_v26  ;;  %v1648_v32 = vpop.f32.mrb[5].mxu1  ;;  %v1814_v29 = vmov 8  }
 0x3b4   : > { %v820_v34 = vpop.f32.mrb[6].mxu1 }
 0x3b5   : > { %v823_v35 = vmax.f32 %v818_v31, 0.0  ;;  %v1649_v36 = vpop.f32.mrb[7].mxu1  ;;  %v609_v31 = vld [vmem:[%s2166_s4 + $0x8] sm:$0xf] }
 0x3b7   : > { %v828_v39 = vmul.f32 %v826_v28, %v823_v35  ;;  %v1813_v28 = vmov 5  }
 0x3b9   : > { %v833_v40 = vadd.f32 %v831_v37, %v828_v39 }
 0x3bb   : > { %v834_v42 = vmul.f32 %v1944_v48, %v833_v40 }
 0x3bd   : > { %v835_v43 = vadd.f32 %v834_v42, %v756_v41 }
 0x3bf   : > { %v836_v44 = vpack.c.bf16 %v835_v43, %v835_v43 }
 0x3c1   : > { %841 = vrot.lane.b32.xlu0 %v836_v44, %s1803_s30  ;;  %838 = vrot.lane.b32.xlu1 %v836_v44, %s1800_s27  ;;  %v844_v49 = vrot.slane %v836_v44, 4 }
 0x3c5   : > { %637 = vperm.xlu1 %1748, %v2016_v45   ;;  %849 = vperm.xlu0 %1749, %v1986_v12  }
 0x3c9   : > { %1750 = vset.pattern.permute.xlu1 %v1805_v7  ;;  %1752 = vset.pattern.permute.xlu0 %v1806_v8 }
 0x3ca   : > { %724 = vperm.xlu1 %1750, %v2016_v45   ;;  %744 = vperm.xlu0 %1752, %v2016_v45  }
 0x3ce   : > { %1751 = vset.pattern.permute.xlu1 %v1811_v46 }
 0x3cf   : > { %899 = vperm.xlu1 %1751, %v1986_v12  }
 0x3d3   : > { %1753 = vset.pattern.permute.xlu1 %v1812_v47 }
 0x3d4   : > { %904 = vperm.xlu1 %1753, %v1986_v12  }
 0x3d8   : > { %1754 = vset.pattern.permute.xlu1 %v1804_v4 }
 0x433   : > { %v839_v50 = vpop.permute.xlu1 %838  ;;  %v842_v56 = vpop.permute.xlu0 %841 }
 0x434   : > { %v846_v51 = vsel %vm768_vm4, %v839_v50, %v844_v49  ;;  %v855_v57 = vsel %vm768_vm4, %v842_v56, 0 }
 0x435   : > { %1651 = vmatpush3.bf16.msra.mxu1 %v846_v51 }
 0x436   : > { %1652 = vmatprep.subr.bf16.mxu1 %v1807_v14 }
 0x439   : > { %1653 = vmatpush3.bf16.msra.mxu1 %v855_v57  ;;  %v1775_v57 = vld [vmem:[%s2167_s5 + $0x8] sm:$0xff]  }
 0x43c   : > { %1655 = vmatmul.mubr.msk.bf16.vlgmr.msra.gmra.mrb[8].mxu1 %vm777_vm5, %v608_v58 }
 0x444   : > { %v638_v59 = vpop.permute.xlu1 %637  ;;  %v850_v0 = vpop.permute.xlu0 %849 }
 0x445   : > { %v705_v61 = vadd.f32 %v1967_v60, %v638_v59 }
 0x447   : > { %v713_v1 = vmax.f32 %v705_v61, 0.0 }
 0x449   : > { %v725_v62 = vpop.permute.xlu1 %724  ;;  %v745_v10 = vpop.permute.xlu0 %744 }
 0x44a   : > { %v733_v5 = vmul.f32 %v725_v62, %v713_v1 }
 0x44c   : > { %v753_v20 = vadd.f32 %v745_v10, %v733_v5 }
 0x44e   : > { %v900_v2 = vpop.permute.xlu1 %899  ;;  %v757_v23 = vmul.f32 %v1944_v48, %v753_v20 }
 0x453   : > { %v905_v19 = vpop.permute.xlu1 %904 }
 0x50f   : > { %v891_v3 = vpop.f32.mrb[8].mxu1 }
 0x510   : > { %v892_v6 = vadd.f32 %v891_v3, %v850_v0  ;;  %v1656_v9 = vpop.f32.mrb[9].mxu1 }
 0x511   : > { %v894_v15 = vpop.f32.mrb[10].mxu1 }
 0x512   : > { %v897_v17 = vmax.f32 %v892_v6, 0.0  ;;  %v1657_v18 = vpop.f32.mrb[11].mxu1 }
 0x514   : > { %v902_v21 = vmul.f32 %v900_v2, %v897_v17 }
 0x516   : > { %v907_v22 = vadd.f32 %v905_v19, %v902_v21 }
 0x518   : > { %v908_v60 = vmul.f32 %v1944_v48, %v907_v22 }
 0x51a   : > { %v983_v24 = vpack.c.bf16 %v908_v60, %v834_v42  ;;  %v909_v25 = vadd.f32 %v908_v60, %v757_v23 }
 0x51c   : > { %1666 = vmatprep.subr.bf16.mxu1 %v983_v24  ;;  %v910_v26 = vpack.c.bf16 %v909_v25, %v909_v25 }
 0x51d   : > { %1667 = vmatpush3.bf16.msra.mxu1 %v983_v24 }
 0x51e   : > { %915 = vrot.lane.b32.xlu0 %v910_v26, %s1803_s30  ;;  %912 = vrot.lane.b32.xlu1 %v910_v26, %s1800_s27 }
 0x522   : > { %923 = vperm.xlu0 %1752, %v1986_v12   ;;  %642 = vperm.xlu1 %1754, %v2043_v27  }
 0x526   : > { %1755 = vset.pattern.permute.xlu1 %v1805_v7  ;;  %1756 = vset.pattern.permute.xlu0 %v1813_v28  ;;  %v918_v7 = vrot.slane %v910_v26, 4 }
 0x527   : > { %728 = vperm.xlu1 %1755, %v2043_v27   ;;  %973 = vperm.xlu0 %1756, %v1986_v12  }
 0x52b   : > { %1757 = vset.pattern.permute.xlu1 %v1806_v8  ;;  %1759 = vset.pattern.permute.xlu0 %v1809_v13 }
 0x52c   : > { %748 = vperm.xlu1 %1757, %v2043_v27   ;;  %986 = vperm.xlu0 %1759, %v1935_v16  }
 0x530   : > { %1758 = vset.pattern.permute.xlu1 %v1814_v29  ;;  %998 = vperm.xlu0 %1759, %v2043_v27  }
 0x531   : > { %978 = vperm.xlu1 %1758, %v1986_v12  }
 0x534   : > { %1762 = vset.pattern.permute.xlu0 %v1811_v46 }
 0x535   : > { %1760 = vset.pattern.permute.xlu1 %v1809_v13  ;;  %1075 = vperm.xlu0 %1762, %v1981_v11  }
 0x536   : > { %990 = vperm.xlu1 %1760, %v1981_v11  }
 0x539   : > { %1079 = vperm.xlu0 %1762, %v2016_v45  }
 0x53a   : > { %994 = vperm.xlu1 %1760, %v2016_v45  }
 0x53d   : > { %1765 = vset.pattern.permute.xlu0 %v1813_v28 }
 0x53e   : > { %1761 = vset.pattern.permute.xlu1 %v1811_v46  ;;  %1099 = vperm.xlu0 %1765, %v2016_v45  }
 0x53f   : > { %1071 = vperm.xlu1 %1761, %v1935_v16  }
 0x542   : > { %1768 = vset.pattern.permute.xlu0 %v1804_v4 }
 0x543   : > { %1763 = vset.pattern.permute.xlu1 %v1813_v28 }
 0x544   : > { %1091 = vperm.xlu1 %1763, %v1935_v16  }
 0x548   : > { %1095 = vperm.xlu1 %1763, %v1981_v11  }
 0x54c   : > { %1764 = vset.pattern.permute.xlu1 %v1811_v46 }
 0x54d   : > { %1083 = vperm.xlu1 %1764, %v2043_v27  }
 0x551   : > { %1766 = vset.pattern.permute.xlu1 %v1813_v28 }
 0x552   : > { %1103 = vperm.xlu1 %1766, %v2043_v27  }
 0x556   : > { %1767 = vset.pattern.permute.xlu1 %v1804_v4  ;;  %v1774_v4 = vld [vmem:[%s2167_s5] sm:$0xff]  }
 0x557   : > { %1670 = vmatprep.mubr.msk.bf16.mxu1 %vm655_vm1, %v1774_v4 }
 0x590   : > { %v913_v8 = vpop.permute.xlu1 %912  ;;  %v916_v13 = vpop.permute.xlu0 %915 }
 0x591   : > { %v920_v12 = vsel %vm768_vm4, %v913_v8, %v918_v7  ;;  %v929_v30 = vsel %vm768_vm4, %v916_v13, 0 }
 0x592   : > { %1659 = vmatpush3.bf16.msra.mxu0 %v920_v12 }
 0x593   : > { %1660 = vmatprep.subr.bf16.mxu0 %v1807_v14 }
 0x596   : > { %1661 = vmatpush3.bf16.msra.mxu0 %v929_v30 }
 0x599   : > { %1663 = vmatmul.mubr.msk.bf16.vlgmr.msra.gmra.mrb[4].mxu0 %vm777_vm5, %v609_v31 }
 0x5a1   : > { %v643_v32 = vpop.permute.xlu1 %642  ;;  %v924_v14 = vpop.permute.xlu0 %923 }
 0x5a2   : > { %v708_v34 = vadd.f32 %v1969_v63, %v643_v32 }
 0x5a4   : > { %v714_v35 = vmax.f32 %v708_v34, 0.0 }
 0x5a6   : > { %v729_v33 = vpop.permute.xlu1 %728  ;;  %v974_v41 = vpop.permute.xlu0 %973 }
 0x5a7   : > { %v734_v42 = vmul.f32 %v729_v33, %v714_v35 }
 0x5ab   : > { %v749_v36 = vpop.permute.xlu1 %748  ;;  %v987_v62 = vpop.permute.xlu0 %986 }
 0x5ac   : > { %v754_v47 = vadd.f32 %v749_v36, %v734_v42 }
 0x5ae   : > { %v758_v51 = vmul.f32 %v1944_v48, %v754_v47  ;;  %v618_v47 = vld [vmem:[%s2171_s9 + $0x8] sm:$0xff] }
 0x5af   : > { %v999_v1 = vpop.permute.xlu0 %998 }
 0x5b0   : > { %v979_v46 = vpop.permute.xlu1 %978 }
 0x5b4   : > { %v1076_v3 = vpop.permute.xlu0 %1075 }
 0x5b5   : > { %v991_v58 = vpop.permute.xlu1 %990 }
 0x5b8   : > { %v1080_v18 = vpop.permute.xlu0 %1079 }
 0x5b9   : > { %v995_v59 = vpop.permute.xlu1 %994 }
 0x5bd   : > { %v1100_v12 = vpop.permute.xlu0 %1099 }
 0x5be   : > { %v1072_v61 = vpop.permute.xlu1 %1071 }
 0x5c3   : > { %v1092_v0 = vpop.permute.xlu1 %1091 }
 0x5c7   : > { %v1096_v2 = vpop.permute.xlu1 %1095 }
 0x5cc   : > { %v1084_v10 = vpop.permute.xlu1 %1083 }
 0x5d1   : > { %v1104_v28 = vpop.permute.xlu1 %1103 }
 0x66c   : > { %v965_v37 = vpop.f32.mrb[4].mxu0 }
 0x66d   : > { %v966_v38 = vadd.f32 %v965_v37, %v924_v14  ;;  %v1664_v39 = vpop.f32.mrb[5].mxu0  ;;  %v615_v14 = vld [vmem:[%s2170_s8] sm:$0xff] }
 0x66e   : > { %v968_v40 = vpop.f32.mrb[6].mxu0 }
 0x66f   : > { %v971_v43 = vmax.f32 %v966_v38, 0.0  ;;  %v1665_v44 = vpop.f32.mrb[7].mxu0 }
 0x670   : > { %v616_v44 = vld [vmem:[%s2170_s8 + $0x8] sm:$0xff] }
 0x671   : > { %v976_v49 = vmul.f32 %v974_v41, %v971_v43 }
 0x673   : > { %v981_v50 = vadd.f32 %v979_v46, %v976_v49  ;;  %v619_v46 = vld [vmem:[%s2172_s10] sm:$0xff] }
 0x674   : > { %1689 = vmatprep.mubr.msk.f32.mxu0 %vm1221_vm6, %v619_v46  ;;  %v617_v49 = vld [vmem:[%s2171_s9] sm:$0xff] }
 0x675   : > { %v982_v56 = vmul.f32 %v1944_v48, %v981_v50 }
 0x677   : > { %v984_v63 = vpack.c.bf16 %v758_v51, %v982_v56 }
 0x679   : > { %1668 = vmatprep.subr.bf16.mxu1 %v984_v63 }
 0x67a   : > { %1669 = vmatpush3.bf16.msra.mxu1 %v984_v63 }
 0x67d   : > { %1671 = vmatmul.mubr.msk.bf16.vlgmr.msra.gmra.mrb[12].mxu1 %vm655_vm1, %v1775_v57 }
 0x67e   : > { %1682 = vmatprep.mubr.msk.f32.mxu1 %vm655_vm1, %v615_v14 }
 0x750   : > { %v1672_v5 = vpop.f32.mrb[12].mxu1 }
 0x751   : > { %v1060_v6 = vadd.f32 %v1672_v5, %v995_v59  ;;  %v1051_v9 = vpop.f32.mrb[13].mxu1 }
 0x752   : > { %v1052_v15 = vadd.f32 %v1051_v9, %v987_v62  ;;  %v1673_v17 = vpop.f32.mrb[14].mxu1 }
 0x753   : > { %v1063_v19 = vadd.f32 %v1673_v17, %v999_v1  ;;  %v1054_v20 = vpop.f32.mrb[15].mxu1  ;;  %v1068_v21 = vmax.f32 %v1060_v6, 0.0 }
 0x754   : > { %v1066_v22 = vmax.f32 %v1052_v15, 0.0  ;;  %v1055_v23 = vadd.f32 %v1054_v20, %v991_v58 }
 0x755   : > { %v1069_v60 = vmax.f32 %v1063_v19, 0.0  ;;  %v1088_v29 = vmul.f32 %v1080_v18, %v1068_v21 }
 0x756   : > { %v1086_v24 = vmul.f32 %v1072_v61, %v1066_v22  ;;  %v1067_v25 = vmax.f32 %v1055_v23, 0.0 }
 0x757   : > { %v1089_v26 = vmul.f32 %v1084_v10, %v1069_v60  ;;  %v1108_v4 = vadd.f32 %v1100_v12, %v1088_v29 }
 0x758   : > { %v1087_v7 = vmul.f32 %v1076_v3, %v1067_v25  ;;  %v1106_v8 = vadd.f32 %v1092_v0, %v1086_v24 }
 0x759   : > { %v1109_v13 = vadd.f32 %v1104_v28, %v1089_v26  ;;  %v2103_v34 = vmul.f32 %v1944_v48, %v1108_v4 }
 0x75a   : > { %v2091_v30 = vmul.f32 %v1944_v48, %v1106_v8  ;;  %v1107_v31 = vadd.f32 %v1096_v2, %v1087_v7 }
 0x75b   : > { %v2099_v33 = vmul.f32 %v1944_v48, %v1109_v13 }
 0x75c   : > { %1114 = vadd.xlane.f32.xlu1 %v2091_v30  ;;  %v2095_v32 = vmul.f32 %v1944_v48, %v1107_v31 }
 0x75e   : > { %1116 = vadd.xlane.f32.xlu0 %v2095_v32 }
 0x760   : > { %1120 = vadd.xlane.f32.xlu1 %v2099_v33 }
 0x762   : > { %1118 = vadd.xlane.f32.xlu0 %v2103_v34 }
 0x771   : > { %1211 = vrot.lane.b32.xlu1 %v1981_v11, %s1815_s28 }
 0x775   : > { %1213 = vrot.lane.b32.xlu1 %v2016_v45, %s1815_s28  ;;  %v621_v45 = vld [vmem:[%s2172_s10 + $0x10] sm:$0xff] }
 0x778   : > { %1209 = vrot.lane.b32.xlu0 %v1935_v16, %s1815_s28  ;;  %v620_v16 = vld [vmem:[%s2172_s10 + $0x8] sm:$0xff] }
 0x77c   : > { %1215 = vrot.lane.b32.xlu0 %v2043_v27, %s1815_s28  ;;  %v622_v27 = vld [vmem:[%s2172_s10 + $0x18] sm:$0xff]  ;;  %s426_s28 = scalar_lea.vmem %s2174_s12, %s1552_s20 }
 0x7e9   : > { %v1115_v35 = vpop.xlane.xlu1 %1114 }
 0x7ea   : > { %v1122_v37 = vmul.f32 0.03125, %v1115_v35 }
 0x7eb   : > { %v1117_v36 = vpop.xlane.xlu0 %1116 }
 0x7ec   : > { %v1123_v38 = vmul.f32 0.03125, %v1117_v36 }
 0x7ed   : > { %v1121_v39 = vpop.xlane.xlu1 %1120 }
 0x7ee   : > { %v1695_v40 = vpack.c.bf16 %v1123_v38, %v1122_v37  ;;  %v1125_v42 = vmul.f32 0.03125, %v1121_v39 }
 0x7ef   : > { %v1119_v41 = vpop.xlane.xlu0 %1118 }
 0x7f0   : > { %v1124_v43 = vmul.f32 0.03125, %v1119_v41  ;;  %1696 = vmatprep.subr.bf16.mxu1 %v1695_v40 }
 0x7f1   : > { %1698 = vmatpush3.bf16.msra.mxu1 %v1695_v40  ;;  %v1212_v61 = vpop.permute.xlu1 %1211 }
 0x7f2   : > { %v1699_v48 = vpack.c.bf16 %v1125_v42, %v1124_v43 }
 0x7f3   : > { %v1210_v59 = vpop.permute.xlu0 %1209 }
 0x7f4   : > { %1700 = vmatprep.subr.bf16.mxu1 %v1699_v48 }
 0x7f5   : > { %1702 = vmatpush3.bf16.msra.mxu1 %v1699_v48  ;;  %v1214_v6 = vpop.permute.xlu1 %1213 }
 0x7f7   : > { %v1216_v3 = vpop.permute.xlu0 %1215 }
 0x7f8   : > { %1683 = vmatmul.mubr.msk.f32.vlgmr.msra.gmra.mrb[16].mxu1 %vm655_vm1, %v616_v44 }
 0x8cb   : > { %v1684_v50 = vpop.f32.mrb[16].mxu1 }
 0x8cc   : > { %v1204_v51 = vadd.f32 %v1684_v50, %v618_v47  ;;  %v1198_v56 = vpop.f32.mrb[17].mxu1 }
 0x8cd   : > { %v1199_v63 = vadd.f32 %v1198_v56, %v617_v49 }
 0x8ce   : > { %v1208_v57 = vmax.f32 %v1204_v51, 0.0 }
 0x8cf   : > { %v1207_v11 = vmax.f32 %v1199_v63, 0.0 }
 0x8d1   : > { %v1703_v58 = vpack.c.bf16 %v1208_v57, %v1207_v11 }
 0x8d3   : > { %1704 = vmatprep.subr.bf16.mxu0 %v1703_v58 }
 0x8d4   : > { %1706 = vmatpush3.bf16.msra.mxu0 %v1703_v58 }
 0x8d7   : > { %1690 = vmatmul.mubr.msk.f32.vlgmr.msra.gmra.mrb[8].mxu0 %vm1221_vm6, %v620_v16 }
 0x8d8   : > { %1692 = vmatprep.mubr.msk.f32.mxu0 %vm1221_vm6, %v621_v45 }
 0x8db   : > { %1693 = vmatmul.mubr.msk.f32.gmra.mrb[10].mxu0 %vm1221_vm6, %v622_v27 }
 0x9aa   : > { %v1691_v62 = vpop.f32.mrb[8].mxu0 }
 0x9ab   : > { %v1306_v0 = vadd.f32 %v1691_v62, %v1212_v61  ;;  %v1300_v1 = vpop.f32.mrb[9].mxu0 }
 0x9ac   : > { %v1301_v2 = vadd.f32 %v1300_v1, %v1210_v59 }
 0x9ad   : > { %v1538_v5 = vmul.f32 -1.442695, %v1306_v0 }
 0x9ae   : > { %v1537_v9 = vmul.f32 -1.442695, %v1301_v2  ;;  %v1694_v10 = vpop.f32.mrb[10].mxu0 }
 0x9af   : > { %1776 = vpow2.f32 %v1538_v5  ;;  %v1310_v15 = vpop.f32.mrb[11].mxu0  ;;  %v1316_v17 = vadd.f32 %v1694_v10, %v1216_v3 }
 0x9b0   : > { %1778 = vpow2.f32 %v1537_v9  ;;  %v1311_v18 = vadd.f32 %v1310_v15, %v1214_v6 }
 0x9b1   : > { %v1540_v19 = vmul.f32 -1.442695, %v1316_v17 }
 0x9b2   : > { %v1539_v20 = vmul.f32 -1.442695, %v1311_v18 }
 0x9b3   : > { %1780 = vpow2.f32 %v1540_v19 }
 0x9b4   : > { %1782 = vpow2.f32 %v1539_v20 }
 0x9b9   : > { %v1777_v21 = vpop.eup %1776 }
 0x9ba   : > { %v1779_v22 = vpop.eup %1778  ;;  %v1332_v23 = vadd.f32 1.0, %v1777_v21 }
 0x9bb   : > { %v1331_v60 = vadd.f32 1.0, %v1779_v22 }
 0x9bc   : > { %1784 = vrcp.f32 %v1332_v23 }
 0x9bd   : > { %v1781_v24 = vpop.eup %1780  ;;  %1786 = vrcp.f32 %v1331_v60 }
 0x9be   : > { %v1783_v25 = vpop.eup %1782  ;;  %v1334_v28 = vadd.f32 1.0, %v1781_v24 }
 0x9bf   : > { %v1333_v26 = vadd.f32 1.0, %v1783_v25 }
 0x9c1   : > { %1788 = vrcp.f32 %v1333_v26 }
 0x9c2   : > { %1790 = vrcp.f32 %v1334_v28 }
 0x9c6   : > { %v1785_v29 = vpop.eup %1784 }
 0x9c7   : > { %v1787_v7 = vpop.eup %1786  ;;  %1350 = vperm.xlu0 %1768, %v1785_v29  }
 0x9c8   : > { %1345 = vperm.xlu1 %1767, %v1787_v7  }
 0x9cb   : > { %v1789_v8 = vpop.eup %1788 }
 0x9cc   : > { %1355 = vperm.xlu1 %1767, %v1789_v8   ;;  %v1791_v12 = vpop.eup %1790 }
 0x9d0   : > { %1360 = vperm.xlu1 %1767, %v1791_v12  }
 0xa46   : > { %v1351_v13 = vpop.permute.xlu0 %1350 }
 0xa47   : > { %v1364_v31 = vmul.f32 %v1351_v13, %v2095_v32  ;;  %v1346_v4 = vpop.permute.xlu1 %1345 }
 0xa48   : > { %v1363_v14 = vmul.f32 %v1346_v4, %v2091_v30 }
 0xa49   : > { %v1368_v35 = vadd.f32 %v1364_v31, %v1953_v54 }
 0xa4a   : > { %v1367_v36 = vadd.f32 %v1363_v14, %v1950_v53 }
 0xa4b   : > { %v1392_v37 = vadd.f32 %v1368_v35, %v1953_v54  ;;  %v1356_v38 = vpop.permute.xlu1 %1355 }
 0xa4c   : > { %v1565_v39 = vpack.c.bf16 %v1368_v35, %v1367_v36  ;;  %v1391_v40 = vadd.f32 %v1367_v36, %v1950_v53  ;;  %v1365_v32 = vmul.f32 %v1356_v38, %v2103_v34 }
 0xa4e   : > { %1566 = vst [vmem:[%s421_s25] sm:$0xff] %v1565_v39   ;;  %v1575_v30 = vpack.c.bf16 %v1392_v37, %v1391_v40  ;;  %v1369_v54 = vadd.f32 %v1365_v32, %v1956_v55 }
 0xa4f   : > { %v1361_v41 = vpop.permute.xlu1 %1360 }
 0xa50   : > { %1576 = vst [vmem:[%s426_s28] sm:$0xff] %v1575_v30   ;;  %v1366_v42 = vmul.f32 %v1361_v41, %v2099_v33  ;;  %v1393_v48 = vadd.f32 %v1369_v54, %v1956_v55 }
 0xa52   : > { %v1370_v43 = vadd.f32 %v1366_v42, %v1947_v52 }
 0xa54   : > { %v1570_v44 = vpack.c.bf16 %v1370_v43, %v1369_v54  ;;  %v1394_v53 = vadd.f32 %v1370_v43, %v1947_v52 }
 0xa56   : > { %1582 = vst [vmem:[%s421_s25 + $0x8] sm:$0xff] %v1570_v44   ;;  %v1580_v34 = vpack.c.bf16 %v1394_v53, %v1393_v48 }
 0xa58   : > { %1583 = vst [vmem:[%s426_s28 + $0x8] sm:$0xff] %v1580_v34  }
 0xa59 PF: > { %s23_s21 = sadd.s32 1, %s1798_s21  }
 0xa5a   : > { %p20_p4 = scmp.ge.s32.totalorder %s23_s21, 4  }
 0xa5c   :  { %22 = sbr.rel (!%p20_p4) target bundleno = 1 (0x1), region = 106 }

// kernel: ecapa_forward_pallas.7
= control target key start
LH: loop header
LB: loop body
LE: loop exit
PB: predicated region body
PF: predicated region fallthrough
CT: control target
= control target key end

     0   :  { %s1773_s13 = smov 0   ;;  %s2161_s0 = inlined_call_operand.vmem [shape: bf16[2,32,128], index: 0, kind: input, shape index: {}]   ;;  %s2162_s1 = inlined_call_operand.vmem [shape: bf16[2,32,128], index: 1, kind: input, shape index: {}]   ;;  %s2163_s2 = inlined_call_operand.vmem [shape: bf16[2,32,128], index: 2, kind: input, shape index: {}]   ;;  %s2164_s3 = inlined_call_operand.vmem [shape: bf16[96,96], index: 3, kind: input, shape index: {}]   ;;  %s2165_s4 = inlined_call_operand.vmem [shape: f32[96,2], index: 4, kind: input, shape index: {}]   ;;  %s2166_s5 = inlined_call_operand.vmem [shape: bf16[16,96], index: 5, kind: input, shape index: {}]   ;;  %s2167_s6 = inlined_call_operand.vmem [shape: f32[16,1], index: 6, kind: input, shape index: {}]   ;;  %s2168_s7 = inlined_call_operand.vmem [shape: bf16[96,16], index: 7, kind: input, shape index: {}]   ;;  %s2169_s8 = inlined_call_operand.vmem [shape: f32[16,192], index: 8, kind: input, shape index: {}]   ;;  %s2170_s9 = inlined_call_operand.vmem [shape: f32[16,1], index: 9, kind: input, shape index: {}]   ;;  %s2171_s10 = inlined_call_operand.vmem [shape: f32[2,16,1], index: 10, kind: output, shape index: {}]  }
   0x1 LB: > { %s1424_s14 = sadd.s32 4294967295, %s1711_s13   ;;  %p1428_p0 = scmp.ge.s32.totalorder %s1711_s13, 1  ;;  %s1711_s13 = sphi %s1773_s13, %s20_s13  }
   0x2   : > { %p332_p1 = scmp.lt.s32.totalorder %s1711_s13, 3 }
   0x4   : > { %p333_p2 = pnand %p1428_p0, %p332_p1 }
   0x5   : > { %p380_p3 = scmp.lt.s32.totalorder (!%p333_p2), %s1424_s14, 1  ;;  %v1616_v0 = vld [vmem:[%s2164_s3] sm:$0xff] (!%p333_p2)   ;;  %vm566_vm0 = vcmask (!%p333_p2), 785408   ;;  %v1713_v1 = vmov (!%p333_p2), 0   ;;  %v1807_v6 = vld [vmem:[%s2165_s4 + $0x10] sm:$0xff] (!%p333_p2)  ;;  %v1814_v8 = vld [vmem:[%s2165_s4 + $0x8] sm:$0xff] (!%p333_p2) }
   0x6   : > { %336 = sbr.rel (%p333_p2) target bundleno = 1484 (0x5cc), region = 60  ;;  %1515 = vmatprep.mubr.msk.bf16.mxu0 (!%p333_p2), %vm566_vm0, %v1616_v0  ;;  %1606 = vset.pattern.permute.xlu0 (!%p333_p2), %v1713_v1  ;;  %v1802_v5 = vld [vmem:[%s2165_s4] sm:$0xff] (!%p333_p2)  ;;  %v1819_v9 = vld [vmem:[%s2165_s4 + $0x18] sm:$0xff] (!%p333_p2)  ;;  %v1830_v12 = vld [vmem:[%s2165_s4 + $0x28] sm:$0xff] (!%p333_p2)  ;;  %v1714_v27 = vmov (!%p333_p2), 0.0   ;;  %vm1715_vm1 = vmmov (!%p333_p2), 0  }
   0x7   : > { %1607 = vset.pattern.permute.xlu1 (!%p333_p2), %v1713_v1  ;;  %478 = vperm.xlu0 (!%p333_p2), %1606, %v1802_v5   ;;  %v1824_v11 = vld [vmem:[%s2165_s4 + $0x20] sm:$0xff] (!%p333_p2)  ;;  %v1838_v14 = vld [vmem:[%s2165_s4 + $0x30] sm:$0xff] (!%p333_p2)  ;;  %v1843_v15 = vld [vmem:[%s2165_s4 + $0x38] sm:$0xff] (!%p333_p2)  ;;  %vm840_vm2 = vcmask (!%p333_p2), 130048   ;;  %vm1260_vm4 = vcmask (!%p333_p2), 523264  }
   0x8   : > { %488 = vperm.xlu1 (!%p333_p2), %1607, %v1807_v6   ;;  %v1850_v16 = vld [vmem:[%s2165_s4 + $0x40] sm:$0xff] (!%p333_p2)  ;;  %v1855_v17 = vld [vmem:[%s2165_s4 + $0x48] sm:$0xff] (!%p333_p2)  ;;  %v1618_v19 = vld [vmem:[%s2164_s3 + $0x10] sm:$0xff] (!%p333_p2)   ;;  %1527 = vmatprep.subr.bf16.mxu1 (!%p333_p2), %v1714_v27 }
   0x9   : > { %v1617_v18 = vld [vmem:[%s2164_s3 + $0x8] sm:$0xff] (!%p333_p2)   ;;  %v1868_v20 = vld [vmem:[%s2165_s4 + $0x50] sm:$0xff] (!%p333_p2)  ;;  %v1873_v21 = vld [vmem:[%s2165_s4 + $0x58] sm:$0xff] (!%p333_p2)  ;;  %1539 = vmatprep.mubr.msk.bf16.mxu1 (!%p333_p2), %vm1715_vm1, %v1714_v27 }
   0xa   : > { %v686_v22 = vld [vmem:[%s2167_s6] sm:$0xff] (!%p333_p2)  ;;  %v687_v23 = vld [vmem:[%s2167_s6 + $0x8] sm:$0xff] (!%p333_p2)  ;;  %v1619_v24 = vld [vmem:[%s2164_s3 + $0x18] sm:$0xff] (!%p333_p2)  }
   0xb   : > { %483 = vperm.xlu0 (!%p333_p2), %1606, %v1814_v8   ;;  %v1620_v25 = vld [vmem:[%s2164_s3 + $0x20] sm:$0xff] (!%p333_p2)   ;;  %v1621_v26 = vld [vmem:[%s2164_s3 + $0x28] sm:$0xff] (!%p333_p2)  }
   0xc   : > { %493 = vperm.xlu1 (!%p333_p2), %1607, %v1819_v9  }
   0xd   : > { %s2173_s14 = smov (!%p380_p3, %s1424_s14), 1 }
   0xe   : > { %s1785_s17 = sshll.u32 %s2173_s14, 4 }
   0xf   : > { %s384_s20 = scalar_lea.vmem %s2161_s0, %s1785_s17  ;;  %s389_s23 = scalar_lea.vmem %s2162_s1, %s1785_s17  ;;  %498 = vperm.xlu0 %1606, %v1824_v11  }
  0x10   : > { %v1610_v2 = vld [vmem:[%s384_s20] sm:$0xff]   ;;  %v1611_v3 = vld [vmem:[%s384_s20 + $0x8] sm:$0xff]   ;;  %s394_s26 = scalar_lea.vmem %s2163_s2, %s1785_s17  ;;  %503 = vperm.xlu1 %1607, %v1830_v12   ;;  %s399_s19 = scalar_lea.vmem %s2171_s10, %s1785_s17 }
  0x11   : > { %1503 = vmatprep.subr.bf16.mxu0 %v1610_v2  ;;  %v1612_v4 = vld [vmem:[%s389_s23] sm:$0xff]   ;;  %v1613_v7 = vld [vmem:[%s389_s23 + $0x8] sm:$0xff]  }
  0x12   : > { %1504 = vmatpush3.bf16.msra.mxu0 %v1610_v2  ;;  %v1614_v10 = vld [vmem:[%s394_s26] sm:$0xff]   ;;  %v1615_v13 = vld [vmem:[%s394_s26 + $0x8] sm:$0xff]  }
  0x13   : > { %1505 = vmatprep.subr.bf16.mxu0 %v1611_v3  ;;  %508 = vperm.xlu0 %1606, %v1838_v14  }
  0x14   : > { %513 = vperm.xlu1 %1607, %v1843_v15  }
  0x16   : > { %1506 = vmatpush3.bf16.msra.mxu0 %v1611_v3 }
  0x17   : > { %1507 = vmatprep.subr.bf16.mxu0 %v1612_v4  ;;  %518 = vperm.xlu0 %1606, %v1850_v16  }
  0x18   : > { %523 = vperm.xlu1 %1607, %v1855_v17  }
  0x1a   : > { %1508 = vmatpush3.bf16.msra.mxu0 %v1612_v4 }
  0x1b   : > { %1509 = vmatprep.subr.bf16.mxu0 %v1613_v7  ;;  %528 = vperm.xlu0 %1606, %v1868_v20  }
  0x1c   : > { %533 = vperm.xlu1 %1607, %v1873_v21  }
  0x1e   : > { %1510 = vmatpush3.bf16.msra.mxu0 %v1613_v7 }
  0x1f   : > { %1511 = vmatprep.subr.bf16.mxu0 %v1614_v10  ;;  %690 = vperm.xlu0 %1606, %v686_v22  }
  0x20   : > { %695 = vperm.xlu1 %1607, %v687_v23  }
  0x22   : > { %1512 = vmatpush3.bf16.msra.mxu0 %v1614_v10 }
  0x23   : > { %1513 = vmatprep.subr.bf16.mxu0 %v1615_v13 }
  0x26   : > { %1514 = vmatpush3.bf16.msra.mxu0 %v1615_v13 }
  0x29   : > { %1516 = vmatmul.mubr.msk.bf16.vlgmr.msra.gmra.mrb[0].mxu0 %vm566_vm0, %v1617_v18 }
  0x2a   : > { %1519 = vmatprep.mubr.msk.bf16.mxu0 %vm566_vm0, %v1618_v19 }
  0x31   : > { %1520 = vmatmul.mubr.msk.bf16.gmra.mrb[4].mxu0 %vm566_vm0, %v1619_v24 }
  0x32   : > { %1523 = vmatprep.mubr.msk.bf16.mxu0 %vm566_vm0, %v1620_v25 }
  0x39   : > { %1524 = vmatmul.mubr.msk.bf16.gmra.mrb[8].mxu0 %vm566_vm0, %v1621_v26 }
  0x86   : > { %v479_v29 = vpop.permute.xlu0 %478 }
  0x87   : > { %v489_v28 = vpop.permute.xlu1 %488 }
  0x8a   : > { %v484_v31 = vpop.permute.xlu0 %483 }
  0x8b   : > { %v494_v30 = vpop.permute.xlu1 %493 }
  0x8e   : > { %v499_v37 = vpop.permute.xlu0 %498 }
  0x8f   : > { %v504_v33 = vpop.permute.xlu1 %503 }
  0x92   : > { %v509_v48 = vpop.permute.xlu0 %508 }
  0x93   : > { %v514_v44 = vpop.permute.xlu1 %513 }
  0x96   : > { %v519_v61 = vpop.permute.xlu0 %518 }
  0x97   : > { %v524_v57 = vpop.permute.xlu1 %523 }
  0x9a   : > { %v529_v22 = vpop.permute.xlu0 %528 }
  0x9b   : > { %v534_v7 = vpop.permute.xlu1 %533 }
  0xfc   : > { %v1517_v32 = vpop.f32.mrb[0].mxu0 }
  0xfd   : > { %v619_v34 = vpop.f32.mrb[1].mxu0  ;;  %v628_v41 = vadd.f32 %v1517_v32, %v489_v28  ;;  %v1623_v32 = vld [vmem:[%s2168_s7] sm:$0xff]  }
  0xfe   : > { %v620_v35 = vadd.f32 %v619_v34, %v479_v29  ;;  %v1518_v36 = vpop.f32.mrb[2].mxu0 }
  0xff   : > { %v622_v38 = vpop.f32.mrb[3].mxu0  ;;  %v631_v39 = vadd.f32 %v1518_v36, %v494_v30  ;;  %v1907_v50 = vmax.f32 %v628_v41, 0.0  ;;  %v1628_v36 = vld [vmem:[%s2168_s7 + $0x28] sm:$0xff]  }
 0x100   : > { %v623_v40 = vadd.f32 %v622_v38, %v484_v31  ;;  %v1899_v42 = vmax.f32 %v620_v35, 0.0  ;;  %v1622_v31 = vld [vmem:[%s2166_s5] sm:$0xff]  }
 0x101   : > { %v1903_v45 = vmax.f32 %v631_v39, 0.0  ;;  %v401_v39 = vlaneseq }
 0x102   : > { %v1901_v43 = vmax.f32 %v623_v40, 0.0 }
 0x103   : > { %v681_v56 = vpack.c.bf16 %v1903_v45, %v1907_v50 }
 0x104   : > { %v1521_v46 = vpop.f32.mrb[4].mxu0  ;;  %v680_v47 = vpack.c.bf16 %v1901_v43, %v1899_v42 }
 0x105   : > { %v635_v49 = vpop.f32.mrb[5].mxu0  ;;  %v644_v58 = vadd.f32 %v1521_v46, %v509_v48 }
 0x106   : > { %v636_v51 = vadd.f32 %v635_v49, %v499_v37  ;;  %v1522_v52 = vpop.f32.mrb[6].mxu0  ;;  %1528 = vmatpush3.bf16.msra.mxu1 %v680_v47 }
 0x107   : > { %v638_v53 = vpop.f32.mrb[7].mxu0  ;;  %1529 = vmatprep.subr.bf16.mxu1 %v1714_v27  ;;  %v647_v54 = vadd.f32 %v1522_v52, %v514_v44  ;;  %v1921_v2 = vmax.f32 %v644_v58, 0.0  ;;  %v402_v44 = vand.u32 127, %v401_v39 }
 0x108   : > { %v639_v55 = vadd.f32 %v638_v53, %v504_v33  ;;  %v1912_v59 = vmax.f32 %v636_v51, 0.0  ;;  %v1716_v33 = vmov 1  }
 0x109   : > { %v1917_v62 = vmax.f32 %v647_v54, 0.0  ;;  %1609 = vset.pattern.permute.xlu1 %v1716_v33  ;;  %1608 = vset.pattern.permute.xlu0 %v1716_v33  ;;  %vm403_vm3 = vcmp.lt.s32.totalorder %v402_v44, 32 }
 0x10a   : > { %v1914_v60 = vmax.f32 %v639_v55, 0.0  ;;  %1530 = vmatpush3.bf16.msra.mxu1 %v681_v56  ;;  %767 = vperm.xlu1 %1609, %v1814_v8  }
 0x10b   : > { %1531 = vmatprep.subr.bf16.mxu1 %v1714_v27  ;;  %v683_v19 = vpack.c.bf16 %v1917_v62, %v1921_v2  ;;  %763 = vperm.xlu0 %1608, %v1802_v5   ;;  %v691_v5 = vpop.permute.xlu0 %690 }
 0x10c   : > { %v1525_v63 = vpop.f32.mrb[8].mxu0  ;;  %v682_v0 = vpack.c.bf16 %v1914_v60, %v1912_v59 }
 0x10d   : > { %v651_v1 = vpop.f32.mrb[9].mxu0  ;;  %v660_v23 = vadd.f32 %v1525_v63, %v529_v22 }
 0x10e   : > { %v652_v3 = vadd.f32 %v651_v1, %v519_v61  ;;  %v1526_v4 = vpop.f32.mrb[10].mxu0  ;;  %1532 = vmatpush3.bf16.msra.mxu1 %v682_v0  ;;  %771 = vperm.xlu1 %1609, %v1807_v6  }
 0x10f   : > { %v654_v10 = vpop.f32.mrb[11].mxu0  ;;  %1533 = vmatprep.subr.bf16.mxu1 %v1714_v27  ;;  %v663_v13 = vadd.f32 %v1526_v4, %v534_v7  ;;  %v1935_v29 = vmax.f32 %v660_v23, 0.0  ;;  %775 = vperm.xlu0 %1608, %v1819_v9  }
 0x110   : > { %v655_v18 = vadd.f32 %v654_v10, %v524_v57  ;;  %v1926_v24 = vmax.f32 %v652_v3, 0.0 }
 0x111   : > { %v1931_v26 = vmax.f32 %v663_v13, 0.0 }
 0x112   : > { %v1928_v25 = vmax.f32 %v655_v18, 0.0  ;;  %1534 = vmatpush3.bf16.msra.mxu1 %v683_v19  ;;  %779 = vperm.xlu1 %1609, %v1824_v11  }
 0x113   : > { %1535 = vmatprep.subr.bf16.mxu1 %v1714_v27  ;;  %v685_v30 = vpack.c.bf16 %v1931_v26, %v1935_v29  ;;  %783 = vperm.xlu0 %1608, %v1830_v12  }
 0x114   : > { %v684_v28 = vpack.c.bf16 %v1928_v25, %v1926_v24 }
 0x116   : > { %1536 = vmatpush3.bf16.msra.mxu1 %v684_v28  ;;  %787 = vperm.xlu1 %1609, %v1838_v14  }
 0x117   : > { %1537 = vmatprep.subr.bf16.mxu1 %v1714_v27  ;;  %791 = vperm.xlu0 %1608, %v1843_v15   ;;  %v696_v27 = vpop.permute.xlu1 %695 }
 0x11a   : > { %1538 = vmatpush3.bf16.msra.mxu1 %v685_v30  ;;  %795 = vperm.xlu1 %1609, %v1850_v16   ;;  %v1624_v16 = vld [vmem:[%s2168_s7 + $0x8] sm:$0xff]  }
 0x11b   : > { %799 = vperm.xlu0 %1608, %v1855_v17   ;;  %v1625_v17 = vld [vmem:[%s2168_s7 + $0x10] sm:$0xff]  }
 0x11d   : > { %1540 = vmatmul.mubr.msk.bf16.vlgmr.msra.gmra.mrb[0].mxu1 %vm566_vm0, %v1622_v31 }
 0x11e   : > { %1545 = vmatprep.mubr.msk.bf16.mxu1 %vm840_vm2, %v1623_v32  ;;  %803 = vperm.xlu1 %1609, %v1868_v20   ;;  %v1626_v20 = vld [vmem:[%s2168_s7 + $0x18] sm:$0xff]  }
 0x11f   : > { %807 = vperm.xlu0 %1608, %v1873_v21   ;;  %v1627_v21 = vld [vmem:[%s2168_s7 + $0x20] sm:$0xff]  }
 0x189   : > { %v768_v37 = vpop.permute.xlu1 %767 }
 0x18a   : > { %v764_v38 = vpop.permute.xlu0 %763 }
 0x18d   : > { %v772_v40 = vpop.permute.xlu1 %771 }
 0x18e   : > { %v776_v41 = vpop.permute.xlu0 %775 }
 0x191   : > { %v780_v48 = vpop.permute.xlu1 %779 }
 0x192   : > { %v784_v52 = vpop.permute.xlu0 %783 }
 0x195   : > { %v788_v61 = vpop.permute.xlu1 %787 }
 0x196   : > { %v792_v1 = vpop.permute.xlu0 %791 }
 0x199   : > { %v796_v30 = vpop.permute.xlu1 %795 }
 0x19a   : > { %v800_v31 = vpop.permute.xlu0 %799 }
 0x1f0   : > { %v740_v6 = vpop.f32.mrb[0].mxu1 }
 0x1f1   : > { %v741_v8 = vadd.f32 %v740_v6, %v691_v5  ;;  %v1541_v9 = vpop.f32.mrb[1].mxu1 }
 0x1f2   : > { %v743_v11 = vpop.f32.mrb[2].mxu1 }
 0x1f3   : > { %v744_v34 = vadd.f32 %v743_v11, %v696_v27  ;;  %v1542_v12 = vpop.f32.mrb[3].mxu1  ;;  %1629 = vtanh.f32 %v741_v8 }
 0x1f4   : > { %v808_v12 = vpop.permute.xlu0 %807 }
 0x1f5   : > { %1631 = vtanh.f32 %v744_v34  ;;  %v804_v34 = vpop.permute.xlu1 %803 }
 0x1fd   : > { %v1630_v14 = vpop.eup %1629 }
 0x1ff   : > { %v1632_v15 = vpop.eup %1631 }
 0x200   : > { %v761_v35 = vpack.c.bf16 %v1632_v15, %v1630_v14 }
 0x202   : > { %1543 = vmatprep.subr.bf16.mxu1 %v761_v35 }
 0x203   : > { %1544 = vmatpush3.bf16.msra.mxu1 %v761_v35 }
 0x206   : > { %1546 = vmatmul.mubr.msk.bf16.vlgmr.msra.gmra.mrb[4].mxu1 %vm840_vm2, %v1624_v16 }
 0x207   : > { %1549 = vmatprep.mubr.msk.bf16.mxu1 %vm840_vm2, %v1625_v17 }
 0x20e   : > { %1550 = vmatmul.mubr.msk.bf16.gmra.mrb[8].mxu1 %vm840_vm2, %v1626_v20 }
 0x20f   : > { %1553 = vmatprep.mubr.msk.bf16.mxu1 %vm840_vm2, %v1627_v21 }
 0x216   : > { %1554 = vmatmul.mubr.msk.bf16.gmra.mrb[12].mxu1 %vm840_vm2, %v1628_v36 }
 0x2d9   : > { %v1547_v46 = vpop.f32.mrb[4].mxu1 }
 0x2da   : > { %v893_v47 = vpop.f32.mrb[5].mxu1  ;;  %v902_v57 = vadd.f32 %v1547_v46, %v772_v40 }
 0x2db   : > { %v894_v49 = vadd.f32 %v893_v47, %v764_v38  ;;  %v1548_v51 = vpop.f32.mrb[6].mxu1 }
 0x2dc   : > { %v896_v53 = vpop.f32.mrb[7].mxu1  ;;  %v905_v54 = vadd.f32 %v1548_v51, %v776_v41  ;;  %v944_v10 = vsel %vm403_vm3, %v902_v57, -1e+30 }
 0x2dd   : > { %v897_v55 = vadd.f32 %v896_v53, %v768_v37  ;;  %v942_v56 = vsel %vm403_vm3, %v894_v49, -1e+30 }
 0x2de   : > { %954 = vmax.xlane.f32.xlu1 %v942_v56  ;;  %v945_v0 = vsel %vm403_vm3, %v905_v54, -1e+30 }
 0x2df   : > { %v943_v58 = vsel %vm403_vm3, %v897_v55, -1e+30 }
 0x2e0   : > { %956 = vmax.xlane.f32.xlu0 %v943_v58 }
 0x2e1   : > { %v1551_v63 = vpop.f32.mrb[8].mxu1 }
 0x2e2   : > { %v909_v3 = vpop.f32.mrb[9].mxu1  ;;  %960 = vmax.xlane.f32.xlu1 %v945_v0  ;;  %v918_v19 = vadd.f32 %v1551_v63, %v788_v61 }
 0x2e3   : > { %v910_v4 = vadd.f32 %v909_v3, %v780_v48  ;;  %v1552_v7 = vpop.f32.mrb[10].mxu1 }
 0x2e4   : > { %v912_v13 = vpop.f32.mrb[11].mxu1  ;;  %958 = vmax.xlane.f32.xlu0 %v944_v10  ;;  %v921_v22 = vadd.f32 %v1552_v7, %v792_v1  ;;  %v948_v8 = vsel %vm403_vm3, %v918_v19, -1e+30 }
 0x2e5   : > { %v913_v18 = vadd.f32 %v912_v13, %v784_v52  ;;  %v946_v23 = vsel %vm403_vm3, %v910_v4, -1e+30 }
 0x2e6   : > { %v949_v9 = vsel %vm403_vm3, %v921_v22, -1e+30 }
 0x2e7   : > { %v947_v28 = vsel %vm403_vm3, %v913_v18, -1e+30 }
 0x2e8   : > { %962 = vmax.xlane.f32.xlu0 %v946_v23  ;;  %964 = vmax.xlane.f32.xlu1 %v947_v28 }
 0x2e9   : > { %v1555_v32 = vpop.f32.mrb[12].mxu1 }
 0x2ea   : > { %v925_v33 = vpop.f32.mrb[13].mxu1  ;;  %v934_v14 = vadd.f32 %v1555_v32, %v804_v34 }
 0x2eb   : > { %v926_v5 = vadd.f32 %v925_v33, %v796_v30  ;;  %v1556_v6 = vpop.f32.mrb[14].mxu1 }
 0x2ec   : > { %v928_v27 = vpop.f32.mrb[15].mxu1  ;;  %966 = vmax.xlane.f32.xlu0 %v948_v8  ;;  %968 = vmax.xlane.f32.xlu1 %v949_v9  ;;  %v937_v15 = vadd.f32 %v1556_v6, %v808_v12  ;;  %v952_v17 = vsel %vm403_vm3, %v934_v14, -1e+30 }
 0x2ed   : > { %v929_v11 = vadd.f32 %v928_v27, %v800_v31  ;;  %v950_v35 = vsel %vm403_vm3, %v926_v5, -1e+30 }
 0x2ee   : > { %v953_v20 = vsel %vm403_vm3, %v937_v15, -1e+30 }
 0x2ef   : > { %v951_v16 = vsel %vm403_vm3, %v929_v11, -1e+30 }
 0x2f0   : > { %970 = vmax.xlane.f32.xlu0 %v950_v35  ;;  %972 = vmax.xlane.f32.xlu1 %v951_v16 }
 0x2f4   : > { %974 = vmax.xlane.f32.xlu0 %v952_v17  ;;  %976 = vmax.xlane.f32.xlu1 %v953_v20 }
 0x36b   : > { %v955_v21 = vpop.xlane.xlu1 %954 }
 0x36c   : > { %v978_v36 = vsub.f32 %v942_v56, %v955_v21 }
 0x36d   : > { %v957_v37 = vpop.xlane.xlu0 %956 }
 0x36e   : > { %v990_v38 = vmul.f32 1.442695, %v978_v36  ;;  %v979_v39 = vsub.f32 %v943_v58, %v957_v37 }
 0x36f   : > { %v961_v40 = vpop.xlane.xlu1 %960 }
 0x370   : > { %1633 = vpow2.f32 %v990_v38  ;;  %v992_v41 = vmul.f32 1.442695, %v979_v39  ;;  %v981_v46 = vsub.f32 %v945_v0, %v961_v40 }
 0x371   : > { %v959_v47 = vpop.xlane.xlu0 %958 }
 0x372   : > { %1635 = vpow2.f32 %v992_v41  ;;  %v996_v48 = vmul.f32 1.442695, %v981_v46  ;;  %v980_v49 = vsub.f32 %v944_v10, %v959_v47 }
 0x374   : > { %v994_v51 = vmul.f32 1.442695, %v980_v49  ;;  %1637 = vpow2.f32 %v996_v48 }
 0x375   : > { %v963_v52 = vpop.xlane.xlu0 %962  ;;  %v965_v44 = vpop.xlane.xlu1 %964 }
 0x376   : > { %1639 = vpow2.f32 %v994_v51  ;;  %v982_v53 = vsub.f32 %v946_v23, %v963_v52  ;;  %v983_v54 = vsub.f32 %v947_v28, %v965_v44 }
 0x378   : > { %v998_v55 = vmul.f32 1.442695, %v982_v53  ;;  %v1000_v56 = vmul.f32 1.442695, %v983_v54 }
 0x379   : > { %v967_v57 = vpop.xlane.xlu0 %966  ;;  %v969_v61 = vpop.xlane.xlu1 %968 }
 0x37a   : > { %v1992_v58 = vpop.eup %1633  ;;  %1641 = vpow2.f32 %v998_v55  ;;  %v984_v63 = vsub.f32 %v948_v8, %v967_v57  ;;  %v985_v0 = vsub.f32 %v949_v9, %v969_v61 }
 0x37b   : > { %1643 = vpow2.f32 %v1000_v56  ;;  %1014 = vadd.xlane.f32.xlu0 %v1992_v58 }
 0x37c   : > { %v1995_v1 = vpop.eup %1635  ;;  %v1002_v3 = vmul.f32 1.442695, %v984_v63  ;;  %v1004_v4 = vmul.f32 1.442695, %v985_v0 }
 0x37d   : > { %v971_v7 = vpop.xlane.xlu0 %970  ;;  %1016 = vadd.xlane.f32.xlu1 %v1995_v1  ;;  %v973_v10 = vpop.xlane.xlu1 %972 }
 0x37e   : > { %1645 = vpow2.f32 %v1002_v3  ;;  %v986_v13 = vsub.f32 %v950_v35, %v971_v7  ;;  %v987_v18 = vsub.f32 %v951_v16, %v973_v10  ;;  %v1638_v19 = vpop.eup %1637 }
 0x37f   : > { %1647 = vpow2.f32 %v1004_v4 }
 0x380   : > { %v1640_v22 = vpop.eup %1639  ;;  %v1006_v23 = vmul.f32 1.442695, %v986_v13  ;;  %v1008_v28 = vmul.f32 1.442695, %v987_v18 }
 0x381   : > { %v975_v30 = vpop.xlane.xlu0 %974  ;;  %1018 = vadd.xlane.f32.xlu0 %v1640_v22  ;;  %1020 = vadd.xlane.f32.xlu1 %v1638_v19  ;;  %v977_v31 = vpop.xlane.xlu1 %976 }
 0x382   : > { %1649 = vpow2.f32 %v1006_v23  ;;  %v988_v32 = vsub.f32 %v952_v17, %v975_v30  ;;  %v989_v33 = vsub.f32 %v953_v20, %v977_v31  ;;  %v1717_v23 = vmov 0.0|0.0  }
 0x383   : > { %1651 = vpow2.f32 %v1008_v28  ;;  %1557 = vmatprep.subr.bf16.mxu0 %v1717_v23 }
 0x384   : > { %v1998_v5 = vpop.eup %1641  ;;  %v1010_v6 = vmul.f32 1.442695, %v988_v32  ;;  %v1012_v8 = vmul.f32 1.442695, %v989_v33 }
 0x385   : > { %v2000_v9 = vpop.eup %1643  ;;  %1022 = vadd.xlane.f32.xlu0 %v1998_v5 }
 0x386   : > { %1653 = vpow2.f32 %v1010_v6  ;;  %1024 = vadd.xlane.f32.xlu1 %v2000_v9 }
 0x387   : > { %1655 = vpow2.f32 %v1012_v8 }
 0x388   : > { %v1646_v27 = vpop.eup %1645 }
 0x389   : > { %v1648_v11 = vpop.eup %1647  ;;  %1026 = vadd.xlane.f32.xlu0 %v1646_v27 }
 0x38a   : > { %1028 = vadd.xlane.f32.xlu1 %v1648_v11 }
 0x38c   : > { %v2004_v34 = vpop.eup %1649 }
 0x38d   : > { %v2006_v12 = vpop.eup %1651  ;;  %1030 = vadd.xlane.f32.xlu0 %v2004_v34 }
 0x38e   : > { %1032 = vadd.xlane.f32.xlu1 %v2006_v12 }
 0x390   : > { %v2010_v14 = vpop.eup %1653 }
 0x391   : > { %v2012_v15 = vpop.eup %1655  ;;  %1034 = vadd.xlane.f32.xlu0 %v2010_v14 }
 0x392   : > { %1036 = vadd.xlane.f32.xlu1 %v2012_v15 }
 0x408   : > { %v1015_v35 = vpop.xlane.xlu0 %1014 }
 0x409   : > { %1657 = vrcp.f32 %v1015_v35 }
 0x40a   : > { %v1017_v16 = vpop.xlane.xlu1 %1016 }
 0x40b   : > { %1659 = vrcp.f32 %v1017_v16 }
 0x40e   : > { %v1019_v17 = vpop.xlane.xlu0 %1018  ;;  %v1021_v20 = vpop.xlane.xlu1 %1020 }
 0x40f   : > { %1661 = vrcp.f32 %v1019_v17 }
 0x410   : > { %1663 = vrcp.f32 %v1021_v20 }
 0x412   : > { %v1023_v21 = vpop.xlane.xlu0 %1022 }
 0x413   : > { %v1025_v36 = vpop.xlane.xlu1 %1024  ;;  %v1658_v37 = vpop.eup %1657 }
 0x414   : > { %v1039_v51 = vmul.f32 %v1658_v37, %v1992_v58 }
 0x415   : > { %v1660_v38 = vpop.eup %1659 }
 0x416   : > { %v1027_v39 = vpop.xlane.xlu0 %1026  ;;  %v1041_v44 = vmul.f32 %v1660_v38, %v1995_v1  ;;  %v1062_v53 = vmul.f32 %v1039_v51, %v1899_v42 }
 0x417   : > { %v1029_v41 = vpop.xlane.xlu1 %1028  ;;  %1665 = vrcp.f32 %v1027_v39 }
 0x418   : > { %1667 = vrcp.f32 %v1029_v41  ;;  %v1063_v54 = vmul.f32 %v1041_v44, %v1901_v43  ;;  %v1098_v0 = vmul.f32 %v1062_v53, %v1899_v42 }
 0x419   : > { %v1662_v40 = vpop.eup %1661  ;;  %1669 = vrcp.f32 %v1023_v21 }
 0x41a   : > { %v1664_v46 = vpop.eup %1663  ;;  %v1043_v47 = vmul.f32 %v1662_v40, %v1640_v22  ;;  %1671 = vrcp.f32 %v1025_v36  ;;  %v1031_v58 = vpop.xlane.xlu0 %1030  ;;  %v1099_v4 = vmul.f32 %v1063_v54, %v1901_v43 }
 0x41b   : > { %v1045_v48 = vmul.f32 %v1664_v46, %v1638_v19  ;;  %v1033_v63 = vpop.xlane.xlu1 %1032  ;;  %1673 = vrcp.f32 %v1031_v58 }
 0x41c   : > { %v1064_v49 = vmul.f32 %v1043_v47, %v1907_v50  ;;  %1675 = vrcp.f32 %v1033_v63 }
 0x41d   : > { %v1065_v52 = vmul.f32 %v1045_v48, %v1903_v45 }
 0x41e   : > { %1078 = vadd.xlane.f32.xlu0 %v1064_v49  ;;  %v1100_v55 = vmul.f32 %v1064_v49, %v1907_v50  ;;  %v1035_v50 = vpop.xlane.xlu0 %1034 }
 0x41f   : > { %1080 = vadd.xlane.f32.xlu1 %v1065_v52  ;;  %v1101_v57 = vmul.f32 %v1065_v52, %v1903_v45  ;;  %v1037_v18 = vpop.xlane.xlu1 %1036  ;;  %1677 = vrcp.f32 %v1035_v50 }
 0x420   : > { %1679 = vrcp.f32 %v1037_v18 }
 0x421   : > { %v1666_v56 = vpop.eup %1665 }
 0x422   : > { %1074 = vadd.xlane.f32.xlu0 %v1062_v53  ;;  %v1668_v61 = vpop.eup %1667  ;;  %v1051_v1 = vmul.f32 %v1666_v56, %v1646_v27 }
 0x423   : > { %1076 = vadd.xlane.f32.xlu1 %v1063_v54  ;;  %v1670_v3 = vpop.eup %1669  ;;  %v1053_v7 = vmul.f32 %v1668_v61, %v1648_v11 }
 0x424   : > { %v1672_v10 = vpop.eup %1671  ;;  %v1068_v45 = vmul.f32 %v1051_v1, %v1921_v2  ;;  %v1047_v13 = vmul.f32 %v1670_v3, %v1998_v5 }
 0x425   : > { %v1069_v19 = vmul.f32 %v1053_v7, %v1917_v62  ;;  %v1049_v42 = vmul.f32 %v1672_v10, %v2000_v9  ;;  %v1674_v30 = vpop.eup %1673 }
 0x426   : > { %1114 = vadd.xlane.f32.xlu0 %v1100_v55  ;;  %v1066_v43 = vmul.f32 %v1047_v13, %v1912_v59  ;;  %v1104_v28 = vmul.f32 %v1068_v45, %v1921_v2  ;;  %v1676_v32 = vpop.eup %1675  ;;  %v1055_v5 = vmul.f32 %v1674_v30, %v2004_v34 }
 0x427   : > { %1116 = vadd.xlane.f32.xlu1 %v1101_v57  ;;  %v1067_v22 = vmul.f32 %v1049_v42, %v1914_v60  ;;  %v1105_v31 = vmul.f32 %v1069_v19, %v1917_v62  ;;  %v1057_v9 = vmul.f32 %v1676_v32, %v2006_v12 }
 0x428   : > { %v1102_v33 = vmul.f32 %v1066_v43, %v1912_v59  ;;  %v1070_v2 = vmul.f32 %v1055_v5, %v1926_v24 }
 0x429   : > { %v1678_v6 = vpop.eup %1677  ;;  %v1103_v8 = vmul.f32 %v1067_v22, %v1914_v60  ;;  %v1071_v62 = vmul.f32 %v1057_v9, %v1928_v25 }
 0x42a   : > { %1110 = vadd.xlane.f32.xlu0 %v1098_v0  ;;  %v1680_v27 = vpop.eup %1679  ;;  %v1059_v11 = vmul.f32 %v1678_v6, %v2010_v14  ;;  %v1106_v60 = vmul.f32 %v1070_v2, %v1926_v24 }
 0x42b   : > { %1112 = vadd.xlane.f32.xlu1 %v1099_v4  ;;  %v1061_v35 = vmul.f32 %v1680_v27, %v2012_v15  ;;  %v1107_v12 = vmul.f32 %v1071_v62, %v1928_v25  ;;  %v1255_v15 = vld [vmem:[%s2169_s8 + $0x8] sm:$0xff] }
 0x42c   : > { %v1072_v59 = vmul.f32 %v1059_v11, %v1935_v29  ;;  %1469 = vmatprep.mubr.msk.f32.mxu0 %vm1260_vm4, %v1255_v15 }
 0x42d   : > { %v1073_v34 = vmul.f32 %v1061_v35, %v1931_v26 }
 0x42e   : > { %1086 = vadd.xlane.f32.xlu0 %v1068_v45  ;;  %v1108_v14 = vmul.f32 %v1072_v59, %v1935_v29 }
 0x42f   : > { %1088 = vadd.xlane.f32.xlu1 %v1069_v19  ;;  %v1109_v16 = vmul.f32 %v1073_v34, %v1931_v26 }
 0x432   : > { %1082 = vadd.xlane.f32.xlu0 %v1066_v43 }
 0x433   : > { %1084 = vadd.xlane.f32.xlu1 %v1067_v22 }
 0x436   : > { %1122 = vadd.xlane.f32.xlu0 %v1104_v28 }
 0x437   : > { %1124 = vadd.xlane.f32.xlu1 %v1105_v31 }
 0x43a   : > { %1118 = vadd.xlane.f32.xlu0 %v1102_v33 }
 0x43b   : > { %1120 = vadd.xlane.f32.xlu1 %v1103_v8 }
 0x43e   : > { %1090 = vadd.xlane.f32.xlu0 %v1070_v2 }
 0x43f   : > { %1092 = vadd.xlane.f32.xlu1 %v1071_v62 }
 0x442   : > { %1094 = vadd.xlane.f32.xlu0 %v1072_v59 }
 0x443   : > { %1096 = vadd.xlane.f32.xlu1 %v1073_v34 }
 0x446   : > { %1126 = vadd.xlane.f32.xlu0 %v1106_v60 }
 0x447   : > { %1128 = vadd.xlane.f32.xlu1 %v1107_v12 }
 0x44a   : > { %1130 = vadd.xlane.f32.xlu0 %v1108_v14 }
 0x44b   : > { %1132 = vadd.xlane.f32.xlu1 %v1109_v16 }
 0x4ab   : > { %v1079_v17 = vpop.xlane.xlu0 %1078 }
 0x4ac   : > { %v1081_v20 = vpop.xlane.xlu1 %1080  ;;  %v1136_v36 = vmul.f32 %v1079_v17, %v1079_v17 }
 0x4ad   : > { %v1137_v37 = vmul.f32 %v1081_v20, %v1081_v20  ;;  %v1561_v39 = vpack.c.bf16 %v1081_v20, %v1079_v17 }
 0x4af   : > { %v1075_v24 = vpop.xlane.xlu0 %1074 }
 0x4b0   : > { %v1077_v21 = vpop.xlane.xlu1 %1076  ;;  %v1134_v41 = vmul.f32 %v1075_v24, %v1075_v24 }
 0x4b1   : > { %v1558_v25 = vpack.c.bf16 %v1077_v21, %v1075_v24  ;;  %v1135_v46 = vmul.f32 %v1077_v21, %v1077_v21 }
 0x4b3   : > { %1559 = vmatpush1.bf16.msra.mxu0 %v1558_v25  ;;  %v1115_v29 = vpop.xlane.xlu0 %1114 }
 0x4b4   : > { %v1148_v38 = vsub.f32 %v1115_v29, %v1136_v36  ;;  %v1117_v26 = vpop.xlane.xlu1 %1116  ;;  %1560 = vmatprep.subr.bf16.mxu0 %v1717_v23 }
 0x4b5   : > { %v1149_v40 = vsub.f32 %v1117_v26, %v1137_v37 }
 0x4b6   : > { %v2054_v47 = vmax.f32 %v1148_v38, 1e-09 }
 0x4b7   : > { %1562 = vmatpush1.bf16.msra.mxu0 %v1561_v39  ;;  %v1111_v48 = vpop.xlane.xlu0 %1110  ;;  %v2056_v49 = vmax.f32 %v1149_v40, 1e-09 }
 0x4b8   : > { %v1146_v51 = vsub.f32 %v1111_v48, %v1134_v41  ;;  %v1113_v52 = vpop.xlane.xlu1 %1112  ;;  %1563 = vmatprep.subr.bf16.mxu0 %v1717_v23  ;;  %1681 = vrsqrt.f32 %v2054_v47  ;;  %vm1186_vm5 = vcmp.eq.f32.partialorder %v2054_v47, inf  ;;  %vm1188_vm6 = vcmp.eq.f32.partialorder %v2054_v47, 0.0 }
 0x4b9   : > { %v1147_v44 = vsub.f32 %v1113_v52, %v1135_v46  ;;  %1683 = vrsqrt.f32 %v2056_v49  ;;  %vm1193_vm7 = vcmp.eq.f32.partialorder %v2056_v49, inf  ;;  %v1189_v14 = vand.u32 2147483648, %v2054_v47 }
 0x4ba   : > { %v2059_v53 = vmax.f32 %v1146_v51, 1e-09  ;;  %v1196_v16 = vand.u32 2147483648, %v2056_v49  ;;  %vm1195_vm11 = vcmp.eq.f32.partialorder %v2056_v49, 0.0 }
 0x4bb   : > { %v2062_v54 = vmax.f32 %v1147_v44, 1e-09  ;;  %v1087_v55 = vpop.xlane.xlu0 %1086 }
 0x4bc   : > { %v1089_v56 = vpop.xlane.xlu1 %1088  ;;  %1685 = vrsqrt.f32 %v2059_v53  ;;  %v1140_v63 = vmul.f32 %v1087_v55, %v1087_v55  ;;  %vm1172_vm8 = vcmp.eq.f32.partialorder %v2059_v53, inf  ;;  %vm1174_vm10 = vcmp.eq.f32.partialorder %v2059_v53, 0.0 }
 0x4bd   : > { %1687 = vrsqrt.f32 %v2062_v54  ;;  %v1141_v0 = vmul.f32 %v1089_v56, %v1089_v56  ;;  %v1567_v10 = vpack.c.bf16 %v1089_v56, %v1087_v55  ;;  %vm1179_vm9 = vcmp.eq.f32.partialorder %v2062_v54, inf }
 0x4be   : > { %v1175_v17 = vand.u32 2147483648, %v2059_v53  ;;  %v1182_v20 = vand.u32 2147483648, %v2062_v54  ;;  %vm1181_vm12 = vcmp.eq.f32.partialorder %v2062_v54, 0.0 }
 0x4bf   : > { %v1083_v57 = vpop.xlane.xlu0 %1082 }
 0x4c0   : > { %v1085_v61 = vpop.xlane.xlu1 %1084  ;;  %v1138_v13 = vmul.f32 %v1083_v57, %v1083_v57 }
 0x4c1   : > { %v1564_v58 = vpack.c.bf16 %v1085_v61, %v1083_v57  ;;  %v1139_v42 = vmul.f32 %v1085_v61, %v1085_v61 }
 0x4c2   : > { %v1682_v7 = vpop.eup %1681 }
 0x4c3   : > { %1565 = vmatpush1.bf16.msra.mxu0 %v1564_v58  ;;  %v1123_v1 = vpop.xlane.xlu0 %1122  ;;  %v1684_v45 = vpop.eup %1683  ;;  %v1185_v5 = vmul.f32 %v1682_v7, %v2054_v47 }
 0x4c4   : > { %v1152_v3 = vsub.f32 %v1123_v1, %v1140_v63  ;;  %v1125_v4 = vpop.xlane.xlu1 %1124  ;;  %1566 = vmatprep.subr.bf16.mxu0 %v1717_v23  ;;  %v1192_v6 = vmul.f32 %v1684_v45, %v2056_v49 }
 0x4c5   : > { %v1153_v50 = vsub.f32 %v1125_v4, %v1141_v0  ;;  %v1187_v35 = vsel %vm1186_vm5, %v2054_v47, %v1185_v5 }
 0x4c6   : > { %v2068_v18 = vmax.f32 %v1152_v3, 1e-09  ;;  %v1686_v19 = vpop.eup %1685  ;;  %v1194_v59 = vsel %vm1193_vm7, %v2056_v49, %v1192_v6  ;;  %v1190_v21 = vsel %vm1188_vm6, %v1189_v14, %v1187_v35 }
 0x4c7   : > { %v2070_v43 = vmax.f32 %v1153_v50, 1e-09  ;;  %1568 = vmatpush1.bf16.msra.mxu0 %v1567_v10  ;;  %v1119_v22 = vpop.xlane.xlu0 %1118  ;;  %v1688_v28 = vpop.eup %1687  ;;  %v1171_v27 = vmul.f32 %v1686_v19, %v2059_v53  ;;  %v1197_v25 = vsel %vm1195_vm11, %v1196_v16, %v1194_v59 }
 0x4c8   : > { %v1150_v30 = vsub.f32 %v1119_v22, %v1138_v13  ;;  %v1121_v31 = vpop.xlane.xlu1 %1120  ;;  %1569 = vmatprep.subr.bf16.mxu0 %v1717_v23  ;;  %1689 = vrsqrt.f32 %v2068_v18  ;;  %v1178_v2 = vmul.f32 %v1688_v28, %v2062_v54  ;;  %v1579_v48 = vpack.c.bf16 %v1197_v25, %v1190_v21 }
 0x4c9   : > { %v1151_v32 = vsub.f32 %v1121_v31, %v1139_v42  ;;  %1691 = vrsqrt.f32 %v2070_v43  ;;  %v1173_v60 = vsel %vm1172_vm8, %v2059_v53, %v1171_v27  ;;  %vm1214_vm13 = vcmp.eq.f32.partialorder %v2068_v18, inf }
 0x4ca   : > { %v2075_v33 = vmax.f32 %v1150_v30, 1e-09  ;;  %v1180_v12 = vsel %vm1179_vm9, %v2062_v54, %v1178_v2  ;;  %v1176_v37 = vsel %vm1174_vm10, %v1175_v17, %v1173_v60  ;;  %vm1221_vm14 = vcmp.eq.f32.partialorder %v2070_v43, inf }
 0x4cb   : > { %v2079_v8 = vmax.f32 %v1151_v32, 1e-09  ;;  %v1091_v9 = vpop.xlane.xlu0 %1090  ;;  %v1183_v29 = vsel %vm1181_vm12, %v1182_v20, %v1180_v12  ;;  %v1217_v31 = vand.u32 2147483648, %v2068_v18  ;;  %v1224_v32 = vand.u32 2147483648, %v2070_v43 }
 0x4cc   : > { %1693 = vrsqrt.f32 %v2075_v33  ;;  %v1093_v11 = vpop.xlane.xlu1 %1092  ;;  %v1142_v36 = vmul.f32 %v1091_v9, %v1091_v9  ;;  %v1576_v49 = vpack.c.bf16 %v1183_v29, %v1176_v37  ;;  %vm1200_vm15 = vcmp.eq.f32.partialorder %v2075_v33, inf  ;;  %v1254_v37 = vld [vmem:[%s2169_s8] sm:$0xff]  ;;  %v1257_v29 = vld [vmem:[%s2169_s8 + $0x18] sm:$0xff] }
 0x4cd   : > { %1695 = vrsqrt.f32 %v2079_v8  ;;  %v1570_v62 = vpack.c.bf16 %v1093_v11, %v1091_v9  ;;  %v1143_v26 = vmul.f32 %v1093_v11, %v1093_v11  ;;  %vm1202_vm0 = vcmp.eq.f32.partialorder %v2075_v33, 0.0 }
 0x4ce   : > { %v1203_v54 = vand.u32 2147483648, %v2075_v33  ;;  %vm1207_vm1 = vcmp.eq.f32.partialorder %v2079_v8, inf  ;;  %v1210_v10 = vand.u32 2147483648, %v2079_v8  ;;  %vm1209_vm2 = vcmp.eq.f32.partialorder %v2079_v8, 0.0 }
 0x4cf   : > { %1571 = vmatpush1.bf16.msra.mxu0 %v1570_v62  ;;  %v1095_v34 = vpop.xlane.xlu0 %1094  ;;  %vm1216_vm3 = vcmp.eq.f32.partialorder %v2068_v18, 0.0  ;;  %vm1223_vm5 = vcmp.eq.f32.partialorder %v2070_v43, 0.0 }
 0x4d0   : > { %v1097_v15 = vpop.xlane.xlu1 %1096  ;;  %1572 = vmatprep.subr.bf16.mxu0 %v1717_v23  ;;  %v1144_v52 = vmul.f32 %v1095_v34, %v1095_v34 }
 0x4d1   : > { %v1573_v24 = vpack.c.bf16 %v1097_v15, %v1095_v34  ;;  %v1145_v44 = vmul.f32 %v1097_v15, %v1097_v15 }
 0x4d2   : > { %v1690_v38 = vpop.eup %1689 }
 0x4d3   : > { %1574 = vmatpush1.bf16.msra.mxu0 %v1573_v24  ;;  %v1127_v39 = vpop.xlane.xlu0 %1126  ;;  %v1692_v40 = vpop.eup %1691  ;;  %v1213_v58 = vmul.f32 %v1690_v38, %v2068_v18  ;;  %v1256_v38 = vld [vmem:[%s2169_s8 + $0x10] sm:$0xff] }
 0x4d4   : > { %v1154_v41 = vsub.f32 %v1127_v39, %v1142_v36  ;;  %v1129_v46 = vpop.xlane.xlu1 %1128  ;;  %1575 = vmatprep.subr.bf16.mxu0 %v1717_v23  ;;  %v1220_v63 = vmul.f32 %v1692_v40, %v2070_v43 }
 0x4d5   : > { %v1155_v47 = vsub.f32 %v1129_v46, %v1143_v26  ;;  %v1215_v22 = vsel %vm1214_vm13, %v2068_v18, %v1213_v58 }
 0x4d6   : > { %v1694_v51 = vpop.eup %1693  ;;  %v1166_v53 = vmax.f32 %v1154_v41, 1e-09  ;;  %v1222_v28 = vsel %vm1221_vm14, %v2070_v43, %v1220_v63  ;;  %vm1342_vm14 = vcmask 7168   ;;  %v1259_v41 = vld [vmem:[%s2170_s9 + $0x8] sm:$0xff] }
 0x4d7   : > { %v1696_v55 = vpop.eup %1695  ;;  %v1167_v56 = vmax.f32 %v1155_v47, 1e-09  ;;  %1577 = vmatpush1.bf16.msra.mxu0 %v1576_v49  ;;  %v1131_v57 = vpop.xlane.xlu0 %1130  ;;  %v1199_v61 = vmul.f32 %v1694_v51, %v2075_v33  ;;  %v1225_v5 = vsel %vm1223_vm5, %v1224_v32, %v1222_v28 }
 0x4d8   : > { %1697 = vrsqrt.f32 %v1166_v53  ;;  %v1156_v0 = vsub.f32 %v1131_v57, %v1144_v52  ;;  %v1133_v1 = vpop.xlane.xlu1 %1132  ;;  %1578 = vmatprep.subr.bf16.mxu0 %v1717_v23  ;;  %v1206_v3 = vmul.f32 %v1696_v55, %v2079_v8  ;;  %vm1228_vm6 = vcmp.eq.f32.partialorder %v1166_v53, inf }
 0x4d9   : > { %1699 = vrsqrt.f32 %v1167_v56  ;;  %v1157_v4 = vsub.f32 %v1133_v1, %v1145_v44  ;;  %v1201_v7 = vsel %vm1200_vm15, %v2075_v33, %v1199_v61  ;;  %v1218_v33 = vsel %vm1216_vm3, %v1217_v31, %v1215_v22 }
 0x4da   : > { %v1168_v50 = vmax.f32 %v1156_v0, 1e-09  ;;  %v1204_v45 = vsel %vm1202_vm0, %v1203_v54, %v1201_v7  ;;  %v1208_v13 = vsel %vm1207_vm1, %v2079_v8, %v1206_v3  ;;  %v1585_v6 = vpack.c.bf16 %v1225_v5, %v1218_v33 }
 0x4db   : > { %v1169_v19 = vmax.f32 %v1157_v4, 1e-09  ;;  %1580 = vmatpush1.bf16.msra.mxu0 %v1579_v48  ;;  %v1211_v42 = vsel %vm1209_vm2, %v1210_v10, %v1208_v13  ;;  %v1231_v2 = vand.u32 2147483648, %v1166_v53  ;;  %vm1230_vm7 = vcmp.eq.f32.partialorder %v1166_v53, 0.0 }
 0x4dc   : > { %1701 = vrsqrt.f32 %v1168_v50  ;;  %1581 = vmatprep.subr.bf16.mxu0 %v1717_v23  ;;  %v1582_v30 = vpack.c.bf16 %v1211_v42, %v1204_v45  ;;  %vm1235_vm8 = vcmp.eq.f32.partialorder %v1167_v56, inf  ;;  %v1238_v18 = vand.u32 2147483648, %v1167_v56 }
 0x4dd   : > { %1703 = vrsqrt.f32 %v1169_v19  ;;  %vm1237_vm9 = vcmp.eq.f32.partialorder %v1167_v56, 0.0  ;;  %vm1242_vm10 = vcmp.eq.f32.partialorder %v1168_v50, inf  ;;  %v1245_v16 = vand.u32 2147483648, %v1168_v50 }
 0x4de   : > { %vm1244_vm11 = vcmp.eq.f32.partialorder %v1168_v50, 0.0  ;;  %vm1249_vm12 = vcmp.eq.f32.partialorder %v1169_v19, inf  ;;  %v1252_v20 = vand.u32 2147483648, %v1169_v19  ;;  %vm1251_vm13 = vcmp.eq.f32.partialorder %v1169_v19, 0.0 }
 0x4df   : > { %1583 = vmatpush1.bf16.msra.mxu0 %v1582_v30 }
 0x4e0   : > { %1584 = vmatprep.subr.bf16.mxu0 %v1717_v23 }
 0x4e2   : > { %v1698_v8 = vpop.eup %1697 }
 0x4e3   : > { %v1700_v9 = vpop.eup %1699  ;;  %1586 = vmatpush1.bf16.msra.mxu0 %v1585_v6  ;;  %v1227_v27 = vmul.f32 %v1698_v8, %v1166_v53 }
 0x4e4   : > { %1587 = vmatprep.subr.bf16.mxu0 %v1717_v23  ;;  %v1234_v11 = vmul.f32 %v1700_v9, %v1167_v56 }
 0x4e5   : > { %v1229_v62 = vsel %vm1228_vm6, %v1166_v53, %v1227_v27 }
 0x4e6   : > { %v1702_v43 = vpop.eup %1701  ;;  %v1232_v35 = vsel %vm1230_vm7, %v1231_v2, %v1229_v62  ;;  %v1236_v59 = vsel %vm1235_vm8, %v1167_v56, %v1234_v11 }
 0x4e7   : > { %v1704_v34 = vpop.eup %1703  ;;  %v1239_v60 = vsel %vm1237_vm9, %v1238_v18, %v1236_v59  ;;  %v1241_v12 = vmul.f32 %v1702_v43, %v1168_v50 }
 0x4e8   : > { %v1588_v14 = vpack.c.bf16 %v1239_v60, %v1232_v35  ;;  %v1248_v15 = vmul.f32 %v1704_v34, %v1169_v19 }
 0x4e9   : > { %v1243_v17 = vsel %vm1242_vm10, %v1168_v50, %v1241_v12 }
 0x4ea   : > { %1589 = vmatpush1.bf16.msra.mxu0 %v1588_v14  ;;  %v1246_v24 = vsel %vm1244_vm11, %v1245_v16, %v1243_v17  ;;  %v1250_v21 = vsel %vm1249_vm12, %v1169_v19, %v1248_v15 }
 0x4eb   : > { %1590 = vmatprep.subr.bf16.mxu0 %v1717_v23  ;;  %v1253_v25 = vsel %vm1251_vm13, %v1252_v20, %v1250_v21  ;;  %v1258_v23 = vld [vmem:[%s2170_s9] sm:$0xff] }
 0x4ec   : > { %v1591_v36 = vpack.c.bf16 %v1253_v25, %v1246_v24 }
 0x4ee   : > { %1592 = vmatpush1.bf16.msra.mxu0 %v1591_v36 }
 0x4f1   : > { %1332 = vmatmul.mubr.f32.vlgmr.msra.gmra.mrb[12].mxu0 %v1254_v37 }
 0x4f2   : > { %1470 = vmatprep.mubr.msk.f32.mxu0 %vm1260_vm4, %v1257_v29 }
 0x4f5   : > { %1337 = vmatmul.mubr.f32.gmra.mrb[14].mxu0 %v1256_v38 }
 0x5c4   : > { %v1333_v26 = vpop.f32.mrb[12].mxu0 }
 0x5c5   : > { %v1334_v39 = vadd.f32 %v1333_v26, %v1258_v23  ;;  %v1335_v40 = vpop.f32.mrb[13].mxu0 }
 0x5c7   : > { %1343 = vst.msk [vmem:[%s399_s19] sm:$0xff] %vm1342_vm14, %v1334_v39 }
 0x5c8   : > { %v1338_v46 = vpop.f32.mrb[14].mxu0 }
 0x5c9   : > { %v1339_v48 = vadd.f32 %v1338_v46, %v1259_v41  ;;  %v1340_v47 = vpop.f32.mrb[15].mxu0 }
 0x5cb   : > { %1344 = vst.msk [vmem:[%s399_s19 + $0x8] sm:$0xff] %vm1342_vm14, %v1339_v48 }
 0x5cc PF: > { %s20_s13 = sadd.s32 1, %s1711_s13  }
 0x5cd   : > { %p17_p4 = scmp.ge.s32.totalorder %s20_s13, 4  }
 0x5cf   :  { %19 = sbr.rel (!%p17_p4) target bundleno = 1 (0x1), region = 96 }

</bundles_post_ra>
